<compile_context>
chip_gen: v5e
topology: v5e:2x2
jax: 0.10.0
libtpu: 0.0.40
codegen_flags: <defaults>
</compile_context>

<pallas_src>
import functools

import jax
import jax.numpy as jnp
from jax.experimental import pallas as pl
from jax.experimental.pallas import tpu as pltpu


def _round_up(x, m):
    return (x + m - 1) // m * m


# ----------------------------------------------------------------------------
# Pallas kernel: (tm, K)bf16 @ (K, Npad)bf16 + bias(f32) [+ SiLU], f32 accum
# ----------------------------------------------------------------------------
def _mm_bias_act_kernel(x_ref, w_ref, b_ref, o_ref, *, act):
    acc = jnp.dot(x_ref[...], w_ref[...], preferred_element_type=jnp.float32)
    acc = acc + b_ref[...]                      # (1, Npad) broadcast, f32
    if act == "silu":
        acc = acc * jax.nn.sigmoid(acc)         # exp on EUP slot
    o_ref[...] = acc.astype(o_ref.dtype)


def _pick_tm(m, k, npad, out_bytes):
    cap = _round_up(m, 128)
    budget = 24 * 1024 * 1024                   # stay well under scoped VMEM
    for t in (1024, 512, 256, 128):
        if t > cap:
            continue
        need = (2 * t * k * 2            # double-buffered bf16 LHS
                + k * npad * 2           # bf16 weights
                + 2 * t * npad * out_bytes
                + t * npad * 4)          # f32 accumulator
        if need <= budget:
            return t
    return 128


def matmul_bias_act(x, w, b, act, out_dtype):
    """x: (M, K) bf16, w: (K, Npad) bf16, b: (1, Npad) f32 -> (M, Npad)."""
    M, K = x.shape
    Npad = w.shape[1]
    tm = _pick_tm(M, K, Npad, jnp.dtype(out_dtype).itemsize)
    Mpad = _round_up(M, tm)
    if Mpad != M:
        x = jnp.pad(x, ((0, Mpad - M), (0, 0)))
    out = pl.pallas_call(
        functools.partial(_mm_bias_act_kernel, act=act),
        out_shape=jax.ShapeDtypeStruct((Mpad, Npad), out_dtype),
        grid=(Mpad // tm,),
        in_specs=[
            pl.BlockSpec((tm, K), lambda i: (i, 0)),
            pl.BlockSpec((K, Npad), lambda i: (0, 0)),
            pl.BlockSpec((1, Npad), lambda i: (0, 0)),
        ],
        out_specs=pl.BlockSpec((tm, Npad), lambda i: (i, 0)),
        compiler_params=pltpu.CompilerParams(
            dimension_semantics=("parallel",)),
    )(x, w, b)
    return out[:M] if Mpad != M else out


# ----------------------------------------------------------------------------
# Pallas kernel: fused DFL softmax-expectation + dist2bbox*stride + sigmoid
# ----------------------------------------------------------------------------
def _decode_kernel(box_ref, cls_ref, anc_ref, str_ref, y_ref):
    # box_ref: (1, 4, reg_max, ta) f32 ; cls_ref: (1, nc, ta)
    # anc_ref: (2, ta) ; str_ref: (1, ta) ; y_ref: (1, 4+nc, ta)
    x = box_ref[0]                                       # (4, reg_max, ta)
    m = jnp.max(x, axis=1, keepdims=True)
    e = jnp.exp(x - m)
    bins = jax.lax.broadcasted_iota(jnp.float32, e.shape, 1)
    num = jnp.sum(e * bins, axis=1)                      # (4, ta)
    den = jnp.sum(e, axis=1)                             # (4, ta)
    d = num * pl.reciprocal(den, approx=True)            # DFL expectation

    anc = anc_ref[...]                                   # (2, ta)
    s = str_ref[...]                                     # (1, ta)
    lt = d[0:2, :]
    rb = d[2:4, :]
    x1y1 = anc - lt
    x2y2 = anc + rb
    y_ref[0, 0:2, :] = (x1y1 + x2y2) * (0.5 * s)         # cxy * stride
    y_ref[0, 2:4, :] = (x2y2 - x1y1) * s                 # wh  * stride
    y_ref[0, 4:, :] = jax.nn.sigmoid(cls_ref[0])         # class probs


def decode_fused(box, cls, anchors, strides_t, nc, reg_max, ta):
    """box: (B,4,reg_max,Ap) f32, cls: (B,nc,Ap), anchors: (2,Ap),
    strides_t: (1,Ap) -> (B, 4+nc, Ap)."""
    B = box.shape[0]
    Ap = box.shape[-1]
    return pl.pallas_call(
        _decode_kernel,
        out_shape=jax.ShapeDtypeStruct((B, 4 + nc, Ap), jnp.float32),
        grid=(B, Ap // ta),
        in_specs=[
            pl.BlockSpec((1, 4, reg_max, ta), lambda b, a: (b, 0, 0, a)),
            pl.BlockSpec((1, nc, ta), lambda b, a: (b, 0, a)),
            pl.BlockSpec((2, ta), lambda b, a: (0, a)),
            pl.BlockSpec((1, ta), lambda b, a: (0, a)),
        ],
        out_specs=pl.BlockSpec((1, 4 + nc, ta), lambda b, a: (b, 0, a)),
        compiler_params=pltpu.CompilerParams(
            dimension_semantics=("parallel", "parallel")),
    )(box, cls, anchors, strides_t)


# ----------------------------------------------------------------------------
# JAX glue: im2col, anchors, parameter construction
# ----------------------------------------------------------------------------
def im2col3x3(x_nhwc):
    """x: (B, H, W, C) bf16 -> (B, H, W, 9*C) with SAME padding (pad=1)."""
    B, H, W, C = x_nhwc.shape
    xp = jnp.pad(x_nhwc, ((0, 0), (1, 1), (1, 1), (0, 0)))
    patches = [xp[:, ky:ky + H, kx:kx + W, :] for ky in range(3) for kx in range(3)]
    return jnp.concatenate(patches, axis=-1)
    # TODO(synk): fold the 3x3 im2col into the Pallas kernel (halo tiles /
    # 9 shifted accumulating matmuls) to remove the 9x LHS HBM materialization.


def make_anchors(feat_hw, stride_vals, offset=0.5):
    anchor_points, stride_tensor = [], []
    for (h, w), s in zip(feat_hw, stride_vals):
        sx = jnp.arange(w, dtype=jnp.float32) + offset
        sy = jnp.arange(h, dtype=jnp.float32) + offset
        syy, sxx = jnp.meshgrid(sy, sx, indexing="ij")
        anchor_points.append(jnp.stack((sxx, syy), -1).reshape(-1, 2))
        stride_tensor.append(jnp.full((h * w, 1), float(s), dtype=jnp.float32))
    return jnp.concatenate(anchor_points, 0), jnp.concatenate(stride_tensor, 0)


def _init_conv3(key, cin, cout, eps=1e-3):
    """Conv(3x3, no bias) + eval-mode BN folded -> (9*cin, cout) matrix + bias."""
    k1, k2, k3, k4, k5 = jax.random.split(key, 5)
    w = jax.random.normal(k1, (cout, cin, 3, 3), jnp.float32) / jnp.sqrt(9.0 * cin)
    gamma = jax.random.uniform(k2, (cout,), minval=0.8, maxval=1.2)
    beta = 0.05 * jax.random.normal(k3, (cout,))
    mean = 0.05 * jax.random.normal(k4, (cout,))
    var = jax.random.uniform(k5, (cout,), minval=0.8, maxval=1.2)
    scale = gamma / jnp.sqrt(var + eps)
    w_fold = w * scale[:, None, None, None]
    b_fold = beta - mean * scale
    wmat = jnp.transpose(w_fold, (2, 3, 1, 0)).reshape(9 * cin, cout)
    return wmat, b_fold.reshape(1, cout)


def _init_conv1(key, cin, cout):
    k1, k2 = jax.random.split(key)
    w = jax.random.normal(k1, (cout, cin), jnp.float32) / jnp.sqrt(float(cin))
    b = 0.05 * jax.random.normal(k2, (cout,))
    return w.T, b.reshape(1, cout)


def _pack(w, b):
    """Zero-pad output channels to a multiple of 128, cast weights to bf16."""
    n = w.shape[1]
    npad = _round_up(n, 128)
    if npad != n:
        w = jnp.pad(w, ((0, 0), (0, npad - n)))
        b = jnp.pad(b, ((0, 0), (0, npad - n)))
    return {"w": w.astype(jnp.bfloat16), "b": b.astype(jnp.float32)}


def init_detect_params(key, ch, nc, reg_max):
    c2 = max(16, ch[0] // 4, reg_max * 4)
    c3 = max(ch[0], nc)
    params = []
    for cin in ch:
        key, *ks = jax.random.split(key, 7)
        w20, b20 = _init_conv3(ks[0], cin, c2)
        w30, b30 = _init_conv3(ks[1], cin, c3)
        stem_w = jnp.concatenate([w20, w30], axis=1)   # fused cv2[0] + cv3[0]
        stem_b = jnp.concatenate([b20, b30], axis=1)
        w21, b21 = _init_conv3(ks[2], c2, c2)
        w31, b31 = _init_conv3(ks[3], c3, c3)
        w22, b22 = _init_conv1(ks[4], c2, 4 * reg_max)
        w32, b32 = _init_conv1(ks[5], c3, nc)
        params.append({
            "stem": _pack(stem_w, stem_b),
            "cv2_1": _pack(w21, b21),
            "cv3_1": _pack(w31, b31),
            "cv2_2": _pack(w22, b22),
            "cv3_2": _pack(w32, b32),
        })
    return params


# ----------------------------------------------------------------------------
# Detect.forward (inference / non-export path): returns (y, x)
# ----------------------------------------------------------------------------
def detect_forward(xs, params, nc, reg_max, stride_vals):
    B = xs[0].shape[0]
    ch0 = xs[0].shape[1]
    c2 = max(16, ch0 // 4, reg_max * 4)
    c3 = max(ch0, nc)
    no = nc + reg_max * 4

    feats_out, flat, feat_hw = [], [], []
    for i, x in enumerate(xs):                            # x: (B, C, H, W)
        _, cin, H, W = x.shape
        feat_hw.append((H, W))
        M = B * H * W
        p = params[i]

        xt = jnp.transpose(x, (0, 2, 3, 1)).astype(jnp.bfloat16)   # NHWC bf16
        cols = im2col3x3(xt).reshape(M, 9 * cin)
        # Fused cv2[0] + cv3[0]: single matmul over the shared im2col LHS.
        stem = matmul_bias_act(cols, p["stem"]["w"], p["stem"]["b"],
                               "silu", jnp.bfloat16)
        h = stem[:, :c2].reshape(B, H, W, c2)
        g = stem[:, c2:c2 + c3].reshape(B, H, W, c3)

        # box branch: cv2[1] (3x3) then cv2[2] (1x1, bias, no act)
        h = matmul_bias_act(im2col3x3(h).reshape(M, 9 * c2),
                            p["cv2_1"]["w"], p["cv2_1"]["b"],
                            "silu", jnp.bfloat16)[:, :c2]
        box_o = matmul_bias_act(h, p["cv2_2"]["w"], p["cv2_2"]["b"],
                                None, jnp.float32)[:, :4 * reg_max]

        # cls branch: cv3[1] (3x3) then cv3[2] (1x1, bias, no act)
        g = matmul_bias_act(im2col3x3(g).reshape(M, 9 * c3),
                            p["cv3_1"]["w"], p["cv3_1"]["b"],
                            "silu", jnp.bfloat16)[:, :c3]
        cls_o = matmul_bias_act(g, p["cv3_2"]["w"], p["cv3_2"]["b"],
                                None, jnp.float32)[:, :nc]

        cat = jnp.concatenate([box_o, cls_o], axis=1)     # (M, no) f32
        feat_nchw = jnp.transpose(cat.reshape(B, H, W, no), (0, 3, 1, 2))
        feats_out.append(feat_nchw)                       # (B, no, H, W)
        flat.append(feat_nchw.reshape(B, no, H * W))

    x_cat = jnp.concatenate(flat, axis=2)                 # (B, no, A)
    A = x_cat.shape[-1]
    ta = min(512, _round_up(A, 128))                      # lane tile for decode
    A_pad = _round_up(A, ta)
    x_cat_p = jnp.pad(x_cat, ((0, 0), (0, 0), (0, A_pad - A)))

    box = x_cat_p[:, :reg_max * 4, :].reshape(B, 4, reg_max, A_pad)
    cls = x_cat_p[:, reg_max * 4:, :]

    ap, st = make_anchors(feat_hw, stride_vals, 0.5)
    anchors = jnp.pad(ap.T, ((0, 0), (0, A_pad - A)))                      # (2, A_pad)
    strides_t = jnp.pad(st.T, ((0, 0), (0, A_pad - A)), constant_values=1.0)  # (1, A_pad)

    # Fused DFL + dist2bbox*stride + sigmoid(cls) in one Pallas kernel.
    y = decode_fused(box, cls, anchors, strides_t, nc, reg_max, ta)[:, :, :A]
    return y, feats_out
    # TODO(synk): training branch / export-format branch not implemented (eval path only).


# ----------------------------------------------------------------------------
if __name__ == "__main__":
    key = jax.random.PRNGKey(0)
    B = 2
    nc = 16
    reg_max = 16
    ch = (32, 64, 128)
    hw = ((16, 16), (8, 8), (4, 4))
    stride_vals = (8.0, 16.0, 32.0)   # self.stride is set externally in ultralytics

    kp, kx = jax.random.split(key)
    params = init_detect_params(kp, ch, nc, reg_max)
    xkeys = jax.random.split(kx, len(ch))
    xs = [jax.random.normal(xkeys[i], (B, ch[i], hw[i][0], hw[i][1]), jnp.float32)
          for i in range(len(ch))]

    y, feats = detect_forward(xs, params, nc, reg_max, stride_vals)
    y = jax.block_until_ready(y)
    feats = jax.block_until_ready(feats)

    A = sum(h * w for h, w in hw)
    assert y.shape == (B, 4 + nc, A), y.shape
    assert feats[0].shape == (B, nc + 4 * reg_max, hw[0][0], hw[0][1])
    assert bool(jnp.all(jnp.isfinite(y)))
    print("KERNEL_OK")
</pallas_src>

<mosaic_0001>
module attributes {stable_mosaic.version = 11 : i64} {
  func.func @_mm_bias_act_kernel(%arg0: i32, %arg1: memref<512x288xbf16, #tpu.memory_space<vmem>>, %arg2: memref<288x128xbf16, #tpu.memory_space<vmem>>, %arg3: memref<1x128xf32, #tpu.memory_space<vmem>>, %arg4: memref<512x128xbf16, #tpu.memory_space<vmem>>) attributes {dimension_semantics = [#tpu.dimension_semantics<parallel>], iteration_bounds = array<i64: 1>, scalar_prefetch = 0 : i64, scratch_operands = 0 : i64, tpu.core_type = #tpu.core_type<tc>, window_params = [{transform_indices = @transform_0, window_bounds = array<i64: 512, 288>}, {pipeline_mode = #tpu.pipeline_mode<synchronous>, transform_indices = @transform_1, window_bounds = array<i64: 288, 128>}, {pipeline_mode = #tpu.pipeline_mode<synchronous>, transform_indices = @transform_2, window_bounds = array<i64: 1, 128>}, {transform_indices = @transform_3, window_bounds = array<i64: 512, 128>}]} {
    %c0 = arith.constant 0 : index
    %c0_0 = arith.constant 0 : index
    %0 = vector.load %arg1[%c0, %c0_0] : memref<512x288xbf16, #tpu.memory_space<vmem>>, vector<512x288xbf16>
    %c0_1 = arith.constant 0 : index
    %c0_2 = arith.constant 0 : index
    %1 = vector.load %arg2[%c0_1, %c0_2] : memref<288x128xbf16, #tpu.memory_space<vmem>>, vector<288x128xbf16>
    %cst = arith.constant dense<0.000000e+00> : vector<512x128xf32>
    %2 = tpu.matmul %0, %1, %cst {dimension_numbers = #tpu.dot_dimension_numbers<[1], [0], [0], [1], [0, 0, 1, 1], [], []>} : vector<512x288xbf16>, vector<288x128xbf16>, vector<512x128xf32> -> vector<512x128xf32>
    %c0_3 = arith.constant 0 : index
    %c0_4 = arith.constant 0 : index
    %3 = vector.load %arg3[%c0_3, %c0_4] : memref<1x128xf32, #tpu.memory_space<vmem>>, vector<1x128xf32>
    %4 = vector.broadcast %3 : vector<1x128xf32> to vector<512x128xf32>
    %5 = arith.addf %2, %4 : vector<512x128xf32>
    %6 = arith.negf %5 : vector<512x128xf32>
    %7 = math.exp %6 : vector<512x128xf32>
    %cst_5 = arith.constant 1.000000e+00 : f32
    %8 = vector.broadcast %cst_5 : f32 to vector<512x128xf32>
    %9 = arith.addf %8, %7 : vector<512x128xf32>
    %10 = arith.divf %8, %9 : vector<512x128xf32>
    %11 = arith.mulf %5, %10 : vector<512x128xf32>
    %12 = arith.truncf %11 : vector<512x128xf32> to vector<512x128xbf16>
    %c0_6 = arith.constant 0 : index
    %c0_7 = arith.constant 0 : index
    %13 = vector.load %arg4[%c0_6, %c0_7] : memref<512x128xbf16, #tpu.memory_space<vmem>>, vector<512x128xbf16>
    tpu.vector_store %arg4[%c0_6, %c0_7], %12 {strides = array<i32>} : memref<512x128xbf16, #tpu.memory_space<vmem>>, vector<512x128xbf16>,
    return
  }
  func.func @transform_0(%arg0: i32) -> (i32, i32) {
    %c0_i32 = arith.constant 0 : i32
    %c0_i32_0 = arith.constant 0 : i32
    return %arg0, %c0_i32 : i32, i32
  }
  func.func @transform_1(%arg0: i32) -> (i32, i32) {
    %c0_i32 = arith.constant 0 : i32
    %c0_i32_0 = arith.constant 0 : i32
    %c0_i32_1 = arith.constant 0 : i32
    return %c0_i32, %c0_i32_0 : i32, i32
  }
  func.func @transform_2(%arg0: i32) -> (i32, i32) {
    %c0_i32 = arith.constant 0 : i32
    %c0_i32_0 = arith.constant 0 : i32
    %c0_i32_1 = arith.constant 0 : i32
    return %c0_i32, %c0_i32_0 : i32, i32
  }
  func.func @transform_3(%arg0: i32) -> (i32, i32) {
    %c0_i32 = arith.constant 0 : i32
    %c0_i32_0 = arith.constant 0 : i32
    return %arg0, %c0_i32 : i32, i32
  }
}

</mosaic_0001>

<bundles_post_ra>
// kernel: tpu_custom_call.1
= control target key start
LH: loop header
LB: loop body
LE: loop exit
PB: predicated region body
PF: predicated region fallthrough
CT: control target
= control target key end

     0   :  { %vm772_vm0 = vcmask 261120   ;;  %s6292_s0 = inlined_call_operand.vmem [shape: bf16[512,288], index: 0, kind: input, shape index: {}]   ;;  %s6293_s1 = inlined_call_operand.vmem [shape: bf16[288,128], index: 1, kind: input, shape index: {}]   ;;  %s6294_s2 = inlined_call_operand.vmem [shape: f32[1,128], index: 2, kind: input, shape index: {}]   ;;  %s6295_s3 = inlined_call_operand.hbm [shape: bf16[512,128], index: 3, kind: output, shape index: {}]  }
   0x1   :  { %v3457_v0 = vld [vmem:[%s6293_s1 + $0x38] sm:$0xff]  ;;  %v3995_v1 = vld [vmem:[%s6293_s1 + $0x88] sm:$0xff]  ;;  %v3456_v3 = vld [vmem:[%s6293_s1 + $0x30] sm:$0xff] }
   0x2   :  { %v3465_v2 = vld [vmem:[%s6293_s1 + $0x78] sm:$0xff]  ;;  %869 = vmatpush.bf16.msra.mxu0 %v3457_v0  ;;  %3659 = vmatpush.bf16.msra.mxu3 %v3457_v0  ;;  %v4006_v4 = vld [vmem:[%s6293_s1 + $0x80] sm:$0xff]  ;;  %v3464_v5 = vld [vmem:[%s6293_s1 + $0x70] sm:$0xff] }
   0x3   :  { %1213 = vmatpush.bf16.msra.mxu2 %v3995_v1  ;;  %1038 = vmatpush.bf16.msra.mxu1 %v3465_v2  ;;  %v2812_v6 = vld [vmem:[%s6292_s0 + $0x8] sm:$0xf]  ;;  %v3356_v7 = vld [vmem:[%s6292_s0 + $0x10] sm:$0xf0]  ;;  %v3454_v11 = vld [vmem:[%s6293_s1 + $0x20] sm:$0xff] }
   0x4   :  { %v2813_v8 = vor.u32 %v3356_v7, %v2812_v6  ;;  %v3455_v9 = vld [vmem:[%s6293_s1 + $0x28] sm:$0xff]  ;;  %v3462_v12 = vld [vmem:[%s6293_s1 + $0x60] sm:$0xff] }
   0x5   :  { %v3463_v10 = vld [vmem:[%s6293_s1 + $0x68] sm:$0xff] }
   0x6   :  { %870 = vmatpush.bf16.msra.mxu0 %v3456_v3  ;;  %3660 = vmatpush.bf16.msra.mxu3 %v3456_v3 }
   0x7   :  { %1214 = vmatpush.bf16.msra.mxu2 %v4006_v4  ;;  %1039 = vmatpush.bf16.msra.mxu1 %v3464_v5 }
   0xa   :  { %3258 = vmatmul.msk.bf16.vlgmr.msra.gmra.mxu2 %vm772_vm0, %v2813_v8  ;;  %871 = vmatpush.bf16.msra.mxu0 %v3455_v9 }
   0xb   :  { %3661 = vmatpush.bf16.msra.mxu3 %v3455_v9  ;;  %1040 = vmatpush.bf16.msra.mxu1 %v3463_v10 }
   0xc   :  { %8 = vsyncpa [#allocation3], 0  ;;  %v3453_v13 = vld [vmem:[%s6293_s1 + $0x18] sm:$0xff]  ;;  %v3452_v15 = vld [vmem:[%s6293_s1 + $0x10] sm:$0xff]  ;;  %s2790_s23 = sshll.u32 %s6295_s3, 4  ;;  %s3967_s24 = smov 64   ;;  %s2791_s23 = int_to_ptr.hbm [resolvable:$true] %s2790_s23 }
   0xd   :  { %v3461_v14 = vld [vmem:[%s6293_s1 + $0x58] sm:$0xff]  ;;  %v3460_v16 = vld [vmem:[%s6293_s1 + $0x50] sm:$0xff]  ;;  %v2824_v17 = vld [vmem:[%s6292_s0 + $0x20] sm:$0xf]  ;;  %s3968_s25 = smov 4  }
   0xe   :  { %872 = vmatpush.bf16.msra.mxu0 %v3454_v11  ;;  %v3359_v18 = vld [vmem:[%s6292_s0 + $0x28] sm:$0xf0]  ;;  %v3450_v22 = vld [vmem:[%s6293_s1] sm:$0xff]  ;;  %v2806_v29 = vld [vmem:[%s6292_s0 + $0xc] sm:$0xf0] }
   0xf   :  { %3662 = vmatpush.bf16.msra.mxu3 %v3454_v11  ;;  %1041 = vmatpush.bf16.msra.mxu1 %v3462_v12  ;;  %v2825_v19 = vor.u32 %v3359_v18, %v2824_v17  ;;  %v3451_v20 = vld [vmem:[%s6293_s1 + $0x8] sm:$0xff]  ;;  %v3458_v23 = vld [vmem:[%s6293_s1 + $0x40] sm:$0xff]  ;;  %v2836_v33 = vld [vmem:[%s6292_s0 + $0x38] sm:$0xf] }
  0x10   :  { %v3459_v21 = vld [vmem:[%s6293_s1 + $0x48] sm:$0xff]  ;;  %v2804_v24 = vld [vmem:[%s6292_s0] sm:$0xf]  ;;  %v3354_v28 = vld [vmem:[%s6292_s0 + $0x4] sm:$0xf] }
  0x11   :  { %v3355_v25 = vld [vmem:[%s6292_s0 + $0x8] sm:$0xf0]  ;;  %v3092_v26 = vld [vmem:[%s6292_s0 + $0x240] sm:$0xf]  ;;  %v2809_v32 = vor.u32 %v3354_v28, %v2806_v29  ;;  %v3362_v34 = vld [vmem:[%s6292_s0 + $0x40] sm:$0xf0] }
  0x12   :  { %873 = vmatpush.bf16.msra.mxu0 %v3453_v13  ;;  %v3427_v27 = vld [vmem:[%s6292_s0 + $0x248] sm:$0xf0]  ;;  %v2805_v30 = vor.u32 %v3355_v25, %v2804_v24  ;;  %v2837_v35 = vor.u32 %v3362_v34, %v2836_v33  ;;  %v2816_v36 = vld [vmem:[%s6292_s0 + $0x18] sm:$0xf]  ;;  %v3358_v37 = vld [vmem:[%s6292_s0 + $0x20] sm:$0xf0] }
  0x13   :  { %3663 = vmatpush.bf16.msra.mxu3 %v3453_v13  ;;  %1042 = vmatpush.bf16.msra.mxu1 %v3461_v14  ;;  %v3093_v31 = vor.u32 %v3427_v27, %v3092_v26  ;;  %v3104_v38 = vld [vmem:[%s6292_s0 + $0x258] sm:$0xf]  ;;  %v3430_v39 = vld [vmem:[%s6292_s0 + $0x260] sm:$0xf0]  ;;  %v3357_v40 = vld [vmem:[%s6292_s0 + $0x1c] sm:$0xf]  ;;  %v2817_v42 = vor.u32 %v3358_v37, %v2816_v36 }
  0x14   :  { %v2818_v41 = vld [vmem:[%s6292_s0 + $0x24] sm:$0xf0]  ;;  %v3105_v43 = vor.u32 %v3430_v39, %v3104_v38  ;;  %v2848_v45 = vld [vmem:[%s6292_s0 + $0x50] sm:$0xf]  ;;  %v3365_v46 = vld [vmem:[%s6292_s0 + $0x58] sm:$0xf0] }
  0x15   :  { %v2821_v44 = vor.u32 %v3357_v40, %v2818_v41  ;;  %v2849_v47 = vor.u32 %v3365_v46, %v2848_v45  ;;  %v2828_v48 = vld [vmem:[%s6292_s0 + $0x30] sm:$0xf]  ;;  %v3361_v49 = vld [vmem:[%s6292_s0 + $0x38] sm:$0xf0]  ;;  %v3360_v52 = vld [vmem:[%s6292_s0 + $0x34] sm:$0xf] }
  0x16   :  { %874 = vmatpush.bf16.msra.mxu0 %v3452_v15  ;;  %v3116_v50 = vld [vmem:[%s6292_s0 + $0x270] sm:$0xf]  ;;  %v3433_v51 = vld [vmem:[%s6292_s0 + $0x278] sm:$0xf0]  ;;  %v2830_v53 = vld [vmem:[%s6292_s0 + $0x3c] sm:$0xf0]  ;;  %v2829_v54 = vor.u32 %v3361_v49, %v2828_v48 }
  0x17   :  { %3664 = vmatpush.bf16.msra.mxu3 %v3452_v15  ;;  %1043 = vmatpush.bf16.msra.mxu1 %v3460_v16  ;;  %v3117_v55 = vor.u32 %v3433_v51, %v3116_v50  ;;  %v2833_v56 = vor.u32 %v3360_v52, %v2830_v53  ;;  %v2860_v57 = vld [vmem:[%s6292_s0 + $0x68] sm:$0xf]  ;;  %v3368_v58 = vld [vmem:[%s6292_s0 + $0x70] sm:$0xf0]  ;;  %v3363_v0 = vld [vmem:[%s6292_s0 + $0x4c] sm:$0xf] }
  0x18   :  { %v2861_v59 = vor.u32 %v3368_v58, %v2860_v57  ;;  %v2840_v60 = vld [vmem:[%s6292_s0 + $0x48] sm:$0xf]  ;;  %v3364_v61 = vld [vmem:[%s6292_s0 + $0x50] sm:$0xf0]  ;;  %v3371_v6 = vld [vmem:[%s6292_s0 + $0x88] sm:$0xf0] }
  0x19   :  { %v3128_v62 = vld [vmem:[%s6292_s0 + $0x288] sm:$0xf]  ;;  %v3436_v63 = vld [vmem:[%s6292_s0 + $0x290] sm:$0xf0]  ;;  %v2852_v8 = vld [vmem:[%s6292_s0 + $0x60] sm:$0xf] }
  0x1a   :  { %3259 = vmatmul.msk.bf16.gmra.mxu2 %vm772_vm0, %v2825_v19  ;;  %875 = vmatpush.bf16.msra.mxu0 %v3451_v20  ;;  %v3129_v3 = vor.u32 %v3436_v63, %v3128_v62  ;;  %v3367_v9 = vld [vmem:[%s6292_s0 + $0x68] sm:$0xf0]  ;;  %v2854_v13 = vld [vmem:[%s6292_s0 + $0x6c] sm:$0xf0]  ;;  %v2884_v17 = vld [vmem:[%s6292_s0 + $0x98] sm:$0xf] }
  0x1b   :  { %3665 = vmatpush.bf16.msra.mxu3 %v3451_v20  ;;  %1044 = vmatpush.bf16.msra.mxu1 %v3459_v21  ;;  %v3439_v11 = vld [vmem:[%s6292_s0 + $0x2a8] sm:$0xf0]  ;;  %v3374_v18 = vld [vmem:[%s6292_s0 + $0xa0] sm:$0xf0]  ;;  %v2864_v20 = vld [vmem:[%s6292_s0 + $0x78] sm:$0xf] }
  0x1c   :  { %v2885_v19 = vor.u32 %v3374_v18, %v2884_v17  ;;  %v3369_v24 = vld [vmem:[%s6292_s0 + $0x7c] sm:$0xf]  ;;  %v2866_v25 = vld [vmem:[%s6292_s0 + $0x84] sm:$0xf0]  ;;  %v2896_v29 = vld [vmem:[%s6292_s0 + $0xb0] sm:$0xf] }
  0x1d   :  { %v2869_v28 = vor.u32 %v3369_v24, %v2866_v25  ;;  %v3373_v33 = vld [vmem:[%s6292_s0 + $0x98] sm:$0xf0]  ;;  %v3164_v34 = vld [vmem:[%s6292_s0 + $0x2d0] sm:$0xf]  ;;  %v3372_v36 = vld [vmem:[%s6292_s0 + $0x94] sm:$0xf] }
  0x1e   :  { %876 = vmatpush.bf16.msra.mxu0 %v3450_v22  ;;  %v2878_v37 = vld [vmem:[%s6292_s0 + $0x9c] sm:$0xf0]  ;;  %v2908_v41 = vld [vmem:[%s6292_s0 + $0xc8] sm:$0xf]  ;;  %v3376_v45 = vld [vmem:[%s6292_s0 + $0xb0] sm:$0xf0] }
  0x1f   :  { %3666 = vmatpush.bf16.msra.mxu3 %v3450_v22  ;;  %1045 = vmatpush.bf16.msra.mxu1 %v3458_v23  ;;  %v3152_v22 = vld [vmem:[%s6292_s0 + $0x2b8] sm:$0xf]  ;;  %v2881_v40 = vor.u32 %v3372_v36, %v2878_v37  ;;  %v3176_v46 = vld [vmem:[%s6292_s0 + $0x2e8] sm:$0xf]  ;;  %v3375_v48 = vld [vmem:[%s6292_s0 + $0xac] sm:$0xf] }
  0x20   :  { %v2890_v49 = vld [vmem:[%s6292_s0 + $0xb4] sm:$0xf0]  ;;  %v4267_v58 = vld [vmem:[%s6294_s2] ss:$0 sm:$0xff]  ;;  %v3094_v62 = vld [vmem:[%s6292_s0 + $0x24c] sm:$0xf0] }
  0x21   :  { %877 = vmatmul.bf16.vlgmr.msra.gmra.mxu0 %v2805_v30  ;;  %v3377_v30 = vld [vmem:[%s6292_s0 + $0xb8] sm:$0xf0]  ;;  %v2893_v53 = vor.u32 %v3375_v48, %v2890_v49  ;;  %v3378_v63 = vld [vmem:[%s6292_s0 + $0xc4] sm:$0xf]  ;;  %v3106_v24 = vld [vmem:[%s6292_s0 + $0x264] sm:$0xf0] }
  0x22   :  { %997 = vmatmul.bf16.vlgmr.msra.gmra.mxu3 %v3093_v31  ;;  %1046 = vmatmul.bf16.vlgmr.msra.gmra.mxu1 %v2809_v32  ;;  %v2897_v31 = vor.u32 %v3377_v30, %v2896_v29  ;;  %v2876_v32 = vld [vmem:[%s6292_s0 + $0x90] sm:$0xf]  ;;  %v3381_v25 = vld [vmem:[%s6292_s0 + $0xdc] sm:$0xf] }
  0x23   :  { %3667 = vmatpush.bf16.msrb.mxu3 %v3465_v2  ;;  %v2841_v2 = vor.u32 %v3364_v61, %v2840_v60  ;;  %v2877_v38 = vor.u32 %v3373_v33, %v2876_v32  ;;  %v3379_v60 = vld [vmem:[%s6292_s0 + $0xc8] sm:$0xf0]  ;;  %v3426_v61 = vld [vmem:[%s6292_s0 + $0x244] sm:$0xf] }
  0x27   :  { %3668 = vmatpush.bf16.msrb.mxu3 %v3464_v5  ;;  %v2872_v5 = vld [vmem:[%s6292_s0 + $0x80] sm:$0xf] }
  0x28   :  { %v2873_v7 = vor.u32 %v3371_v6, %v2872_v5 }
  0x2a   :  { %3260 = vmatmul.msk.bf16.gmra.mxu2 %vm772_vm0, %v2837_v35  ;;  %v3445_v35 = vld [vmem:[%s6292_s0 + $0x2d8] sm:$0xf0] }
  0x2b   :  { %3669 = vmatpush.bf16.msrb.mxu3 %v3463_v10  ;;  %v3140_v10 = vld [vmem:[%s6292_s0 + $0x2a0] sm:$0xf]  ;;  %v3165_v39 = vor.u32 %v3445_v35, %v3164_v34 }
  0x2c   :  { %v3141_v15 = vor.u32 %v3439_v11, %v3140_v10  ;;  %v2932_v10 = vld [vmem:[%s6292_s0 + $0xf8] sm:$0xf]  ;;  %v3386_v11 = vld [vmem:[%s6292_s0 + $0x100] sm:$0xf0] }
  0x2f   :  { %3670 = vmatpush.bf16.msrb.mxu3 %v3462_v12  ;;  %v3366_v12 = vld [vmem:[%s6292_s0 + $0x64] sm:$0xf] }
  0x31   :  { %882 = vmatmul.bf16.gmra.mxu0 %v2817_v42  ;;  %v3380_v42 = vld [vmem:[%s6292_s0 + $0xd0] sm:$0xf0] }
  0x32   :  { %1002 = vmatmul.bf16.gmra.mxu3 %v3105_v43  ;;  %1051 = vmatmul.bf16.gmra.mxu1 %v2821_v44  ;;  %v2909_v43 = vor.u32 %v3380_v42, %v2908_v41  ;;  %v2888_v44 = vld [vmem:[%s6292_s0 + $0xa8] sm:$0xf]  ;;  %v3389_v41 = vld [vmem:[%s6292_s0 + $0x118] sm:$0xf0] }
  0x33   :  { %3671 = vmatpush.bf16.msrb.mxu3 %v3461_v14  ;;  %v2853_v14 = vor.u32 %v3367_v9, %v2852_v8  ;;  %v2889_v51 = vor.u32 %v3376_v45, %v2888_v44 }
  0x37   :  { %3672 = vmatpush.bf16.msrb.mxu3 %v3460_v16  ;;  %v2857_v16 = vor.u32 %v3366_v12, %v2854_v13 }
  0x3a   :  { %3261 = vmatmul.msk.bf16.gmra.mxu2 %vm772_vm0, %v2849_v47  ;;  %v3448_v47 = vld [vmem:[%s6292_s0 + $0x2f0] sm:$0xf0] }
  0x3b   :  { %3673 = vmatpush.bf16.msrb.mxu3 %v3459_v21  ;;  %v3370_v21 = vld [vmem:[%s6292_s0 + $0x80] sm:$0xf0]  ;;  %v3177_v52 = vor.u32 %v3448_v47, %v3176_v46 }
  0x3c   :  { %v2865_v26 = vor.u32 %v3370_v21, %v2864_v20  ;;  %v2912_v20 = vld [vmem:[%s6292_s0 + $0xd8] sm:$0xf]  ;;  %v3382_v21 = vld [vmem:[%s6292_s0 + $0xe0] sm:$0xf0] }
  0x3f   :  { %3674 = vmatpush.bf16.msrb.mxu3 %v3458_v23  ;;  %v3442_v23 = vld [vmem:[%s6292_s0 + $0x2c0] sm:$0xf0] }
  0x40   :  { %v3153_v27 = vor.u32 %v3442_v23, %v3152_v22  ;;  %v3429_v22 = vld [vmem:[%s6292_s0 + $0x25c] sm:$0xf] }
  0x41   :  { %887 = vmatmul.bf16.gmra.mxu0 %v2829_v54  ;;  %v2920_v54 = vld [vmem:[%s6292_s0 + $0xe0] sm:$0xf]  ;;  %v3109_v34 = vor.u32 %v3429_v22, %v3106_v24 }
  0x42   :  { %1007 = vmatmul.bf16.gmra.mxu3 %v3117_v55  ;;  %1056 = vmatmul.bf16.gmra.mxu1 %v2833_v56  ;;  %v3383_v55 = vld [vmem:[%s6292_s0 + $0xe8] sm:$0xf0] }
  0x43   :  { %3675 = vmatpush.bf16.msra.mxu3 %v3995_v1  ;;  %v2842_v1 = vld [vmem:[%s6292_s0 + $0x54] sm:$0xf0]  ;;  %v2921_v57 = vor.u32 %v3383_v55, %v2920_v54  ;;  %v2924_v55 = vld [vmem:[%s6292_s0 + $0xf0] sm:$0xf] }
  0x47   :  { %3676 = vmatpush.bf16.msra.mxu3 %v4006_v4  ;;  %v2845_v4 = vor.u32 %v3363_v0, %v2842_v1  ;;  %v2902_v0 = vld [vmem:[%s6292_s0 + $0xcc] sm:$0xf0] }
  0x48   :  { %v2905_v5 = vor.u32 %v3378_v63, %v2902_v0  ;;  %v2926_v63 = vld [vmem:[%s6292_s0 + $0xfc] sm:$0xf0] }
  0x4a   :  { %3262 = vmatmul.msk.bf16.gmra.mxu2 %vm772_vm0, %v2861_v59  ;;  %v2900_v59 = vld [vmem:[%s6292_s0 + $0xc0] sm:$0xf] }
  0x51   :  { %892 = vmatmul.bf16.gmra.mxu0 %v2841_v2  ;;  %v2901_v2 = vor.u32 %v3379_v60, %v2900_v59 }
  0x52   :  { %1012 = vmatmul.bf16.gmra.mxu3 %v3129_v3  ;;  %1061 = vmatmul.bf16.gmra.mxu1 %v2845_v4  ;;  %v3097_v4 = vor.u32 %v3426_v61, %v3094_v62  ;;  %v3118_v61 = vld [vmem:[%s6292_s0 + $0x27c] sm:$0xf0]  ;;  %v3384_v62 = vld [vmem:[%s6292_s0 + $0xf4] sm:$0xf] }
  0x5a   :  { %3263 = vmatmul.msk.bf16.gmra.mxu2 %vm772_vm0, %v2873_v7 }
  0x61   :  { %897 = vmatmul.bf16.gmra.mxu0 %v2853_v14 }
  0x62   :  { %1017 = vmatmul.bf16.gmra.mxu3 %v3141_v15  ;;  %1066 = vmatmul.bf16.gmra.mxu1 %v2857_v16  ;;  %v2933_v16 = vor.u32 %v3386_v11, %v2932_v10  ;;  %v2929_v10 = vor.u32 %v3384_v62, %v2926_v63 }
  0x6a   :  { %3264 = vmatmul.msk.bf16.gmra.mxu2 %vm772_vm0, %v2885_v19 }
  0x71   :  { %902 = vmatmul.bf16.gmra.mxu0 %v2865_v26  ;;  %v2914_v26 = vld [vmem:[%s6292_s0 + $0xe4] sm:$0xf0] }
  0x72   :  { %1022 = vmatmul.bf16.gmra.mxu3 %v3153_v27  ;;  %1071 = vmatmul.bf16.gmra.mxu1 %v2869_v28  ;;  %v2917_v35 = vor.u32 %v3381_v25, %v2914_v26  ;;  %v2956_v26 = vld [vmem:[%s6292_s0 + $0x128] sm:$0xf] }
  0x7a   :  { %3265 = vmatmul.msk.bf16.gmra.mxu2 %vm772_vm0, %v2897_v31  ;;  %v2913_v31 = vor.u32 %v3382_v21, %v2912_v20 }
  0x81   :  { %907 = vmatmul.bf16.gmra.mxu0 %v2877_v38 }
  0x82   :  { %1027 = vmatmul.bf16.gmra.mxu3 %v3165_v39  ;;  %1076 = vmatmul.bf16.gmra.mxu1 %v2881_v40  ;;  %v2944_v40 = vld [vmem:[%s6292_s0 + $0x110] sm:$0xf] }
  0x83   :  { %v2945_v49 = vor.u32 %v3389_v41, %v2944_v40 }
  0x8a   :  { %3266 = vmatmul.msk.bf16.gmra.mxu2 %vm772_vm0, %v2909_v43 }
  0x8d   :  { %v1216_v50 = vpop.f32.mrf.mxu2 }
  0x91   :  { %912 = vmatmul.bf16.gmra.mxu0 %v2889_v51 }
  0x92   :  { %1032 = vmatmul.bf16.gmra.mxu3 %v3177_v52  ;;  %1081 = vmatmul.bf16.gmra.mxu1 %v2893_v53 }
  0x95   :  { %v1218_v56 = vpop.f32.mrf.mxu2 }
  0x9a   :  { %3267 = vmatmul.msk.bf16.gmra.mxu2 %vm772_vm0, %v2921_v57  ;;  %v3432_v57 = vld [vmem:[%s6292_s0 + $0x274] sm:$0xf] }
  0x9d   :  { %v1221_v1 = vpop.f32.mrf.mxu2 }
  0x9e   :  { %v878_v3 = vpop.f32.mrf.mxu0 }
  0x9f   :  { %v879_v6 = vadd.f32 %v4267_v58, %v878_v3  ;;  %v1047_v7 = vpop.f32.mrf.mxu1 }
  0xa1   :  { %v1048_v8 = vadd.f32 %v1047_v7, %v879_v6  ;;  %917 = vmatmul.bf16.gmra.mxu0 %v2901_v2 }
  0xa2   :  { %1166 = vmatmul.bf16.vlgmr.msrb.gmra.mxu3 %v3097_v4  ;;  %1086 = vmatmul.bf16.gmra.mxu1 %v2905_v5 }
  0xa3   :  { %v4289_v9 = vadd.f32 %v1216_v50, %v1048_v8  ;;  %v3121_v8 = vor.u32 %v3432_v57, %v3118_v61  ;;  %v3387_v57 = vld [vmem:[%s6292_s0 + $0x10c] sm:$0xf] }
  0xa5   :  { %v3290_v12 = vmul.f32 -1.442695, %v4289_v9  ;;  %v4298_v13 = vpop.f32.mrf.mxu3  ;;  %v1223_v14 = vpop.f32.mrf.mxu2 }
  0xa6   :  { %v880_v15 = vpop.f32.mrf.mxu0 }
  0xa7   :  { %3681 = vpow2.f32 %v3290_v12  ;;  %v881_v17 = vadd.f32 %v4267_v58, %v880_v15  ;;  %v1049_v18 = vpop.f32.mrf.mxu1 }
  0xa9   :  { %v1050_v19 = vadd.f32 %v1049_v18, %v881_v17 }
  0xaa   :  { %3268 = vmatmul.msk.bf16.gmra.mxu2 %vm772_vm0, %v2933_v16 }
  0xab   :  { %v4311_v23 = vadd.f32 %v1218_v56, %v1050_v19  ;;  %v3385_v56 = vld [vmem:[%s6292_s0 + $0xf8] sm:$0xf0] }
  0xac   :  { %v2925_v4 = vor.u32 %v3385_v56, %v2924_v55 }
  0xad   :  { %v3682_v27 = vpop.eup %3681  ;;  %v3291_v28 = vmul.f32 -1.442695, %v4311_v23  ;;  %v4323_v29 = vpop.f32.mrf.mxu3 }
  0xae   :  { %v4325_v30 = vpop.f32.mrf.mxu2  ;;  %v4327_v32 = vadd.f32 1.0, %v3682_v27  ;;  %v883_v33 = vpop.f32.mrf.mxu0  ;;  %v3392_v27 = vld [vmem:[%s6292_s0 + $0x130] sm:$0xf0] }
  0xaf   :  { %3683 = vpow2.f32 %v3291_v28  ;;  %v884_v36 = vadd.f32 %v4267_v58, %v883_v33  ;;  %v1052_v37 = vpop.f32.mrf.mxu1 }
  0xb0   :  { %3685 = vrcp.f32 %v4327_v32  ;;  %v1643_v15 = vand.u32 2147483648, %v4327_v32  ;;  %vm1637_vm2 = vweird.f32 %v4327_v32  ;;  %v1641_v16 = vand.u32 2147483647, %v4327_v32 }
  0xb1   :  { %v1053_v38 = vadd.f32 %v1052_v37, %v884_v36  ;;  %922 = vmatmul.bf16.gmra.mxu0 %v2913_v31 }
  0xb2   :  { %1171 = vmatmul.bf16.gmra.mxu3 %v3109_v34  ;;  %1091 = vmatmul.bf16.gmra.mxu1 %v2917_v35  ;;  %v1644_v28 = vor.u32 1.1754944e-38, %v1643_v15  ;;  %vm1642_vm5 = vcmp.eq.f32.partialorder %v1641_v16, 8.507059e+37 }
  0xb3   :  { %v4331_v39 = vadd.f32 %v1221_v1, %v1053_v38 }
  0xb5   :  { %v3684_v42 = vpop.eup %3683  ;;  %v3292_v43 = vmul.f32 -1.442695, %v4331_v39  ;;  %v4340_v44 = vpop.f32.mrf.mxu3 }
  0xb6   :  { %v4342_v45 = vpop.f32.mrf.mxu2  ;;  %v4344_v46 = vpop.eup %3685  ;;  %v4346_v47 = vadd.f32 1.0, %v3684_v42  ;;  %v2957_v42 = vor.u32 %v3392_v27, %v2956_v26  ;;  %v2968_v27 = vld [vmem:[%s6292_s0 + $0x140] sm:$0xf] }
  0xb7   :  { %v885_v48 = vpop.f32.mrf.mxu0  ;;  %v1633_v50 = vmul.f32 %v4344_v46, %v4327_v32  ;;  %3687 = vpow2.f32 %v3292_v43  ;;  %v1054_v52 = vpop.f32.mrf.mxu1  ;;  %vm1638_vm1 = vweird.f32 %v4344_v46 }
  0xb8   :  { %v886_v51 = vadd.f32 %v4267_v58, %v885_v48  ;;  %3689 = vrcp.f32 %v4346_v47  ;;  %vm4389_vm3 = vmor %vm1637_vm2, %vm1638_vm1  ;;  %v1656_v20 = vand.u32 2147483647, %v4346_v47  ;;  %v1658_v21 = vand.u32 2147483648, %v4346_v47 }
  0xb9   :  { %v1634_v53 = vsub.f32 1.0, %v1633_v50  ;;  %vm1652_vm6 = vweird.f32 %v4346_v47 }
  0xba   :  { %v1055_v54 = vadd.f32 %v1054_v52, %v886_v51  ;;  %3269 = vmatmul.msk.bf16.gmra.mxu2 %vm772_vm0, %v2945_v49  ;;  %v1659_v38 = vor.u32 1.1754944e-38, %v1658_v21  ;;  %vm1657_vm8 = vcmp.eq.f32.partialorder %v1656_v20, 8.507059e+37  ;;  %v2936_v52 = vld [vmem:[%s6292_s0 + $0x108] sm:$0xf] }
  0xbb   :  { %v1635_v59 = vmul.f32 %v4344_v46, %v1634_v53 }
  0xbc   :  { %v4363_v60 = vadd.f32 %v1223_v14, %v1055_v54  ;;  %v3388_v54 = vld [vmem:[%s6292_s0 + $0x110] sm:$0xf0] }
  0xbd   :  { %v3688_v0 = vpop.eup %3687  ;;  %v4375_v2 = vpop.f32.mrf.mxu3  ;;  %v1636_v11 = vadd.f32 %v4344_v46, %v1635_v59  ;;  %v2938_v59 = vld [vmem:[%s6292_s0 + $0x114] sm:$0xf0] }
  0xbe   :  { %v3293_v1 = vmul.f32 -1.442695, %v4363_v60  ;;  %v4377_v3 = vpop.f32.mrf.mxu2  ;;  %v3690_v5 = vpop.eup %3689  ;;  %v4379_v6 = vadd.f32 1.0, %v3688_v0  ;;  %v2937_v0 = vor.u32 %v3388_v54, %v2936_v52  ;;  %v2948_v54 = vld [vmem:[%s6292_s0 + $0x120] sm:$0xf] }
  0xbf   :  { %v888_v7 = vpop.f32.mrf.mxu0  ;;  %v1648_v12 = vmul.f32 %v3690_v5, %v4346_v47  ;;  %v1057_v14 = vpop.f32.mrf.mxu1  ;;  %v1640_v22 = vsel %vm4389_vm3, %v4344_v46, %v1636_v11  ;;  %vm1653_vm4 = vweird.f32 %v3690_v5 }
  0xc0   :  { %3691 = vpow2.f32 %v3293_v1  ;;  %v889_v18 = vadd.f32 %v4267_v58, %v888_v7  ;;  %v1645_v37 = vsel %vm1642_vm5, %v1644_v28, %v1640_v22  ;;  %vm1654_vm7 = vmor %vm1652_vm6, %vm1653_vm4  ;;  %vm1667_vm10 = vweird.f32 %v4379_v6  ;;  %v3395_v28 = vld [vmem:[%s6292_s0 + $0x148] sm:$0xf0] }
  0xc1   :  { %3693 = vrcp.f32 %v4379_v6  ;;  %v1649_v17 = vsub.f32 1.0, %v1648_v12  ;;  %927 = vmatmul.bf16.gmra.mxu0 %v2925_v4  ;;  %v2592_v49 = vmul.f32 %v1645_v37, %v4289_v9  ;;  %v3435_v9 = vld [vmem:[%s6292_s0 + $0x28c] sm:$0xf]  ;;  %v1673_v16 = vand.u32 2147483648, %v4379_v6 }
  0xc2   :  { %1176 = vmatmul.bf16.gmra.mxu3 %v3121_v8  ;;  %1096 = vmatmul.bf16.gmra.mxu1 %v2929_v10  ;;  %v1058_v25 = vadd.f32 %v1057_v14, %v889_v18  ;;  %v2941_v10 = vor.u32 %v3387_v57, %v2938_v59  ;;  %v3390_v59 = vld [vmem:[%s6292_s0 + $0x124] sm:$0xf] }
  0xc3   :  { %v1650_v24 = vmul.f32 %v3690_v5, %v1649_v17 }
  0xc4   :  { %v4406_v33 = vadd.f32 %v4325_v30, %v1058_v25 }
  0xc5   :  { %v1651_v32 = vadd.f32 %v3690_v5, %v1650_v24  ;;  %v4408_v34 = vpop.f32.mrf.mxu3 }
  0xc6   :  { %v3692_v31 = vpop.eup %3691  ;;  %v4410_v35 = vpop.f32.mrf.mxu2  ;;  %v3294_v30 = vmul.f32 -1.442695, %v4406_v33 }
  0xc7   :  { %v4412_v36 = vpop.eup %3693  ;;  %v4414_v40 = vadd.f32 1.0, %v3692_v31  ;;  %v890_v41 = vpop.f32.mrf.mxu0  ;;  %v1655_v43 = vsel %vm1654_vm7, %v3690_v5, %v1651_v32  ;;  %v1674_v31 = vor.u32 1.1754944e-38, %v1673_v16 }
  0xc8   :  { %v1663_v46 = vmul.f32 %v4412_v36, %v4379_v6  ;;  %v1059_v47 = vpop.f32.mrf.mxu1  ;;  %v1660_v48 = vsel %vm1657_vm8, %v1659_v38, %v1655_v43  ;;  %v891_v53 = vadd.f32 %v4267_v58, %v890_v41  ;;  %vm1668_vm9 = vweird.f32 %v4412_v36 }
  0xc9   :  { %3695 = vrcp.f32 %v4414_v40  ;;  %v2593_v50 = vmul.f32 %v1660_v48, %v4311_v23  ;;  %v3130_v23 = vld [vmem:[%s6292_s0 + $0x294] sm:$0xf0]  ;;  %vm4459_vm11 = vmor %vm1667_vm10, %vm1668_vm9  ;;  %v1686_v24 = vand.u32 2147483647, %v4414_v40  ;;  %v1688_v25 = vand.u32 2147483648, %v4414_v40 }
  0xca   :  { %v1664_v51 = vsub.f32 1.0, %v1663_v46  ;;  %3697 = vpow2.f32 %v3294_v30  ;;  %3270 = vmatmul.msk.bf16.gmra.mxu2 %vm772_vm0, %v2957_v42  ;;  %v1060_v61 = vadd.f32 %v1059_v47, %v891_v53  ;;  %v3133_v1 = vor.u32 %v3435_v9, %v3130_v23  ;;  %v3391_v9 = vld [vmem:[%s6292_s0 + $0x128] sm:$0xf0] }
  0xcb   :  { %v3471_v55 = vpack.c.bf16 %v2593_v50, %v2592_v49  ;;  %vm1682_vm14 = vweird.f32 %v4414_v40  ;;  %v1689_v41 = vor.u32 1.1754944e-38, %v1688_v25  ;;  %v2969_v43 = vor.u32 %v3395_v28, %v2968_v27 }
  0xcc   :  { %v1665_v56 = vmul.f32 %v4412_v36, %v1664_v51  ;;  %v4450_v7 = vadd.f32 %v4342_v45, %v1060_v61  ;;  %v1671_v45 = vand.u32 2147483647, %v4379_v6  ;;  %vm1687_vm1 = vcmp.eq.f32.partialorder %v1686_v24, 8.507059e+37  ;;  %v2950_v61 = vld [vmem:[%s6292_s0 + $0x12c] sm:$0xf0] }
  0xcd   :  { %3472 = vst [vmem:[#allocation2] sm:$0xff] %v3471_v55   ;;  %v4443_v62 = vpop.f32.mrf.mxu3 }
  0xce   :  { %v4445_v63 = vpop.f32.mrf.mxu2  ;;  %v1666_v5 = vadd.f32 %v4412_v36, %v1665_v56  ;;  %v3295_v18 = vmul.f32 -1.442695, %v4450_v7  ;;  %vm1672_vm13 = vcmp.eq.f32.partialorder %v1671_v45, 8.507059e+37 }
  0xcf   :  { %v3696_v4 = vpop.eup %3695  ;;  %v893_v8 = vpop.f32.mrf.mxu0 }
  0xd0   :  { %v3698_v11 = vpop.eup %3697  ;;  %v1678_v12 = vmul.f32 %v3696_v4, %v4414_v40  ;;  %v894_v14 = vadd.f32 %v4267_v58, %v893_v8  ;;  %v1062_v15 = vpop.f32.mrf.mxu1  ;;  %v1670_v22 = vsel %vm4459_vm11, %v4412_v36, %v1666_v5  ;;  %vm1683_vm12 = vweird.f32 %v3696_v4 }
  0xd1   :  { %v4456_v17 = vadd.f32 1.0, %v3698_v11  ;;  %932 = vmatmul.bf16.gmra.mxu0 %v2937_v0  ;;  %vm1684_vm15 = vmor %vm1682_vm14, %vm1683_vm12 }
  0xd2   :  { %v1679_v20 = vsub.f32 1.0, %v1678_v12  ;;  %v1063_v21 = vadd.f32 %v1062_v15, %v894_v14  ;;  %1181 = vmatmul.bf16.gmra.mxu3 %v3133_v1  ;;  %1101 = vmatmul.bf16.gmra.mxu1 %v2941_v10  ;;  %v2953_v14 = vor.u32 %v3390_v59, %v2950_v61  ;;  %v3393_v61 = vld [vmem:[%s6292_s0 + $0x13c] sm:$0xf] }
  0xd3   :  { %3699 = vrcp.f32 %v4456_v17  ;;  %vm1697_vm3 = vweird.f32 %v4456_v17  ;;  %v1701_v25 = vand.u32 2147483647, %v4456_v17 }
  0xd4   :  { %v1680_v26 = vmul.f32 %v3696_v4, %v1679_v20  ;;  %3701 = vpow2.f32 %v3295_v18  ;;  %v4471_v6 = vadd.f32 %v4377_v3, %v1063_v21  ;;  %v1675_v3 = vsel %vm1672_vm13, %v1674_v31, %v1670_v22  ;;  %v2980_v20 = vld [vmem:[%s6292_s0 + $0x158] sm:$0xf]  ;;  %v3398_v21 = vld [vmem:[%s6292_s0 + $0x160] sm:$0xf0] }
  0xd5   :  { %v4481_v37 = vpop.f32.mrf.mxu3  ;;  %v2594_v50 = vmul.f32 %v1675_v3, %v4331_v39  ;;  %v3438_v39 = vld [vmem:[%s6292_s0 + $0x2a4] sm:$0xf]  ;;  %vm1702_vm6 = vcmp.eq.f32.partialorder %v1701_v25, 8.507059e+37 }
  0xd6   :  { %v1681_v32 = vadd.f32 %v3696_v4, %v1680_v26  ;;  %v3296_v36 = vmul.f32 -1.442695, %v4471_v6  ;;  %v4483_v38 = vpop.f32.mrf.mxu2  ;;  %v1703_v26 = vand.u32 2147483648, %v4456_v17 }
  0xd7   :  { %v895_v42 = vpop.f32.mrf.mxu0 }
  0xd8   :  { %v1685_v46 = vsel %vm1684_vm15, %v3696_v4, %v1681_v32  ;;  %3703 = vpow2.f32 %v3296_v36  ;;  %v896_v30 = vadd.f32 %v4267_v58, %v895_v42  ;;  %v1064_v47 = vpop.f32.mrf.mxu1 }
  0xd9   :  { %v4486_v48 = vpop.eup %3699  ;;  %v1690_v40 = vsel %vm1687_vm1, %v1689_v41, %v1685_v46 }
  0xda   :  { %v3702_v49 = vpop.eup %3701  ;;  %v2595_v51 = vmul.f32 %v1690_v40, %v4363_v60  ;;  %v1693_v52 = vmul.f32 %v4486_v48, %v4456_v17  ;;  %v1065_v53 = vadd.f32 %v1064_v47, %v896_v30  ;;  %3271 = vmatmul.msk.bf16.gmra.mxu2 %vm772_vm0, %v2969_v43  ;;  %v3142_v60 = vld [vmem:[%s6292_s0 + $0x2ac] sm:$0xf0]  ;;  %vm1698_vm2 = vweird.f32 %v4486_v48 }
  0xdb   :  { %v4498_v23 = vadd.f32 1.0, %v3702_v49  ;;  %v3145_v12 = vor.u32 %v3438_v39, %v3142_v60  ;;  %vm4542_vm4 = vmor %vm1697_vm3, %vm1698_vm2  ;;  %v3154_v60 = vld [vmem:[%s6292_s0 + $0x2c4] sm:$0xf0] }
  0xdc   :  { %v3476_v55 = vpack.c.bf16 %v2595_v51, %v2594_v50  ;;  %v1694_v56 = vsub.f32 1.0, %v1693_v52  ;;  %v4508_v57 = vadd.f32 %v4410_v35, %v1065_v53  ;;  %v2949_v35 = vor.u32 %v3391_v9, %v2948_v54  ;;  %v2960_v53 = vld [vmem:[%s6292_s0 + $0x138] sm:$0xf]  ;;  %v3394_v54 = vld [vmem:[%s6292_s0 + $0x140] sm:$0xf0] }
  0xdd   :  { %3705 = vrcp.f32 %v4498_v23  ;;  %v4518_v4 = vpop.f32.mrf.mxu3  ;;  %v1716_v17 = vand.u32 2147483647, %v4498_v23  ;;  %v1718_v43 = vand.u32 2147483648, %v4498_v23  ;;  %v1704_v50 = vor.u32 1.1754944e-38, %v1703_v26 }
  0xde   :  { %v3704_v0 = vpop.eup %3703  ;;  %3628 = vst [vmem:[#allocation2 + $0x8] sm:$0xff] %v3476_v55   ;;  %v3297_v1 = vmul.f32 -1.442695, %v4508_v57  ;;  %v4520_v5 = vpop.f32.mrf.mxu2  ;;  %v1695_v8 = vmul.f32 %v4486_v48, %v1694_v56  ;;  %vm1712_vm7 = vweird.f32 %v4498_v23 }
  0xdf   :  { %v4523_v10 = vadd.f32 1.0, %v3704_v0  ;;  %v898_v11 = vpop.f32.mrf.mxu0  ;;  %v1719_v39 = vor.u32 1.1754944e-38, %v1718_v43  ;;  %vm1717_vm9 = vcmp.eq.f32.partialorder %v1716_v17, 8.507059e+37  ;;  %v2962_v0 = vld [vmem:[%s6292_s0 + $0x144] sm:$0xf0] }
  0xe0   :  { %3707 = vpow2.f32 %v3297_v1  ;;  %v899_v15 = vadd.f32 %v4267_v58, %v898_v11  ;;  %v1067_v16 = vpop.f32.mrf.mxu1  ;;  %v1696_v45 = vadd.f32 %v4486_v48, %v1695_v8  ;;  %v2992_v43 = vld [vmem:[%s6292_s0 + $0x170] sm:$0xf] }
  0xe1   :  { %3709 = vrcp.f32 %v4523_v10  ;;  %937 = vmatmul.bf16.gmra.mxu0 %v2949_v35  ;;  %vm1727_vm11 = vweird.f32 %v4523_v10  ;;  %v1731_v26 = vand.u32 2147483647, %v4523_v10 }
  0xe2   :  { %v1068_v18 = vadd.f32 %v1067_v16, %v899_v15  ;;  %1186 = vmatmul.bf16.gmra.mxu3 %v3145_v12  ;;  %1106 = vmatmul.bf16.gmra.mxu1 %v2953_v14  ;;  %v1700_v42 = vsel %vm4542_vm4, %v4486_v48, %v1696_v45  ;;  %v2961_v16 = vor.u32 %v3394_v54, %v2960_v53 }
  0xe3   :  { %v3706_v19 = vpop.eup %3705  ;;  %v1705_v9 = vsel %vm1702_vm6, %v1704_v50, %v1700_v42  ;;  %vm1732_vm14 = vcmp.eq.f32.partialorder %v1731_v26, 8.507059e+37 }
  0xe4   :  { %v1708_v22 = vmul.f32 %v3706_v19, %v4498_v23  ;;  %v4537_v24 = vadd.f32 %v4445_v63, %v1068_v18  ;;  %v2981_v63 = vor.u32 %v3398_v21, %v2980_v20  ;;  %vm1713_vm5 = vweird.f32 %v3706_v19  ;;  %v3441_v23 = vld [vmem:[%s6292_s0 + $0x2bc] sm:$0xf] }
  0xe5   :  { %v4547_v36 = vpop.f32.mrf.mxu3  ;;  %vm1714_vm8 = vmor %vm1712_vm7, %vm1713_vm5  ;;  %v2596_v8 = vmul.f32 %v1705_v9, %v4406_v33  ;;  %v3157_v20 = vor.u32 %v3441_v23, %v3154_v60  ;;  %v2965_v21 = vor.u32 %v3393_v61, %v2962_v0 }
  0xe6   :  { %v3708_v27 = vpop.eup %3707  ;;  %v1709_v31 = vsub.f32 1.0, %v1708_v22  ;;  %v3298_v32 = vmul.f32 -1.442695, %v4537_v24  ;;  %v4549_v3 = vpop.f32.mrf.mxu2 }
  0xe7   :  { %v4551_v41 = vpop.eup %3709  ;;  %v4558_v46 = vadd.f32 1.0, %v3708_v27  ;;  %v900_v30 = vpop.f32.mrf.mxu0 }
  0xe8   :  { %v1710_v47 = vmul.f32 %v3706_v19, %v1709_v31  ;;  %v1723_v40 = vmul.f32 %v4551_v41, %v4523_v10  ;;  %3711 = vpow2.f32 %v3298_v32  ;;  %v1069_v49 = vpop.f32.mrf.mxu1  ;;  %v901_v52 = vadd.f32 %v4267_v58, %v900_v30  ;;  %v3401_v30 = vld [vmem:[%s6292_s0 + $0x178] sm:$0xf0] }
  0xe9   :  { %3713 = vrcp.f32 %v4558_v46  ;;  %vm1728_vm10 = vweird.f32 %v4551_v41  ;;  %v1746_v32 = vand.u32 2147483647, %v4558_v46  ;;  %vm1742_vm15 = vweird.f32 %v4558_v46 }
  0xea   :  { %v1711_v51 = vadd.f32 %v3706_v19, %v1710_v47  ;;  %v1724_v48 = vsub.f32 1.0, %v1723_v40  ;;  %3272 = vmatmul.msk.bf16.gmra.mxu2 %vm772_vm0, %v2981_v63  ;;  %v1070_v59 = vadd.f32 %v1069_v49, %v901_v52  ;;  %vm4604_vm12 = vmor %vm1727_vm11, %vm1728_vm10  ;;  %v1748_v63 = vand.u32 2147483648, %v4558_v46 }
  0xeb   :  { %v2993_v9 = vor.u32 %v3401_v30, %v2992_v43  ;;  %vm1747_vm2 = vcmp.eq.f32.partialorder %v1746_v32, 8.507059e+37 }
  0xec   :  { %v1715_v55 = vsel %vm1714_vm8, %v3706_v19, %v1711_v51  ;;  %v1725_v56 = vmul.f32 %v4551_v41, %v1724_v48  ;;  %v4588_v12 = vadd.f32 %v4483_v38, %v1070_v59  ;;  %v1733_v38 = vand.u32 2147483648, %v4523_v10 }
  0xed   :  { %v1720_v1 = vsel %vm1717_vm9, %v1719_v39, %v1715_v55  ;;  %v4590_v14 = vpop.f32.mrf.mxu3  ;;  %v1749_v52 = vor.u32 1.1754944e-38, %v1748_v63 }
  0xee   :  { %v3712_v35 = vpop.eup %3711  ;;  %v2597_v11 = vmul.f32 %v1720_v1, %v4450_v7  ;;  %v4592_v15 = vpop.f32.mrf.mxu2  ;;  %v1726_v25 = vadd.f32 %v4551_v41, %v1725_v56  ;;  %v3299_v28 = vmul.f32 -1.442695, %v4588_v12  ;;  %v1734_v47 = vor.u32 1.1754944e-38, %v1733_v38  ;;  %v2972_v1 = vld [vmem:[%s6292_s0 + $0x150] sm:$0xf] }
  0xef   :  { %v3714_v18 = vpop.eup %3713  ;;  %v4594_v19 = vadd.f32 1.0, %v3712_v35  ;;  %v903_v45 = vpop.f32.mrf.mxu0  ;;  %v3397_v35 = vld [vmem:[%s6292_s0 + $0x158] sm:$0xf0] }
  0xf0   :  { %v3481_v22 = vpack.c.bf16 %v2597_v11, %v2596_v8  ;;  %v1738_v33 = vmul.f32 %v3714_v18, %v4558_v46  ;;  %v1072_v7 = vpop.f32.mrf.mxu1  ;;  %v904_v42 = vadd.f32 %v4267_v58, %v903_v45  ;;  %v1730_v10 = vsel %vm4604_vm12, %v4551_v41, %v1726_v25  ;;  %v3396_v45 = vld [vmem:[%s6292_s0 + $0x154] sm:$0xf] }
  0xf1   :  { %3715 = vrcp.f32 %v4594_v19  ;;  %942 = vmatmul.bf16.gmra.mxu0 %v2961_v16  ;;  %vm1743_vm13 = vweird.f32 %v3714_v18  ;;  %v1735_v48 = vsel %vm1732_vm14, %v1734_v47, %v1730_v10  ;;  %v3004_v10 = vld [vmem:[%s6292_s0 + $0x188] sm:$0xf]  ;;  %v1761_v47 = vand.u32 2147483647, %v4594_v19 }
  0xf2   :  { %3629 = vst [vmem:[#allocation2 + $0x10] sm:$0xff] %v3481_v22   ;;  %v1739_v27 = vsub.f32 1.0, %v1738_v33  ;;  %1191 = vmatmul.bf16.gmra.mxu3 %v3157_v20  ;;  %1111 = vmatmul.bf16.gmra.mxu1 %v2965_v21  ;;  %3717 = vpow2.f32 %v3299_v28  ;;  %v1073_v40 = vadd.f32 %v1072_v7, %v904_v42  ;;  %vm1744_vm1 = vmor %vm1742_vm15, %vm1743_vm13  ;;  %v2598_v61 = vmul.f32 %v1735_v48, %v4471_v6  ;;  %v3444_v6 = vld [vmem:[%s6292_s0 + $0x2d4] sm:$0xf]  ;;  %v2974_v20 = vld [vmem:[%s6292_s0 + $0x15c] sm:$0xf0] }
  0xf3   :  { %v2973_v33 = vor.u32 %v3397_v35, %v2972_v1  ;;  %v2977_v38 = vor.u32 %v3396_v45, %v2974_v20  ;;  %vm1757_vm4 = vweird.f32 %v4594_v19  ;;  %vm1762_vm7 = vcmp.eq.f32.partialorder %v1761_v47, 8.507059e+37  ;;  %v3178_v20 = vld [vmem:[%s6292_s0 + $0x2f4] sm:$0xf0] }
  0xf4   :  { %v1740_v17 = vmul.f32 %v3714_v18, %v1739_v27  ;;  %v4628_v53 = vadd.f32 %v4520_v5, %v1073_v40  ;;  %v1763_v40 = vand.u32 2147483648, %v4594_v19 }
  0xf5   :  { %v4621_v50 = vpop.f32.mrf.mxu3 }
  0xf6   :  { %v1741_v49 = vadd.f32 %v3714_v18, %v1740_v17  ;;  %v4623_v41 = vpop.f32.mrf.mxu2  ;;  %v3300_v56 = vmul.f32 -1.442695, %v4628_v53  ;;  %v3404_v17 = vld [vmem:[%s6292_s0 + $0x190] sm:$0xf0] }
  0xf7   :  { %v4625_v51 = vpop.eup %3715  ;;  %v905_v54 = vpop.f32.mrf.mxu0 }
  0xf8   :  { %v1745_v39 = vsel %vm1744_vm1, %v3714_v18, %v1741_v49  ;;  %v1753_v23 = vmul.f32 %v4625_v51, %v4594_v19  ;;  %v906_v46 = vadd.f32 %v4267_v58, %v905_v54  ;;  %v1074_v60 = vpop.f32.mrf.mxu1  ;;  %v3718_v59 = vpop.eup %3717  ;;  %3719 = vpow2.f32 %v3300_v56 }
  0xf9   :  { %v1750_v55 = vsel %vm1747_vm2, %v1749_v52, %v1745_v39  ;;  %v4642_v8 = vadd.f32 1.0, %v3718_v59  ;;  %vm1758_vm3 = vweird.f32 %v4625_v51  ;;  %v3005_v39 = vor.u32 %v3404_v17, %v3004_v10 }
  0xfa   :  { %v2599_v0 = vmul.f32 %v1750_v55, %v4508_v57  ;;  %v1075_v5 = vadd.f32 %v1074_v60, %v906_v46  ;;  %3273 = vmatmul.msk.bf16.gmra.mxu2 %vm772_vm0, %v2993_v9  ;;  %v3166_v57 = vld [vmem:[%s6292_s0 + $0x2dc] sm:$0xf0]  ;;  %v1754_v16 = vsub.f32 1.0, %v1753_v23  ;;  %vm4690_vm5 = vmor %vm1757_vm4, %vm1758_vm3 }
  0xfb   :  { %3721 = vrcp.f32 %v4642_v8  ;;  %v3169_v7 = vor.u32 %v3444_v6, %v3166_v57  ;;  %v1776_v46 = vand.u32 2147483647, %v4642_v8  ;;  %v1778_v60 = vand.u32 2147483648, %v4642_v8  ;;  %v3400_v57 = vld [vmem:[%s6292_s0 + $0x170] sm:$0xf0] }
  0xfc   :  { %v3486_v11 = vpack.c.bf16 %v2599_v0, %v2598_v61  ;;  %v4652_v18 = vadd.f32 %v4549_v3, %v1075_v5  ;;  %v1755_v26 = vmul.f32 %v4625_v51, %v1754_v16  ;;  %v1764_v5 = vor.u32 1.1754944e-38, %v1763_v40 }
  0xfd   :  { %v4662_v22 = vpop.f32.mrf.mxu3  ;;  %vm1772_vm8 = vweird.f32 %v4642_v8  ;;  %v1779_v16 = vor.u32 1.1754944e-38, %v1778_v60  ;;  %vm1777_vm10 = vcmp.eq.f32.partialorder %v1776_v46, 8.507059e+37 }
  0xfe   :  { %3630 = vst [vmem:[#allocation2 + $0x18] sm:$0xff] %v3486_v11   ;;  %v3301_v21 = vmul.f32 -1.442695, %v4652_v18  ;;  %v4664_v25 = vpop.f32.mrf.mxu2  ;;  %v3720_v31 = vpop.eup %3719  ;;  %v1756_v43 = vadd.f32 %v4625_v51, %v1755_v26 }
  0xff   :  { %v908_v3 = vpop.f32.mrf.mxu0  ;;  %v4668_v32 = vadd.f32 1.0, %v3720_v31 }
 0x100   :  { %3723 = vpow2.f32 %v3301_v21  ;;  %v909_v27 = vadd.f32 %v4267_v58, %v908_v3  ;;  %v1077_v28 = vpop.f32.mrf.mxu1  ;;  %v1760_v19 = vsel %vm4690_vm5, %v4625_v51, %v1756_v43  ;;  %v2984_v51 = vld [vmem:[%s6292_s0 + $0x168] sm:$0xf]  ;;  %v3399_v3 = vld [vmem:[%s6292_s0 + $0x16c] sm:$0xf] }
 0x101   :  { %947 = vmatmul.bf16.gmra.mxu0 %v2973_v33  ;;  %v3722_v42 = vpop.eup %3721  ;;  %3725 = vrcp.f32 %v4668_v32  ;;  %v1765_v11 = vsel %vm1762_vm7, %v1764_v5, %v1760_v19  ;;  %vm1787_vm12 = vweird.f32 %v4668_v32  ;;  %v1791_v60 = vand.u32 2147483647, %v4668_v32  ;;  %v3016_v5 = vld [vmem:[%s6292_s0 + $0x1a0] sm:$0xf] }
 0x102   :  { %v1078_v63 = vadd.f32 %v1077_v28, %v909_v27  ;;  %1196 = vmatmul.bf16.gmra.mxu3 %v3169_v7  ;;  %1116 = vmatmul.bf16.gmra.mxu1 %v2977_v38  ;;  %v1768_v30 = vmul.f32 %v3722_v42, %v4642_v8  ;;  %vm1773_vm6 = vweird.f32 %v3722_v42  ;;  %v3447_v8 = vld [vmem:[%s6292_s0 + $0x2ec] sm:$0xf]  ;;  %v2986_v7 = vld [vmem:[%s6292_s0 + $0x174] sm:$0xf0]  ;;  %v2600_v27 = vmul.f32 %v1765_v11, %v4537_v24 }
 0x103   :  { %vm1774_vm9 = vmor %vm1772_vm8, %vm1773_vm6  ;;  %v2989_v47 = vor.u32 %v3399_v3, %v2986_v7  ;;  %vm1792_vm15 = vcmp.eq.f32.partialorder %v1791_v60, 8.507059e+37 }
 0x104   :  { %v4683_v49 = vadd.f32 %v4592_v15, %v1078_v63  ;;  %v1769_v52 = vsub.f32 1.0, %v1768_v30  ;;  %v3181_v30 = vor.u32 %v3447_v8, %v3178_v20 }
 0x105   :  { %v4686_v54 = vpop.f32.mrf.mxu3 }
 0x106   :  { %v3724_v48 = vpop.eup %3723  ;;  %v4688_v9 = vpop.f32.mrf.mxu2  ;;  %v3302_v15 = vmul.f32 -1.442695, %v4683_v49  ;;  %v1770_v59 = vmul.f32 %v3722_v42, %v1769_v52 }
 0x107   :  { %v4696_v55 = vadd.f32 1.0, %v3724_v48  ;;  %v910_v56 = vpop.f32.mrf.mxu0  ;;  %v4704_v1 = vpop.eup %3725 }
 0x108   :  { %v911_v61 = vadd.f32 %v4267_v58, %v910_v56  ;;  %v1079_v0 = vpop.f32.mrf.mxu1  ;;  %v1771_v35 = vadd.f32 %v3722_v42, %v1770_v59  ;;  %v1783_v45 = vmul.f32 %v4704_v1, %v4668_v32  ;;  %vm1788_vm11 = vweird.f32 %v4704_v1 }
 0x109   :  { %3727 = vrcp.f32 %v4696_v55  ;;  %vm4748_vm13 = vmor %vm1787_vm12, %vm1788_vm11  ;;  %v1806_v19 = vand.u32 2147483647, %v4696_v55  ;;  %v1808_v59 = vand.u32 2147483648, %v4696_v55  ;;  %vm1802_vm1 = vweird.f32 %v4696_v55 }
 0x10a   :  { %3729 = vpow2.f32 %v3302_v15  ;;  %v1080_v6 = vadd.f32 %v1079_v0, %v911_v61  ;;  %3274 = vmatmul.msk.bf16.gmra.mxu2 %vm772_vm0, %v3005_v39  ;;  %v1775_v21 = vsel %vm1774_vm9, %v3722_v42, %v1771_v35  ;;  %v1784_v26 = vsub.f32 1.0, %v1783_v45  ;;  %v3407_v35 = vld [vmem:[%s6292_s0 + $0x1a8] sm:$0xf0] }
 0x10b   :  { %v1780_v38 = vsel %vm1777_vm10, %v1779_v16, %v1775_v21  ;;  %v2985_v42 = vor.u32 %v3400_v57, %v2984_v51  ;;  %v1793_v39 = vand.u32 2147483648, %v4668_v32  ;;  %v1809_v8 = vor.u32 1.1754944e-38, %v1808_v59 }
 0x10c   :  { %v4723_v33 = vadd.f32 %v4623_v41, %v1080_v6  ;;  %v2601_v28 = vmul.f32 %v1780_v38, %v4588_v12  ;;  %v1785_v17 = vmul.f32 %v4704_v1, %v1784_v26  ;;  %v3017_v3 = vor.u32 %v3407_v35, %v3016_v5 }
 0x10d   :  { %v4734_v63 = vpop.f32.mrf.mxu3  ;;  %v1794_v6 = vor.u32 1.1754944e-38, %v1793_v39  ;;  %vm1807_vm3 = vcmp.eq.f32.partialorder %v1806_v19, 8.507059e+37 }
 0x10e   :  { %v3303_v31 = vmul.f32 -1.442695, %v4723_v33  ;;  %v4736_v41 = vpop.f32.mrf.mxu2  ;;  %v3491_v48 = vpack.c.bf16 %v2601_v28, %v2600_v27  ;;  %v1786_v52 = vadd.f32 %v4704_v1, %v1785_v17 }
 0x10f   :  { %v3728_v10 = vpop.eup %3727  ;;  %v913_v43 = vpop.f32.mrf.mxu0 }
 0x110   :  { %v3730_v40 = vpop.eup %3729  ;;  %v1798_v24 = vmul.f32 %v3728_v10, %v4696_v55  ;;  %3731 = vpow2.f32 %v3303_v31  ;;  %v1082_v12 = vpop.f32.mrf.mxu1  ;;  %v914_v46 = vadd.f32 %v4267_v58, %v913_v43  ;;  %3631 = vst [vmem:[#allocation2 + $0x20] sm:$0xff] %v3491_v48   ;;  %v1790_v61 = vsel %vm4748_vm13, %v4704_v1, %v1786_v52 }
 0x111   :  { %v4743_v23 = vadd.f32 1.0, %v3730_v40  ;;  %952 = vmatmul.bf16.gmra.mxu0 %v2985_v42  ;;  %vm1803_vm14 = vweird.f32 %v3728_v10  ;;  %v1795_v45 = vsel %vm1792_vm15, %v1794_v6, %v1790_v61  ;;  %v2998_v40 = vld [vmem:[%s6292_s0 + $0x18c] sm:$0xf0]  ;;  %v4817_v61 = vld [vmem:[%s6294_s2] ss:$0 sm:$0xff] }
 0x112   :  { %v1799_v15 = vsub.f32 1.0, %v1798_v24  ;;  %1201 = vmatmul.bf16.gmra.mxu3 %v3181_v30  ;;  %1121 = vmatmul.bf16.gmra.mxu1 %v2989_v47  ;;  %v1083_v32 = vadd.f32 %v1082_v12, %v914_v46  ;;  %vm1804_vm2 = vmor %vm1802_vm1, %vm1803_vm14  ;;  %v2602_v28 = vmul.f32 %v1795_v45, %v4628_v53  ;;  %v3124_v53 = vld [vmem:[%s6292_s0 + $0x278] sm:$0xf]  ;;  %v3402_v47 = vld [vmem:[%s6292_s0 + $0x184] sm:$0xf] }
 0x113   :  { %3733 = vrcp.f32 %v4743_v23  ;;  %v3001_v19 = vor.u32 %v3402_v47, %v2998_v40  ;;  %vm1817_vm5 = vweird.f32 %v4743_v23  ;;  %v1823_v35 = vand.u32 2147483648, %v4743_v23 }
 0x114   :  { %v1800_v0 = vmul.f32 %v3728_v10, %v1799_v15  ;;  %v4766_v11 = vadd.f32 %v4664_v25, %v1083_v32  ;;  %v1821_v6 = vand.u32 2147483647, %v4743_v23 }
 0x115   :  { %v4768_v1 = vpop.f32.mrf.mxu3 }
 0x116   :  { %v3732_v51 = vpop.eup %3731  ;;  %v1801_v57 = vadd.f32 %v3728_v10, %v1800_v0  ;;  %v4770_v16 = vpop.f32.mrf.mxu2  ;;  %v3304_v38 = vmul.f32 -1.442695, %v4766_v11  ;;  %vm1822_vm8 = vcmp.eq.f32.partialorder %v1821_v6, 8.507059e+37 }
 0x117   :  { %v4772_v20 = vadd.f32 1.0, %v3732_v51  ;;  %v915_v21 = vpop.f32.mrf.mxu0 }
 0x118   :  { %v1805_v7 = vsel %vm1804_vm2, %v3728_v10, %v1801_v57  ;;  %v916_v55 = vadd.f32 %v4267_v58, %v915_v21  ;;  %v1084_v26 = vpop.f32.mrf.mxu1  ;;  %v2996_v10 = vld [vmem:[%s6292_s0 + $0x180] sm:$0xf]  ;;  %v3403_v58 = vld [vmem:[%s6292_s0 + $0x188] sm:$0xf0] }
 0x119   :  { %v4776_v25 = vpop.eup %3733  ;;  %v1810_v27 = vsel %vm1807_vm3, %v1809_v8, %v1805_v7  ;;  %3735 = vrcp.f32 %v4772_v20  ;;  %v2997_v39 = vor.u32 %v3403_v58, %v2996_v10  ;;  %v3028_v8 = vld [vmem:[%s6292_s0 + $0x1b8] sm:$0xf]  ;;  %v1838_v7 = vand.u32 2147483648, %v4772_v20 }
 0x11a   :  { %v2603_v31 = vmul.f32 %v1810_v27, %v4652_v18  ;;  %v1813_v42 = vmul.f32 %v4776_v25, %v4743_v23  ;;  %3737 = vpow2.f32 %v3304_v38  ;;  %v1085_v17 = vadd.f32 %v1084_v26, %v916_v55  ;;  %3275 = vmatmul.msk.bf16.gmra.mxu2 %vm772_vm0, %v3017_v3  ;;  %v3434_v18 = vld [vmem:[%s6292_s0 + $0x280] sm:$0xf0] }
 0x11b   :  { %v3125_v56 = vor.u32 %v3434_v18, %v3124_v53  ;;  %vm1818_vm4 = vweird.f32 %v4776_v25  ;;  %v1836_v3 = vand.u32 2147483647, %v4772_v20  ;;  %v3410_v23 = vld [vmem:[%s6292_s0 + $0x1c0] sm:$0xf0]  ;;  %v999_v26 = vadd.f32 %v4817_v61, %v4298_v13 }
 0x11c   :  { %v3496_v43 = vpack.c.bf16 %v2603_v31, %v2602_v28  ;;  %v1814_v30 = vsub.f32 1.0, %v1813_v42  ;;  %v4803_v48 = vadd.f32 %v4688_v9, %v1085_v17  ;;  %vm4830_vm6 = vmor %vm1817_vm5, %vm1818_vm4  ;;  %v1824_v27 = vor.u32 1.1754944e-38, %v1823_v35 }
 0x11d   :  { %v4806_v12 = vpop.f32.mrf.mxu3  ;;  %vm1832_vm9 = vweird.f32 %v4772_v20  ;;  %v3029_v17 = vor.u32 %v3410_v23, %v3028_v8  ;;  %v1839_v53 = vor.u32 1.1754944e-38, %v1838_v7  ;;  %vm1837_vm11 = vcmp.eq.f32.partialorder %v1836_v3, 8.507059e+37 }
 0x11e   :  { %3632 = vst [vmem:[#allocation2 + $0x28] sm:$0xff] %v3496_v43   ;;  %v1815_v24 = vmul.f32 %v4776_v25, %v1814_v30  ;;  %v4808_v52 = vpop.f32.mrf.mxu2  ;;  %v3305_v60 = vmul.f32 -1.442695, %v4803_v48 }
 0x11f   :  { %v3736_v46 = vpop.eup %3735  ;;  %v918_v15 = vpop.f32.mrf.mxu0 }
 0x120   :  { %v1816_v59 = vadd.f32 %v4776_v25, %v1815_v24  ;;  %v1828_v9 = vmul.f32 %v3736_v46, %v4772_v20  ;;  %v919_v0 = vadd.f32 %v4817_v61, %v918_v15  ;;  %v1087_v32 = vpop.f32.mrf.mxu1  ;;  %v3738_v5 = vpop.eup %3737  ;;  %3739 = vpow2.f32 %v3305_v60 }
 0x121   :  { %v4823_v57 = vadd.f32 1.0, %v3738_v5  ;;  %957 = vmatmul.bf16.gmra.mxu0 %v2997_v39  ;;  %vm1833_vm7 = vweird.f32 %v3736_v46 }
 0x122   :  { %v1829_v51 = vsub.f32 1.0, %v1828_v9  ;;  %v1088_v45 = vadd.f32 %v1087_v32, %v919_v0  ;;  %3284 = vmatmul.msk.bf16.vlgmr.msra.gmra.mxu3 %vm772_vm0, %v3125_v56  ;;  %1126 = vmatmul.bf16.gmra.mxu1 %v3001_v19  ;;  %v1820_v38 = vsel %vm4830_vm6, %v4776_v25, %v1816_v59  ;;  %vm1834_vm10 = vmor %vm1832_vm9, %vm1833_vm7  ;;  %v3406_v19 = vld [vmem:[%s6292_s0 + $0x1a0] sm:$0xf0]  ;;  %v3405_v9 = vld [vmem:[%s6292_s0 + $0x19c] sm:$0xf]  ;;  %v1001_v32 = vadd.f32 %v4817_v61, %v4323_v29 }
 0x123   :  { %3741 = vrcp.f32 %v4823_v57  ;;  %v1825_v58 = vsel %vm1822_vm8, %v1824_v27, %v1820_v38  ;;  %v3010_v0 = vld [vmem:[%s6292_s0 + $0x1a4] sm:$0xf0]  ;;  %vm1847_vm13 = vweird.f32 %v4823_v57 }
 0x124   :  { %v1830_v55 = vmul.f32 %v3736_v46, %v1829_v51  ;;  %v4847_v28 = vadd.f32 %v4736_v41, %v1088_v45  ;;  %v2604_v39 = vmul.f32 %v1825_v58, %v4683_v49  ;;  %v3136_v49 = vld [vmem:[%s6292_s0 + $0x290] sm:$0xf] }
 0x125   :  { %v1167_v42 = vpop.f32.mrf.mxu3 }
 0x126   :  { %v1831_v31 = vadd.f32 %v3736_v46, %v1830_v55  ;;  %v4850_v10 = vpop.f32.mrf.mxu2  ;;  %v3740_v25 = vpop.eup %3739  ;;  %v3306_v18 = vmul.f32 -1.442695, %v4847_v28  ;;  %v4853_v43 = vadd.f32 %v1167_v42, %v999_v26  ;;  %v3013_v55 = vor.u32 %v3405_v9, %v3010_v0 }
 0x127   :  { %v920_v13 = vpop.f32.mrf.mxu0  ;;  %v4855_v41 = vadd.f32 1.0, %v3740_v25  ;;  %v1853_v25 = vand.u32 2147483648, %v4823_v57 }
 0x128   :  { %v1835_v30 = vsel %vm1834_vm10, %v3736_v46, %v1831_v31  ;;  %v921_v47 = vadd.f32 %v4817_v61, %v920_v13  ;;  %v1089_v20 = vpop.f32.mrf.mxu1  ;;  %3743 = vpow2.f32 %v3306_v18  ;;  %v3008_v46 = vld [vmem:[%s6292_s0 + $0x198] sm:$0xf]  ;;  %v3040_v18 = vld [vmem:[%s6292_s0 + $0x1d0] sm:$0xf]  ;;  %v3413_v13 = vld [vmem:[%s6292_s0 + $0x1d8] sm:$0xf0] }
 0x129   :  { %v1840_v40 = vsel %vm1837_vm11, %v1839_v53, %v1835_v30  ;;  %v4858_v24 = vpop.eup %3741  ;;  %3745 = vrcp.f32 %v4855_v41  ;;  %v3009_v45 = vor.u32 %v3406_v19, %v3008_v46  ;;  %v1004_v30 = vadd.f32 %v4817_v61, %v4340_v44 }
 0x12a   :  { %v2605_v60 = vmul.f32 %v1840_v40, %v4723_v33  ;;  %v1843_v15 = vmul.f32 %v4858_v24, %v4823_v57  ;;  %v1090_v56 = vadd.f32 %v1089_v20, %v921_v47  ;;  %3276 = vmatmul.msk.bf16.gmra.mxu2 %vm772_vm0, %v3029_v17  ;;  %v3437_v33 = vld [vmem:[%s6292_s0 + $0x298] sm:$0xf0]  ;;  %vm1848_vm12 = vweird.f32 %v4858_v24 }
 0x12b   :  { %v3137_v8 = vor.u32 %v3437_v33, %v3136_v49  ;;  %v1851_v17 = vand.u32 2147483647, %v4823_v57  ;;  %vm4916_vm14 = vmor %vm1847_vm13, %vm1848_vm12  ;;  %v1866_v47 = vand.u32 2147483647, %v4855_v41  ;;  %v1868_v20 = vand.u32 2147483648, %v4855_v41 }
 0x12c   :  { %v3501_v59 = vpack.c.bf16 %v2605_v60, %v2604_v39  ;;  %v1844_v5 = vsub.f32 1.0, %v1843_v15  ;;  %v4887_v35 = vadd.f32 %v4770_v16, %v1090_v56  ;;  %v1854_v44 = vor.u32 1.1754944e-38, %v1853_v25 }
 0x12d   :  { %v1169_v6 = vpop.f32.mrf.mxu3  ;;  %vm1852_vm1 = vcmp.eq.f32.partialorder %v1851_v17, 8.507059e+37  ;;  %v3041_v56 = vor.u32 %v3413_v13, %v3040_v18  ;;  %vm1862_vm2 = vweird.f32 %v4855_v41  ;;  %vm1867_vm4 = vcmp.eq.f32.partialorder %v1866_v47, 8.507059e+37 }
 0x12e   :  { %3633 = vst [vmem:[#allocation2 + $0x30] sm:$0xff] %v3501_v59   ;;  %v4889_v51 = vpop.f32.mrf.mxu2  ;;  %v3744_v21 = vpop.eup %3743  ;;  %v1845_v3 = vmul.f32 %v4858_v24, %v1844_v5  ;;  %v3307_v7 = vmul.f32 -1.442695, %v4887_v35  ;;  %v4893_v23 = vadd.f32 %v1169_v6, %v1001_v32 }
 0x12f   :  { %v923_v38 = vpop.f32.mrf.mxu0  ;;  %v3746_v29 = vpop.eup %3745  ;;  %v4895_v26 = vadd.f32 1.0, %v3744_v21  ;;  %v3020_v21 = vld [vmem:[%s6292_s0 + $0x1b0] sm:$0xf] }
 0x130   :  { %v924_v16 = vadd.f32 %v4817_v61, %v923_v38  ;;  %v1092_v27 = vpop.f32.mrf.mxu1  ;;  %v1846_v31 = vadd.f32 %v4858_v24, %v1845_v3  ;;  %v1858_v42 = vmul.f32 %v3746_v29, %v4855_v41  ;;  %3747 = vpow2.f32 %v3307_v7 }
 0x131   :  { %3749 = vrcp.f32 %v4895_v26  ;;  %962 = vmatmul.bf16.gmra.mxu0 %v3009_v45  ;;  %vm1863_vm15 = vweird.f32 %v3746_v29  ;;  %vm1877_vm6 = vweird.f32 %v4895_v26 }
 0x132   :  { %v1859_v58 = vsub.f32 1.0, %v1858_v42  ;;  %v1093_v53 = vadd.f32 %v1092_v27, %v924_v16  ;;  %3285 = vmatmul.msk.bf16.gmra.mxu3 %vm772_vm0, %v3137_v8  ;;  %1131 = vmatmul.bf16.gmra.mxu1 %v3013_v55  ;;  %v1850_v40 = vsel %vm4916_vm14, %v4858_v24, %v1846_v31  ;;  %vm1864_vm3 = vmor %vm1862_vm2, %vm1863_vm15  ;;  %v3148_v16 = vld [vmem:[%s6292_s0 + $0x2a8] sm:$0xf]  ;;  %v3440_v27 = vld [vmem:[%s6292_s0 + $0x2b0] sm:$0xf0]  ;;  %v1006_v31 = vadd.f32 %v4817_v61, %v4375_v2 }
 0x133   :  { %v1855_v0 = vsel %vm1852_vm1, %v1854_v44, %v1850_v40 }
 0x134   :  { %v1860_v39 = vmul.f32 %v3746_v29, %v1859_v58  ;;  %v4926_v60 = vadd.f32 %v4808_v52, %v1093_v53  ;;  %v1869_v52 = vor.u32 1.1754944e-38, %v1868_v20  ;;  %v2606_v3 = vmul.f32 %v1855_v0, %v4766_v11  ;;  %v3408_v11 = vld [vmem:[%s6292_s0 + $0x1b4] sm:$0xf]  ;;  %v3052_v0 = vld [vmem:[%s6292_s0 + $0x1e8] sm:$0xf] }
 0x135   :  { %v1172_v46 = vpop.f32.mrf.mxu3  ;;  %v3149_v20 = vor.u32 %v3440_v27, %v3148_v16 }
 0x136   :  { %v4928_v15 = vpop.f32.mrf.mxu2  ;;  %v3748_v19 = vpop.eup %3747  ;;  %v1861_v49 = vadd.f32 %v3746_v29, %v1860_v39  ;;  %v3308_v33 = vmul.f32 -1.442695, %v4926_v60  ;;  %v4932_v59 = vadd.f32 %v1172_v46, %v1004_v30 }
 0x137   :  { %v925_v24 = vpop.f32.mrf.mxu0  ;;  %v4934_v9 = vpop.eup %3749  ;;  %v4937_v32 = vadd.f32 1.0, %v3748_v19  ;;  %v1881_v19 = vand.u32 2147483647, %v4895_v26 }
 0x138   :  { %v926_v5 = vadd.f32 %v4817_v61, %v925_v24  ;;  %v1094_v6 = vpop.f32.mrf.mxu1  ;;  %v1865_v45 = vsel %vm1864_vm3, %v3746_v29, %v1861_v49  ;;  %v1873_v41 = vmul.f32 %v4934_v9, %v4895_v26  ;;  %3751 = vpow2.f32 %v3308_v33  ;;  %v3409_v29 = vld [vmem:[%s6292_s0 + $0x1b8] sm:$0xf0] }
 0x139   :  { %v1870_v8 = vsel %vm1867_vm4, %v1869_v52, %v1865_v45  ;;  %3753 = vrcp.f32 %v4937_v32  ;;  %v3021_v18 = vor.u32 %v3409_v29, %v3020_v21  ;;  %vm1878_vm5 = vweird.f32 %v4934_v9  ;;  %v3416_v52 = vld [vmem:[%s6292_s0 + $0x1f0] sm:$0xf0] }
 0x13a   :  { %v2607_v7 = vmul.f32 %v1870_v8, %v4803_v48  ;;  %v1874_v38 = vsub.f32 1.0, %v1873_v41  ;;  %v1095_v55 = vadd.f32 %v1094_v6, %v926_v5  ;;  %3277 = vmatmul.msk.bf16.gmra.mxu2 %vm772_vm0, %v3041_v56  ;;  %v3022_v48 = vld [vmem:[%s6292_s0 + $0x1bc] sm:$0xf0]  ;;  %v1883_v49 = vand.u32 2147483648, %v4895_v26  ;;  %vm4996_vm7 = vmor %vm1877_vm6, %vm1878_vm5 }
 0x13b   :  { %v3025_v40 = vor.u32 %v3408_v11, %v3022_v48  ;;  %v1009_v5 = vadd.f32 %v4817_v61, %v4408_v34  ;;  %v1896_v6 = vand.u32 2147483647, %v4937_v32  ;;  %v1898_v45 = vand.u32 2147483648, %v4937_v32 }
 0x13c   :  { %v3506_v42 = vpack.c.bf16 %v2607_v7, %v2606_v3  ;;  %v1875_v17 = vmul.f32 %v4934_v9, %v1874_v38  ;;  %v4968_v25 = vadd.f32 %v4850_v10, %v1095_v55  ;;  %vm1882_vm9 = vcmp.eq.f32.partialorder %v1881_v19, 8.507059e+37 }
 0x13d   :  { %v1174_v58 = vpop.f32.mrf.mxu3  ;;  %v1884_v34 = vor.u32 1.1754944e-38, %v1883_v49  ;;  %v3053_v38 = vor.u32 %v3416_v52, %v3052_v0  ;;  %vm1892_vm10 = vweird.f32 %v4937_v32  ;;  %vm1897_vm12 = vcmp.eq.f32.partialorder %v1896_v6, 8.507059e+37 }
 0x13e   :  { %v4970_v53 = vpop.f32.mrf.mxu2  ;;  %v3752_v13 = vpop.eup %3751  ;;  %3634 = vst [vmem:[#allocation2 + $0x38] sm:$0xff] %v3506_v42   ;;  %v3309_v30 = vmul.f32 -1.442695, %v4968_v25  ;;  %v4973_v57 = vadd.f32 %v1174_v58, %v1006_v31  ;;  %v1876_v46 = vadd.f32 %v4934_v9, %v1875_v17 }
 0x13f   :  { %v928_v47 = vpop.f32.mrf.mxu0  ;;  %v3754_v2 = vpop.eup %3753  ;;  %v4975_v39 = vadd.f32 1.0, %v3752_v13  ;;  %v3032_v13 = vld [vmem:[%s6292_s0 + $0x1c8] sm:$0xf] }
 0x140   :  { %v929_v44 = vadd.f32 %v4817_v61, %v928_v47  ;;  %v1097_v10 = vpop.f32.mrf.mxu1  ;;  %v1888_v56 = vmul.f32 %v3754_v2, %v4937_v32  ;;  %3755 = vpow2.f32 %v3309_v30  ;;  %v1880_v41 = vsel %vm4996_vm7, %v4934_v9, %v1876_v46 }
 0x141   :  { %3757 = vrcp.f32 %v4975_v39  ;;  %967 = vmatmul.bf16.gmra.mxu0 %v3021_v18  ;;  %vm1893_vm8 = vweird.f32 %v3754_v2  ;;  %v1885_v48 = vsel %vm1882_vm9, %v1884_v34, %v1880_v41  ;;  %v1011_v46 = vadd.f32 %v4817_v61, %v4443_v62 }
 0x142   :  { %v1889_v33 = vsub.f32 1.0, %v1888_v56  ;;  %v1098_v24 = vadd.f32 %v1097_v10, %v929_v44  ;;  %3286 = vmatmul.msk.bf16.gmra.mxu3 %vm772_vm0, %v3149_v20  ;;  %1136 = vmatmul.bf16.gmra.mxu1 %v3025_v40  ;;  %vm1894_vm11 = vmor %vm1892_vm10, %vm1893_vm8  ;;  %v2608_v30 = vmul.f32 %v1885_v48, %v4847_v28  ;;  %v3160_v44 = vld [vmem:[%s6292_s0 + $0x2c0] sm:$0xf]  ;;  %v3443_v10 = vld [vmem:[%s6292_s0 + $0x2c8] sm:$0xf0]  ;;  %vm1907_vm14 = vweird.f32 %v4975_v39 }
 0x143   :  { %v3411_v28 = vld [vmem:[%s6292_s0 + $0x1cc] sm:$0xf]  ;;  %v3064_v48 = vld [vmem:[%s6292_s0 + $0x200] sm:$0xf] }
 0x144   :  { %v1890_v8 = vmul.f32 %v3754_v2, %v1889_v33  ;;  %v5006_v21 = vadd.f32 %v4889_v51, %v1098_v24  ;;  %v1899_v51 = vor.u32 1.1754944e-38, %v1898_v45  ;;  %v3161_v45 = vor.u32 %v3443_v10, %v3160_v44 }
 0x145   :  { %v1177_v3 = vpop.f32.mrf.mxu3 }
 0x146   :  { %v5008_v7 = vpop.f32.mrf.mxu2  ;;  %v3756_v55 = vpop.eup %3755  ;;  %v1891_v29 = vadd.f32 %v3754_v2, %v1890_v8  ;;  %v3310_v16 = vmul.f32 -1.442695, %v5006_v21  ;;  %v5012_v27 = vadd.f32 %v1177_v3, %v1009_v5 }
 0x147   :  { %v930_v9 = vpop.f32.mrf.mxu0  ;;  %v5014_v11 = vpop.eup %3757  ;;  %v5017_v31 = vadd.f32 1.0, %v3756_v55  ;;  %v1911_v55 = vand.u32 2147483647, %v4975_v39 }
 0x148   :  { %v931_v42 = vadd.f32 %v4817_v61, %v930_v9  ;;  %v1099_v17 = vpop.f32.mrf.mxu1  ;;  %v1895_v58 = vsel %vm1894_vm11, %v3754_v2, %v1891_v29  ;;  %v1903_v32 = vmul.f32 %v5014_v11, %v4975_v39  ;;  %3759 = vpow2.f32 %v3310_v16  ;;  %v3412_v2 = vld [vmem:[%s6292_s0 + $0x1d0] sm:$0xf0] }
 0x149   :  { %v1900_v18 = vsel %vm1897_vm12, %v1899_v51, %v1895_v58  ;;  %3761 = vrcp.f32 %v5017_v31  ;;  %v3033_v0 = vor.u32 %v3412_v2, %v3032_v13  ;;  %vm1908_vm13 = vweird.f32 %v5014_v11  ;;  %v3419_v51 = vld [vmem:[%s6292_s0 + $0x208] sm:$0xf0] }
 0x14a   :  { %v2609_v47 = vmul.f32 %v1900_v18, %v4887_v35  ;;  %v1904_v20 = vsub.f32 1.0, %v1903_v32  ;;  %v1100_v40 = vadd.f32 %v1099_v17, %v931_v42  ;;  %3278 = vmatmul.msk.bf16.gmra.mxu2 %vm772_vm0, %v3053_v38  ;;  %v3034_v35 = vld [vmem:[%s6292_s0 + $0x1d4] sm:$0xf0]  ;;  %v1913_v29 = vand.u32 2147483648, %v4975_v39  ;;  %vm5076_vm15 = vmor %vm1907_vm14, %vm1908_vm13 }
 0x14b   :  { %v3037_v41 = vor.u32 %v3411_v28, %v3034_v35  ;;  %v1014_v42 = vadd.f32 %v4817_v61, %v4481_v37  ;;  %v1926_v17 = vand.u32 2147483647, %v5017_v31  ;;  %v1928_v58 = vand.u32 2147483648, %v5017_v31 }
 0x14c   :  { %v3511_v56 = vpack.c.bf16 %v2609_v47, %v2608_v30  ;;  %v1905_v19 = vmul.f32 %v5014_v11, %v1904_v20  ;;  %v5048_v49 = vadd.f32 %v4928_v15, %v1100_v40  ;;  %vm1912_vm2 = vcmp.eq.f32.partialorder %v1911_v55, 8.507059e+37 }
 0x14d   :  { %v1179_v33 = vpop.f32.mrf.mxu3  ;;  %v1914_v37 = vor.u32 1.1754944e-38, %v1913_v29  ;;  %v3065_v20 = vor.u32 %v3419_v51, %v3064_v48  ;;  %vm1922_vm3 = vweird.f32 %v5017_v31  ;;  %vm1927_vm5 = vcmp.eq.f32.partialorder %v1926_v17, 8.507059e+37 }
 0x14e   :  { %v5050_v24 = vpop.f32.mrf.mxu2  ;;  %v3760_v52 = vpop.eup %3759  ;;  %3635 = vst [vmem:[#allocation2 + $0x40] sm:$0xff] %v3511_v56   ;;  %v3311_v5 = vmul.f32 -1.442695, %v5048_v49  ;;  %v5053_v26 = vadd.f32 %v1179_v33, %v1011_v46  ;;  %v1906_v3 = vadd.f32 %v5014_v11, %v1905_v19 }
 0x14f   :  { %v933_v6 = vpop.f32.mrf.mxu0  ;;  %v3762_v62 = vpop.eup %3761  ;;  %v5055_v8 = vadd.f32 1.0, %v3760_v52  ;;  %v3044_v52 = vld [vmem:[%s6292_s0 + $0x1e0] sm:$0xf] }
 0x150   :  { %v934_v34 = vadd.f32 %v4817_v61, %v933_v6  ;;  %v1102_v15 = vpop.f32.mrf.mxu1  ;;  %v1918_v38 = vmul.f32 %v3762_v62, %v5017_v31  ;;  %3763 = vpow2.f32 %v3311_v5  ;;  %v1910_v32 = vsel %vm5076_vm15, %v5014_v11, %v1906_v3 }
 0x151   :  { %3765 = vrcp.f32 %v5055_v8  ;;  %972 = vmatmul.bf16.gmra.mxu0 %v3033_v0  ;;  %vm1923_vm1 = vweird.f32 %v3762_v62  ;;  %v1915_v35 = vsel %vm1912_vm2, %v1914_v37, %v1910_v32  ;;  %v1016_v3 = vadd.f32 %v4817_v61, %v4518_v4 }
 0x152   :  { %v1919_v16 = vsub.f32 1.0, %v1918_v38  ;;  %v1103_v9 = vadd.f32 %v1102_v15, %v934_v34  ;;  %3287 = vmatmul.msk.bf16.gmra.mxu3 %vm772_vm0, %v3161_v45  ;;  %1141 = vmatmul.bf16.gmra.mxu1 %v3037_v41  ;;  %vm1924_vm4 = vmor %vm1922_vm3, %vm1923_vm1  ;;  %v2610_v5 = vmul.f32 %v1915_v35, %v4926_v60  ;;  %v3172_v34 = vld [vmem:[%s6292_s0 + $0x2d8] sm:$0xf]  ;;  %v3446_v15 = vld [vmem:[%s6292_s0 + $0x2e0] sm:$0xf0]  ;;  %vm1937_vm7 = vweird.f32 %v5055_v8 }
 0x153   :  { %v3414_v60 = vld [vmem:[%s6292_s0 + $0x1e4] sm:$0xf]  ;;  %v3076_v35 = vld [vmem:[%s6292_s0 + $0x218] sm:$0xf] }
 0x154   :  { %v1920_v18 = vmul.f32 %v3762_v62, %v1919_v16  ;;  %v5086_v13 = vadd.f32 %v4970_v53, %v1103_v9  ;;  %v1929_v53 = vor.u32 1.1754944e-38, %v1928_v58  ;;  %v3173_v58 = vor.u32 %v3446_v15, %v3172_v34 }
 0x155   :  { %v1182_v30 = vpop.f32.mrf.mxu3 }
 0x156   :  { %v5088_v47 = vpop.f32.mrf.mxu2  ;;  %v3764_v40 = vpop.eup %3763  ;;  %v1921_v2 = vadd.f32 %v3762_v62, %v1920_v18  ;;  %v3312_v44 = vmul.f32 -1.442695, %v5086_v13  ;;  %v5092_v10 = vadd.f32 %v1182_v30, %v1014_v42 }
 0x157   :  { %v935_v11 = vpop.f32.mrf.mxu0  ;;  %v5094_v28 = vpop.eup %3765  ;;  %v5097_v46 = vadd.f32 1.0, %v3764_v40  ;;  %v1941_v40 = vand.u32 2147483647, %v5055_v8 }
 0x158   :  { %v936_v56 = vadd.f32 %v4817_v61, %v935_v11  ;;  %v1104_v19 = vpop.f32.mrf.mxu1  ;;  %v1925_v33 = vsel %vm1924_vm4, %v3762_v62, %v1921_v2  ;;  %v1933_v31 = vmul.f32 %v5094_v28, %v5055_v8  ;;  %3767 = vpow2.f32 %v3312_v44  ;;  %v3415_v62 = vld [vmem:[%s6292_s0 + $0x1e8] sm:$0xf0] }
 0x159   :  { %v1930_v0 = vsel %vm1927_vm5, %v1929_v53, %v1925_v33  ;;  %3769 = vrcp.f32 %v5097_v46  ;;  %v3045_v48 = vor.u32 %v3415_v62, %v3044_v52  ;;  %vm1938_vm6 = vweird.f32 %v5094_v28  ;;  %v3422_v53 = vld [vmem:[%s6292_s0 + $0x220] sm:$0xf0] }
 0x15a   :  { %v2611_v6 = vmul.f32 %v1930_v0, %v4968_v25  ;;  %v1934_v45 = vsub.f32 1.0, %v1933_v31  ;;  %v1105_v41 = vadd.f32 %v1104_v19, %v936_v56  ;;  %3279 = vmatmul.msk.bf16.gmra.mxu2 %vm772_vm0, %v3065_v20  ;;  %v3046_v25 = vld [vmem:[%s6292_s0 + $0x1ec] sm:$0xf0]  ;;  %v1943_v2 = vand.u32 2147483648, %v5055_v8  ;;  %vm5156_vm8 = vmor %vm1937_vm7, %vm1938_vm6 }
 0x15b   :  { %v3049_v32 = vor.u32 %v3414_v60, %v3046_v25  ;;  %v1019_v56 = vadd.f32 %v4817_v61, %v4547_v36  ;;  %v1956_v19 = vand.u32 2147483647, %v5097_v46  ;;  %v1958_v33 = vand.u32 2147483648, %v5097_v46 }
 0x15c   :  { %v3516_v38 = vpack.c.bf16 %v2611_v6, %v2610_v5  ;;  %v1935_v55 = vmul.f32 %v5094_v28, %v1934_v45  ;;  %v5128_v29 = vadd.f32 %v5008_v7, %v1105_v41  ;;  %vm1942_vm10 = vcmp.eq.f32.partialorder %v1941_v40, 8.507059e+37 }
 0x15d   :  { %v1184_v16 = vpop.f32.mrf.mxu3  ;;  %v1944_v36 = vor.u32 1.1754944e-38, %v1943_v2  ;;  %v3077_v45 = vor.u32 %v3422_v53, %v3076_v35  ;;  %vm1952_vm11 = vweird.f32 %v5097_v46  ;;  %vm1957_vm13 = vcmp.eq.f32.partialorder %v1956_v19, 8.507059e+37 }
 0x15e   :  { %v5130_v9 = vpop.f32.mrf.mxu2  ;;  %v3768_v51 = vpop.eup %3767  ;;  %3636 = vst [vmem:[#allocation2 + $0x48] sm:$0xff] %v3516_v38   ;;  %v3313_v42 = vmul.f32 -1.442695, %v5128_v29  ;;  %v5133_v39 = vadd.f32 %v1184_v16, %v1016_v3  ;;  %v1936_v30 = vadd.f32 %v5094_v28, %v1935_v55 }
 0x15f   :  { %v938_v17 = vpop.f32.mrf.mxu0  ;;  %v3770_v4 = vpop.eup %3769  ;;  %v5135_v18 = vadd.f32 1.0, %v3768_v51  ;;  %v3056_v51 = vld [vmem:[%s6292_s0 + $0x1f8] sm:$0xf] }
 0x160   :  { %v939_v37 = vadd.f32 %v4817_v61, %v938_v17  ;;  %v1107_v7 = vpop.f32.mrf.mxu1  ;;  %v1948_v20 = vmul.f32 %v3770_v4, %v5097_v46  ;;  %3771 = vpow2.f32 %v3313_v42  ;;  %v1940_v31 = vsel %vm5156_vm8, %v5094_v28, %v1936_v30 }
 0x161   :  { %3773 = vrcp.f32 %v5135_v18  ;;  %977 = vmatmul.bf16.gmra.mxu0 %v3045_v48  ;;  %vm1953_vm9 = vweird.f32 %v3770_v4  ;;  %v1945_v25 = vsel %vm1942_vm10, %v1944_v36, %v1940_v31  ;;  %v1021_v30 = vadd.f32 %v4817_v61, %v4590_v14 }
 0x162   :  { %v1949_v44 = vsub.f32 1.0, %v1948_v20  ;;  %v1108_v11 = vadd.f32 %v1107_v7, %v939_v37  ;;  %3288 = vmatmul.msk.bf16.gmra.mxu3 %vm772_vm0, %v3173_v58  ;;  %1146 = vmatmul.bf16.gmra.mxu1 %v3049_v32  ;;  %vm1954_vm12 = vmor %vm1952_vm11, %vm1953_vm9  ;;  %v2612_v42 = vmul.f32 %v1945_v25, %v5006_v21  ;;  %v3184_v37 = vld [vmem:[%s6292_s0 + $0x2f0] sm:$0xf]  ;;  %v3449_v7 = vld [vmem:[%s6292_s0 + $0x2f8] sm:$0xf0]  ;;  %vm1967_vm15 = vweird.f32 %v5135_v18 }
 0x163   :  { %v3417_v21 = vld [vmem:[%s6292_s0 + $0x1fc] sm:$0xf]  ;;  %v3088_v25 = vld [vmem:[%s6292_s0 + $0x230] sm:$0xf] }
 0x164   :  { %v1950_v0 = vmul.f32 %v3770_v4, %v1949_v44  ;;  %v5166_v52 = vadd.f32 %v5050_v24, %v1108_v11  ;;  %v1959_v24 = vor.u32 1.1754944e-38, %v1958_v33  ;;  %v3185_v33 = vor.u32 %v3449_v7, %v3184_v37 }
 0x165   :  { %v1187_v5 = vpop.f32.mrf.mxu3 }
 0x166   :  { %v5168_v6 = vpop.f32.mrf.mxu2  ;;  %v3772_v41 = vpop.eup %3771  ;;  %v1951_v62 = vadd.f32 %v3770_v4, %v1950_v0  ;;  %v3314_v34 = vmul.f32 -1.442695, %v5166_v52  ;;  %v5172_v15 = vadd.f32 %v1187_v5, %v1019_v56 }
 0x167   :  { %v940_v28 = vpop.f32.mrf.mxu0  ;;  %v5174_v60 = vpop.eup %3773  ;;  %v5177_v3 = vadd.f32 1.0, %v3772_v41  ;;  %v1971_v41 = vand.u32 2147483647, %v5135_v18 }
 0x168   :  { %v941_v38 = vadd.f32 %v4817_v61, %v940_v28  ;;  %v1109_v55 = vpop.f32.mrf.mxu1  ;;  %v1955_v16 = vsel %vm1954_vm12, %v3770_v4, %v1951_v62  ;;  %v1963_v46 = vmul.f32 %v5174_v60, %v5135_v18  ;;  %3775 = vpow2.f32 %v3314_v34  ;;  %v3418_v4 = vld [vmem:[%s6292_s0 + $0x200] sm:$0xf0] }
 0x169   :  { %v1960_v48 = vsel %vm1957_vm13, %v1959_v24, %v1955_v16  ;;  %3777 = vrcp.f32 %v5177_v3  ;;  %v3057_v35 = vor.u32 %v3418_v4, %v3056_v51  ;;  %vm1968_vm14 = vweird.f32 %v5174_v60  ;;  %v3425_v24 = vld [vmem:[%s6292_s0 + $0x238] sm:$0xf0] }
 0x16a   :  { %v2613_v17 = vmul.f32 %v1960_v48, %v5048_v49  ;;  %v1964_v58 = vsub.f32 1.0, %v1963_v46  ;;  %v1110_v32 = vadd.f32 %v1109_v55, %v941_v38  ;;  %3280 = vmatmul.msk.bf16.gmra.mxu2 %vm772_vm0, %v3077_v45  ;;  %v3058_v49 = vld [vmem:[%s6292_s0 + $0x204] sm:$0xf0]  ;;  %v1973_v62 = vand.u32 2147483648, %v5135_v18  ;;  %vm5236_vm1 = vmor %vm1967_vm15, %vm1968_vm14 }
 0x16b   :  { %v3061_v31 = vor.u32 %v3417_v21, %v3058_v49  ;;  %v1024_v38 = vadd.f32 %v4817_v61, %v4621_v50  ;;  %v1986_v55 = vand.u32 2147483647, %v5177_v3  ;;  %v1988_v16 = vand.u32 2147483648, %v5177_v3 }
 0x16c   :  { %v3521_v20 = vpack.c.bf16 %v2613_v17, %v2612_v42  ;;  %v1965_v40 = vmul.f32 %v5174_v60, %v1964_v58  ;;  %v5208_v2 = vadd.f32 %v5088_v47, %v1110_v32  ;;  %vm1972_vm3 = vcmp.eq.f32.partialorder %v1971_v41, 8.507059e+37 }
 0x16d   :  { %v1189_v44 = vpop.f32.mrf.mxu3  ;;  %v1974_v50 = vor.u32 1.1754944e-38, %v1973_v62  ;;  %v3089_v58 = vor.u32 %v3425_v24, %v3088_v25  ;;  %vm1982_vm4 = vweird.f32 %v5177_v3  ;;  %vm1987_vm6 = vcmp.eq.f32.partialorder %v1986_v55, 8.507059e+37 }
 0x16e   :  { %v5210_v11 = vpop.f32.mrf.mxu2  ;;  %v3776_v53 = vpop.eup %3775  ;;  %3637 = vst [vmem:[#allocation2 + $0x50] sm:$0xff] %v3521_v20   ;;  %v3315_v56 = vmul.f32 -1.442695, %v5208_v2  ;;  %v5213_v8 = vadd.f32 %v1189_v44, %v1021_v30  ;;  %v1966_v5 = vadd.f32 %v5174_v60, %v1965_v40 }
 0x16f   :  { %v943_v19 = vpop.f32.mrf.mxu0  ;;  %v3778_v14 = vpop.eup %3777  ;;  %v5215_v0 = vadd.f32 1.0, %v3776_v53 }
 0x170   :  { %v944_v36 = vadd.f32 %v4817_v61, %v943_v19  ;;  %v1112_v47 = vpop.f32.mrf.mxu1  ;;  %v1978_v45 = vmul.f32 %v3778_v14, %v5177_v3  ;;  %3779 = vpow2.f32 %v3315_v56  ;;  %v1970_v46 = vsel %vm5236_vm1, %v5174_v60, %v1966_v5 }
 0x171   :  { %3781 = vrcp.f32 %v5215_v0  ;;  %982 = vmatmul.bf16.gmra.mxu0 %v3057_v35  ;;  %vm1983_vm2 = vweird.f32 %v3778_v14  ;;  %v1975_v49 = vsel %vm1972_vm3, %v1974_v50, %v1970_v46  ;;  %v2001_v50 = vand.u32 2147483647, %v5215_v0 }
 0x172   :  { %v1979_v34 = vsub.f32 1.0, %v1978_v45  ;;  %v1113_v28 = vadd.f32 %v1112_v47, %v944_v36  ;;  %3289 = vmatmul.msk.bf16.gmra.mxu3 %vm772_vm0, %v3185_v33  ;;  %1151 = vmatmul.bf16.gmra.mxu1 %v3061_v31  ;;  %vm1984_vm5 = vmor %vm1982_vm4, %vm1983_vm2  ;;  %v2614_v53 = vmul.f32 %v1975_v49, %v5086_v13  ;;  %v3068_v31 = vld [vmem:[%s6292_s0 + $0x210] sm:$0xf]  ;;  %v3420_v36 = vld [vmem:[%s6292_s0 + $0x214] sm:$0xf]  ;;  %vm1997_vm8 = vweird.f32 %v5215_v0 }
 0x173   :  { %v3070_v13 = vld [vmem:[%s6292_s0 + $0x21c] sm:$0xf0]  ;;  %vm2002_vm11 = vcmp.eq.f32.partialorder %v2001_v50, 8.507059e+37 }
 0x174   :  { %v1980_v48 = vmul.f32 %v3778_v14, %v1979_v34  ;;  %v5246_v51 = vadd.f32 %v5130_v9, %v1113_v28  ;;  %v1989_v9 = vor.u32 1.1754944e-38, %v1988_v16  ;;  %v3073_v18 = vor.u32 %v3420_v36, %v3070_v13 }
 0x175   :  { %v1192_v42 = vpop.f32.mrf.mxu3 }
 0x176   :  { %v5248_v17 = vpop.f32.mrf.mxu2  ;;  %v3780_v32 = vpop.eup %3779  ;;  %v1981_v4 = vadd.f32 %v3778_v14, %v1980_v48  ;;  %v3316_v37 = vmul.f32 -1.442695, %v5246_v51  ;;  %v5252_v7 = vadd.f32 %v1192_v42, %v1024_v38  ;;  %v2003_v42 = vand.u32 2147483648, %v5215_v0 }
 0x177   :  { %v945_v60 = vpop.f32.mrf.mxu0  ;;  %v5254_v21 = vpop.eup %3781  ;;  %v5257_v30 = vadd.f32 1.0, %v3780_v32 }
 0x178   :  { %v946_v20 = vadd.f32 %v4817_v61, %v945_v60  ;;  %v1114_v40 = vpop.f32.mrf.mxu1  ;;  %v1985_v44 = vsel %vm1984_vm5, %v3778_v14, %v1981_v4  ;;  %v1993_v3 = vmul.f32 %v5254_v21, %v5215_v0  ;;  %3783 = vpow2.f32 %v3316_v37  ;;  %v3421_v14 = vld [vmem:[%s6292_s0 + $0x218] sm:$0xf0]  ;;  %v3100_v4 = vld [vmem:[%s6292_s0 + $0x248] sm:$0xf]  ;;  %v3428_v37 = vld [vmem:[%s6292_s0 + $0x250] sm:$0xf0] }
 0x179   :  { %v1990_v35 = vsel %vm1987_vm6, %v1989_v9, %v1985_v44  ;;  %3785 = vrcp.f32 %v5257_v30  ;;  %v3069_v34 = vor.u32 %v3421_v14, %v3068_v31  ;;  %vm1998_vm7 = vweird.f32 %v5254_v21 }
 0x17a   :  { %v2615_v56 = vmul.f32 %v1990_v35, %v5128_v29  ;;  %v1994_v19 = vsub.f32 1.0, %v1993_v3  ;;  %v1115_v33 = vadd.f32 %v1114_v40, %v946_v20  ;;  %3281 = vmatmul.msk.bf16.gmra.mxu2 %vm772_vm0, %v3089_v58  ;;  %v1026_v29 = vadd.f32 %v4817_v61, %v4662_v22  ;;  %vm5307_vm9 = vmor %vm1997_vm8, %vm1998_vm7 }
 0x17b   :  { %v1029_v60 = vadd.f32 %v4817_v61, %v4686_v54  ;;  %v2016_v0 = vand.u32 2147483647, %v5257_v30  ;;  %v2018_v9 = vand.u32 2147483648, %v5257_v30  ;;  %v2004_v3 = vor.u32 1.1754944e-38, %v2003_v42 }
 0x17c   :  { %v3526_v47 = vpack.c.bf16 %v2615_v56, %v2614_v53  ;;  %v1995_v5 = vmul.f32 %v5254_v21, %v1994_v19  ;;  %v5282_v45 = vadd.f32 %v5168_v6, %v1115_v33  ;;  %v3101_v53 = vor.u32 %v3428_v37, %v3100_v4 }
 0x17d   :  { %v1194_v41 = vpop.f32.mrf.mxu3  ;;  %vm2012_vm12 = vweird.f32 %v5257_v30  ;;  %vm2017_vm14 = vcmp.eq.f32.partialorder %v2016_v0, 8.507059e+37 }
 0x17e   :  { %v5284_v62 = vpop.f32.mrf.mxu2  ;;  %v3784_v28 = vpop.eup %3783  ;;  %3638 = vst [vmem:[#allocation2 + $0x58] sm:$0xff] %v3526_v47   ;;  %v3317_v25 = vmul.f32 -1.442695, %v5282_v45  ;;  %v5287_v24 = vadd.f32 %v1194_v41, %v1026_v29  ;;  %v1996_v6 = vadd.f32 %v5254_v21, %v1995_v5 }
 0x17f   :  { %v948_v38 = vpop.f32.mrf.mxu0  ;;  %v3786_v55 = vpop.eup %3785  ;;  %v5289_v22 = vadd.f32 1.0, %v3784_v28 }
 0x180   :  { %v949_v16 = vadd.f32 %v4817_v61, %v948_v38  ;;  %v1117_v46 = vpop.f32.mrf.mxu1  ;;  %v2008_v48 = vmul.f32 %v3786_v55, %v5257_v30  ;;  %3787 = vpow2.f32 %v3317_v25  ;;  %v2000_v20 = vsel %vm5307_vm9, %v5254_v21, %v1996_v6 }
 0x181   :  { %3789 = vrcp.f32 %v5289_v22  ;;  %987 = vmatmul.bf16.gmra.mxu0 %v3069_v34  ;;  %vm2013_vm10 = vweird.f32 %v3786_v55  ;;  %v2005_v36 = vsel %vm2002_vm11, %v2004_v3, %v2000_v20  ;;  %v2031_v3 = vand.u32 2147483647, %v5289_v22 }
 0x182   :  { %v2009_v58 = vsub.f32 1.0, %v2008_v48  ;;  %v1118_v32 = vadd.f32 %v1117_v46, %v949_v16  ;;  %1156 = vmatmul.bf16.gmra.mxu1 %v3073_v18  ;;  %vm2014_vm13 = vmor %vm2012_vm12, %vm2013_vm10  ;;  %v2616_v34 = vmul.f32 %v2005_v36, %v5166_v52  ;;  %v3080_v18 = vld [vmem:[%s6292_s0 + $0x228] sm:$0xf]  ;;  %v3423_v16 = vld [vmem:[%s6292_s0 + $0x22c] sm:$0xf]  ;;  %vm2027_vm1 = vweird.f32 %v5289_v22 }
 0x183   :  { %v3082_v52 = vld [vmem:[%s6292_s0 + $0x234] sm:$0xf0]  ;;  %vm2032_vm4 = vcmp.eq.f32.partialorder %v2031_v3, 8.507059e+37 }
 0x184   :  { %v2010_v40 = vmul.f32 %v3786_v55, %v2009_v58  ;;  %v5317_v44 = vadd.f32 %v5210_v11, %v1118_v32  ;;  %v2019_v11 = vor.u32 1.1754944e-38, %v2018_v9  ;;  %v3085_v49 = vor.u32 %v3423_v16, %v3082_v52 }
 0x185   :  { %v1197_v54 = vpop.f32.mrf.mxu3 }
 0x186   :  { %v5319_v35 = vpop.f32.mrf.mxu2  ;;  %v3788_v56 = vpop.eup %3787  ;;  %v2011_v19 = vadd.f32 %v3786_v55, %v2010_v40  ;;  %v3318_v33 = vmul.f32 -1.442695, %v5317_v44  ;;  %v5323_v31 = vadd.f32 %v1197_v54, %v1029_v60  ;;  %v2033_v54 = vand.u32 2147483648, %v5289_v22 }
 0x187   :  { %v950_v21 = vpop.f32.mrf.mxu0  ;;  %v5325_v14 = vpop.eup %3789  ;;  %v5328_v13 = vadd.f32 1.0, %v3788_v56 }
 0x188   :  { %v951_v29 = vadd.f32 %v4817_v61, %v950_v21  ;;  %v1119_v47 = vpop.f32.mrf.mxu1  ;;  %v2015_v5 = vsel %vm2014_vm13, %v3786_v55, %v2011_v19  ;;  %v2023_v30 = vmul.f32 %v5325_v14, %v5289_v22  ;;  %3791 = vpow2.f32 %v3318_v33  ;;  %v3424_v55 = vld [vmem:[%s6292_s0 + $0x230] sm:$0xf0]  ;;  %v3112_v19 = vld [vmem:[%s6292_s0 + $0x260] sm:$0xf]  ;;  %v3431_v33 = vld [vmem:[%s6292_s0 + $0x268] sm:$0xf0] }
 0x189   :  { %v2020_v41 = vsel %vm2017_vm14, %v2019_v11, %v2015_v5  ;;  %3793 = vrcp.f32 %v5328_v13  ;;  %v3081_v58 = vor.u32 %v3424_v55, %v3080_v18  ;;  %vm2028_vm15 = vweird.f32 %v5325_v14 }
 0x18a   :  { %v2617_v28 = vmul.f32 %v2020_v41, %v5208_v2  ;;  %v2024_v25 = vsub.f32 1.0, %v2023_v30  ;;  %v1120_v38 = vadd.f32 %v1119_v47, %v951_v29  ;;  %3282 = vmatmul.msk.bf16.gmra.mxu2 %vm772_vm0, %v3101_v53  ;;  %v1031_v2 = vadd.f32 %v4817_v61, %v4734_v63  ;;  %v5365_v61 = vld [vmem:[%s6294_s2] ss:$0 sm:$0xff]  ;;  %vm5383_vm2 = vmor %vm2027_vm1, %vm2028_vm15 }
 0x18b   :  { %v1034_v21 = vadd.f32 %v5365_v61, %v4768_v1  ;;  %v2046_v22 = vand.u32 2147483647, %v5328_v13  ;;  %v2048_v11 = vand.u32 2147483648, %v5328_v13  ;;  %v2034_v30 = vor.u32 1.1754944e-38, %v2033_v54 }
 0x18c   :  { %v3531_v46 = vpack.c.bf16 %v2617_v28, %v2616_v34  ;;  %v2025_v6 = vmul.f32 %v5325_v14, %v2024_v25  ;;  %v5353_v48 = vadd.f32 %v5248_v17, %v1120_v38  ;;  %v3113_v34 = vor.u32 %v3431_v33, %v3112_v19 }
 0x18d   :  { %v1199_v50 = vpop.f32.mrf.mxu3  ;;  %vm2042_vm5 = vweird.f32 %v5328_v13  ;;  %vm2047_vm7 = vcmp.eq.f32.partialorder %v2046_v22, 8.507059e+37 }
 0x18e   :  { %v5355_v42 = vpop.f32.mrf.mxu2  ;;  %v3792_v32 = vpop.eup %3791  ;;  %3639 = vst [vmem:[#allocation2 + $0x60] sm:$0xff] %v3531_v46   ;;  %v3319_v4 = vmul.f32 -1.442695, %v5353_v48  ;;  %v5358_v37 = vadd.f32 %v1199_v50, %v1031_v2  ;;  %v2026_v20 = vadd.f32 %v5325_v14, %v2025_v6 }
 0x18f   :  { %v953_v60 = vpop.f32.mrf.mxu0  ;;  %v3794_v0 = vpop.eup %3793  ;;  %v5360_v63 = vadd.f32 1.0, %v3792_v32 }
 0x190   :  { %v954_v17 = vadd.f32 %v5365_v61, %v953_v60  ;;  %v1122_v9 = vpop.f32.mrf.mxu1  ;;  %v2038_v40 = vmul.f32 %v3794_v0, %v5328_v13  ;;  %3795 = vpow2.f32 %v3319_v4  ;;  %v2030_v29 = vsel %vm5383_vm2, %v5325_v14, %v2026_v20 }
 0x191   :  { %3797 = vrcp.f32 %v5360_v63  ;;  %992 = vmatmul.bf16.gmra.mxu0 %v3081_v58  ;;  %vm2043_vm3 = vweird.f32 %v3794_v0  ;;  %v2035_v16 = vsel %vm2032_vm4, %v2034_v30, %v2030_v29  ;;  %v2063_v36 = vand.u32 2147483648, %v5360_v63 }
 0x192   :  { %v2039_v53 = vsub.f32 1.0, %v2038_v40  ;;  %v1123_v56 = vadd.f32 %v1122_v9, %v954_v17  ;;  %1161 = vmatmul.bf16.gmra.mxu1 %v3085_v49  ;;  %vm2044_vm6 = vmor %vm2042_vm5, %vm2043_vm3  ;;  %v2618_v58 = vmul.f32 %v2035_v16, %v5246_v51  ;;  %v1036_v49 = vadd.f32 %v5365_v61, %v4806_v12 }
 0x193   :  { %vm2057_vm8 = vweird.f32 %v5360_v63 }
 0x194   :  { %v2040_v47 = vmul.f32 %v3794_v0, %v2039_v53  ;;  %v5393_v5 = vadd.f32 %v5284_v62, %v1123_v56  ;;  %v2049_v62 = vor.u32 1.1754944e-38, %v2048_v11 }
 0x195   :  { %v1202_v1 = vpop.f32.mrf.mxu3 }
 0x196   :  { %v5395_v41 = vpop.f32.mrf.mxu2  ;;  %v3796_v28 = vpop.eup %3795  ;;  %v2041_v25 = vadd.f32 %v3794_v0, %v2040_v47  ;;  %v3320_v38 = vmul.f32 -1.442695, %v5393_v5  ;;  %v5399_v18 = vadd.f32 %v1202_v1, %v1034_v21  ;;  %v2061_v21 = vand.u32 2147483647, %v5360_v63 }
 0x197   :  { %v955_v14 = vpop.f32.mrf.mxu0  ;;  %v5401_v55 = vpop.eup %3797  ;;  %v5404_v52 = vadd.f32 1.0, %v3796_v28 }
 0x198   :  { %v956_v2 = vadd.f32 %v5365_v61, %v955_v14  ;;  %v1124_v46 = vpop.f32.mrf.mxu1  ;;  %v2045_v6 = vsel %vm2044_vm6, %v3794_v0, %v2041_v25  ;;  %v2053_v13 = vmul.f32 %v5401_v55, %v5360_v63  ;;  %3799 = vpow2.f32 %v3320_v38 }
 0x199   :  { %v2050_v50 = vsel %vm2047_vm7, %v2049_v62, %v2045_v6  ;;  %3801 = vrcp.f32 %v5404_v52  ;;  %v2076_v47 = vand.u32 2147483647, %v5404_v52  ;;  %v2078_v30 = vand.u32 2147483648, %v5404_v52 }
 0x19a   :  { %v2619_v32 = vmul.f32 %v2050_v50, %v5282_v45  ;;  %v2054_v4 = vsub.f32 1.0, %v2053_v13  ;;  %v1125_v60 = vadd.f32 %v1124_v46, %v956_v2  ;;  %3283 = vmatmul.msk.bf16.gmra.mxu2 %vm772_vm0, %v3113_v34  ;;  %vm2058_vm0 = vweird.f32 %v5401_v55 }
 0x19b   :  { %vm5434_vm9 = vmor %vm2057_vm8, %vm2058_vm0  ;;  %vm2062_vm11 = vcmp.eq.f32.partialorder %v2061_v21, 8.507059e+37  ;;  %v2064_v63 = vor.u32 1.1754944e-38, %v2063_v36  ;;  %vm2072_vm12 = vweird.f32 %v5404_v52  ;;  %vm2077_vm14 = vcmp.eq.f32.partialorder %v2076_v47, 8.507059e+37 }
 0x19c   :  { %v3536_v0 = vpack.c.bf16 %v2619_v32, %v2618_v58  ;;  %v2055_v17 = vmul.f32 %v5401_v55, %v2054_v4  ;;  %v5417_v9 = vadd.f32 %v5319_v35, %v1125_v60 }
 0x19d   :  { %v1204_v20 = vpop.f32.mrf.mxu3 }
 0x19e   :  { %v5419_v40 = vpop.f32.mrf.mxu2  ;;  %v3800_v3 = vpop.eup %3799  ;;  %3640 = vst [vmem:[#allocation2 + $0x68] sm:$0xff] %v3536_v0   ;;  %v3321_v51 = vmul.f32 -1.442695, %v5417_v9  ;;  %v5422_v45 = vadd.f32 %v1204_v20, %v1036_v49  ;;  %v2056_v33 = vadd.f32 %v5401_v55, %v2055_v17 }
 0x19f   :  { %v958_v54 = vpop.f32.mrf.mxu0  ;;  %v3802_v53 = vpop.eup %3801  ;;  %v5424_v56 = vadd.f32 1.0, %v3800_v3 }
 0x1a0   :  { %v959_v12 = vadd.f32 %v5365_v61, %v958_v54  ;;  %v1127_v19 = vpop.f32.mrf.mxu1  ;;  %v2068_v35 = vmul.f32 %v3802_v53, %v5404_v52  ;;  %3803 = vpow2.f32 %v3321_v51  ;;  %v2060_v1 = vsel %vm5434_vm9, %v5401_v55, %v2056_v33 }
 0x1a1   :  { %3805 = vrcp.f32 %v5424_v56  ;;  %vm2073_vm10 = vweird.f32 %v3802_v53  ;;  %v2065_v6 = vsel %vm2062_vm11, %v2064_v63, %v2060_v1  ;;  %vm2087_vm1 = vweird.f32 %v5424_v56 }
 0x1a2   :  { %v2069_v22 = vsub.f32 1.0, %v2068_v35  ;;  %v1128_v11 = vadd.f32 %v1127_v19, %v959_v12  ;;  %vm2074_vm13 = vmor %vm2072_vm12, %vm2073_vm10  ;;  %v2620_v60 = vmul.f32 %v2065_v6, %v5317_v44 }
 0x1a4   :  { %v2070_v34 = vmul.f32 %v3802_v53, %v2069_v22  ;;  %v5444_v28 = vadd.f32 %v5355_v42, %v1128_v11  ;;  %v2079_v42 = vor.u32 1.1754944e-38, %v2078_v30  ;;  %v2093_v22 = vand.u32 2147483648, %v5424_v56 }
 0x1a5   :  { %v1346_v38 = vpop.f32.mrf.mxu3 }
 0x1a6   :  { %v5446_v25 = vpop.f32.mrf.mxu2  ;;  %v3804_v14 = vpop.eup %3803  ;;  %v2071_v16 = vadd.f32 %v3802_v53, %v2070_v34  ;;  %v3322_v62 = vmul.f32 -1.442695, %v5444_v28  ;;  %v5451_v2 = vadd.f32 %v1346_v38, %v5012_v27 }
 0x1a7   :  { %v960_v55 = vpop.f32.mrf.mxu0  ;;  %v3806_v46 = vpop.eup %3805  ;;  %v1599_v13 = vadd.f32 1.0, %v3804_v14 }
 0x1a8   :  { %v961_v50 = vadd.f32 %v5365_v61, %v960_v55  ;;  %v1129_v58 = vpop.f32.mrf.mxu1  ;;  %v2075_v32 = vsel %vm2074_vm13, %v3802_v53, %v2071_v16  ;;  %v2083_v4 = vmul.f32 %v3806_v46, %v5424_v56  ;;  %3807 = vpow2.f32 %v3322_v62 }
 0x1a9   :  { %v2080_v52 = vsel %vm2077_vm14, %v2079_v42, %v2075_v32  ;;  %3809 = vrcp.f32 %v1599_v13  ;;  %v3342_v0 = vmul.f32 -1.442695, %v5451_v2  ;;  %vm2088_vm15 = vweird.f32 %v3806_v46 }
 0x1aa   :  { %v2621_v27 = vmul.f32 %v2080_v52, %v5353_v48  ;;  %v2084_v49 = vsub.f32 1.0, %v2083_v4  ;;  %v1130_v17 = vadd.f32 %v1129_v58, %v961_v50  ;;  %vm5476_vm2 = vmor %vm2087_vm1, %vm2088_vm15  ;;  %v2106_v34 = vand.u32 2147483647, %v1599_v13 }
 0x1ab   :  { %3811 = vpow2.f32 %v3342_v0  ;;  %v2108_v63 = vand.u32 2147483648, %v1599_v13  ;;  %vm2102_vm5 = vweird.f32 %v1599_v13 }
 0x1ac   :  { %v3541_v20 = vpack.c.bf16 %v2621_v27, %v2620_v60  ;;  %v2085_v3 = vmul.f32 %v3806_v46, %v2084_v49  ;;  %v5459_v51 = vadd.f32 %v5395_v41, %v1130_v17  ;;  %vm2107_vm7 = vcmp.eq.f32.partialorder %v2106_v34, 8.507059e+37 }
 0x1ad   :  { %v1348_v53 = vpop.f32.mrf.mxu3  ;;  %v2109_v4 = vor.u32 1.1754944e-38, %v2108_v63 }
 0x1ae   :  { %v5461_v54 = vpop.f32.mrf.mxu2  ;;  %v3808_v12 = vpop.eup %3807  ;;  %3641 = vst [vmem:[#allocation2 + $0x70] sm:$0xff] %v3541_v20   ;;  %v5464_v44 = vadd.f32 %v1348_v53, %v5053_v26  ;;  %v2086_v33 = vadd.f32 %v3806_v46, %v2085_v3  ;;  %v3323_v21 = vmul.f32 -1.442695, %v5459_v51  ;;  %v2091_v26 = vand.u32 2147483647, %v5424_v56 }
 0x1af   :  { %v963_v48 = vpop.f32.mrf.mxu0  ;;  %v3810_v19 = vpop.eup %3809  ;;  %v5466_v35 = vadd.f32 1.0, %v3808_v12  ;;  %v2094_v56 = vor.u32 1.1754944e-38, %v2093_v22 }
 0x1b0   :  { %v964_v36 = vadd.f32 %v5365_v61, %v963_v48  ;;  %v1132_v41 = vpop.f32.mrf.mxu1  ;;  %v2098_v11 = vmul.f32 %v3810_v19, %v1599_v13  ;;  %v3343_v29 = vmul.f32 -1.442695, %v5464_v44  ;;  %v2090_v38 = vsel %vm5476_vm2, %v3806_v46, %v2086_v33 }
 0x1b1   :  { %3813 = vrcp.f32 %v5466_v35  ;;  %v3812_v47 = vpop.eup %3811  ;;  %vm2103_vm3 = vweird.f32 %v3810_v19  ;;  %vm2092_vm4 = vcmp.eq.f32.partialorder %v2091_v26, 8.507059e+37  ;;  %v2123_v12 = vand.u32 2147483648, %v5466_v35 }
 0x1b2   :  { %v2099_v1 = vsub.f32 1.0, %v2098_v11  ;;  %3815 = vpow2.f32 %v3323_v21  ;;  %v5482_v14 = vadd.f32 1.0, %v3812_v47  ;;  %v1133_v16 = vadd.f32 %v1132_v41, %v964_v36  ;;  %vm2104_vm6 = vmor %vm2102_vm5, %vm2103_vm3 }
 0x1b3   :  { %3817 = vpow2.f32 %v3343_v29  ;;  %v2095_v42 = vsel %vm2092_vm4, %v2094_v56, %v2090_v38  ;;  %vm2117_vm0 = vweird.f32 %v5466_v35 }
 0x1b4   :  { %v2100_v62 = vmul.f32 %v3810_v19, %v2099_v1  ;;  %3819 = vrcp.f32 %v5482_v14  ;;  %v5488_v58 = vadd.f32 %v5419_v40, %v1133_v16  ;;  %v2121_v40 = vand.u32 2147483647, %v5466_v35 }
 0x1b5   :  { %v1351_v6 = vpop.f32.mrf.mxu3  ;;  %v2622_v3 = vmul.f32 %v2095_v42, %v5393_v5  ;;  %v2421_v36 = vand.u32 2147483647, %v5482_v14  ;;  %v2124_v1 = vor.u32 1.1754944e-38, %v2123_v12  ;;  %vm2417_vm9 = vweird.f32 %v5482_v14 }
 0x1b6   :  { %v5485_v55 = vpop.f32.mrf.mxu2  ;;  %v2101_v50 = vadd.f32 %v3810_v19, %v2100_v62  ;;  %v5493_v52 = vadd.f32 %v1351_v6, %v5092_v10  ;;  %v3324_v17 = vmul.f32 -1.442695, %v5488_v58  ;;  %vm5520_vm8 = vcmp.eq.f32.partialorder %v2121_v40, 8.507059e+37 }
 0x1b7   :  { %v965_v46 = vpop.f32.mrf.mxu0  ;;  %v5490_v32 = vpop.eup %3813  ;;  %vm5526_vm10 = vcmp.eq.f32.partialorder %v2421_v36, 8.507059e+37 }
 0x1b8   :  { %v966_v60 = vadd.f32 %v5365_v61, %v965_v46  ;;  %v1134_v27 = vpop.f32.mrf.mxu1  ;;  %v3816_v49 = vpop.eup %3815  ;;  %v2105_v0 = vsel %vm2104_vm6, %v3810_v19, %v2101_v50  ;;  %v2113_v13 = vmul.f32 %v5490_v32, %v5466_v35  ;;  %3821 = vpow2.f32 %v3324_v17 }
 0x1b9   :  { %v3818_v20 = vpop.eup %3817  ;;  %v2110_v53 = vsel %vm2107_vm7, %v2109_v4, %v2105_v0  ;;  %v5502_v10 = vadd.f32 1.0, %v3816_v49  ;;  %v3344_v41 = vmul.f32 -1.442695, %v5493_v52  ;;  %vm2118_vm11 = vweird.f32 %v5490_v32 }
 0x1ba   :  { %v2623_v48 = vmul.f32 %v2110_v53, %v5417_v9  ;;  %v2114_v33 = vsub.f32 1.0, %v2113_v13  ;;  %v5505_v21 = vadd.f32 1.0, %v3818_v20  ;;  %v5507_v19 = vpop.eup %3819  ;;  %v1135_v5 = vadd.f32 %v1134_v27, %v966_v60  ;;  %vm5554_vm15 = vmor %vm2117_vm0, %vm2118_vm11 }
 0x1bb   :  { %3823 = vrcp.f32 %v5502_v10  ;;  %v2413_v29 = vmul.f32 %v5507_v19, %v5482_v14  ;;  %v2423_v9 = vand.u32 2147483648, %v5482_v14  ;;  %v2136_v63 = vand.u32 2147483647, %v5502_v10 }
 0x1bc   :  { %v3546_v22 = vpack.c.bf16 %v2623_v48, %v2622_v3  ;;  %v2115_v11 = vmul.f32 %v5490_v32, %v2114_v33  ;;  %3825 = vrcp.f32 %v5505_v21  ;;  %v2138_v56 = vand.u32 2147483648, %v5502_v10 }
 0x1bd   :  { %v1353_v47 = vpop.f32.mrf.mxu3  ;;  %v2414_v34 = vsub.f32 1.0, %v2413_v29  ;;  %3827 = vpow2.f32 %v3344_v41  ;;  %v5532_v62 = vadd.f32 %v5446_v25, %v1135_v5  ;;  %v2424_v60 = vor.u32 1.1754944e-38, %v2423_v9 }
 0x1be   :  { %v5518_v26 = vpop.f32.mrf.mxu2  ;;  %3642 = vst [vmem:[#allocation2 + $0x78] sm:$0xff] %v3546_v22   ;;  %v5535_v6 = vadd.f32 %v1353_v47, %v5133_v39  ;;  %v3822_v50 = vpop.eup %3821  ;;  %v2116_v46 = vadd.f32 %v5490_v32, %v2115_v11  ;;  %vm2418_vm12 = vweird.f32 %v5507_v19  ;;  %v2436_v49 = vand.u32 2147483647, %v5505_v21 }
 0x1bf   :  { %v968_v38 = vpop.f32.mrf.mxu0  ;;  %v2415_v4 = vmul.f32 %v5507_v19, %v2414_v34  ;;  %v5542_v0 = vadd.f32 1.0, %v3822_v50  ;;  %v3325_v25 = vmul.f32 -1.442695, %v5532_v62  ;;  %vm2132_vm13 = vweird.f32 %v5502_v10  ;;  %vm5568_vm1 = vmor %vm2417_vm9, %vm2418_vm12 }
 0x1c0   :  { %v1137_v42 = vpop.f32.mrf.mxu1  ;;  %vm5548_vm14 = vcmp.eq.f32.partialorder %v2136_v63, 8.507059e+37  ;;  %v2139_v3 = vor.u32 1.1754944e-38, %v2138_v56  ;;  %v3345_v53 = vmul.f32 -1.442695, %v5535_v6  ;;  %v969_v12 = vadd.f32 %v5365_v61, %v968_v38 }
 0x1c1   :  { %v3824_v27 = vpop.eup %3823  ;;  %v2416_v39 = vadd.f32 %v5507_v19, %v2415_v4  ;;  %3829 = vrcp.f32 %v5542_v0  ;;  %v2120_v48 = vsel %vm5554_vm15, %v5490_v32, %v2116_v46  ;;  %vm2432_vm2 = vweird.f32 %v5505_v21 }
 0x1c2   :  { %v2128_v13 = vmul.f32 %v3824_v27, %v5502_v10  ;;  %v3826_v17 = vpop.eup %3825  ;;  %vm5577_vm3 = vcmp.eq.f32.partialorder %v2436_v49, 8.507059e+37  ;;  %v2438_v14 = vand.u32 2147483648, %v5505_v21  ;;  %3831 = vpow2.f32 %v3325_v25 }
 0x1c3   :  { %v2428_v36 = vmul.f32 %v3826_v17, %v5505_v21  ;;  %v3828_v41 = vpop.eup %3827  ;;  %v2420_v5 = vsel %vm5568_vm1, %v5507_v19, %v2416_v39  ;;  %vm2133_vm4 = vweird.f32 %v3824_v27  ;;  %v2125_v63 = vsel %vm5520_vm8, %v2124_v1, %v2120_v48 }
 0x1c4   :  { %v2129_v33 = vsub.f32 1.0, %v2128_v13  ;;  %v5584_v47 = vadd.f32 1.0, %v3828_v41  ;;  %vm2433_vm5 = vweird.f32 %v3826_v17  ;;  %3833 = vpow2.f32 %v3345_v53  ;;  %vm2134_vm6 = vmor %vm2132_vm13, %vm2133_vm4 }
 0x1c5   :  { %v1356_v11 = vpop.f32.mrf.mxu3  ;;  %v2429_v9 = vsub.f32 1.0, %v2428_v36  ;;  %v1138_v19 = vadd.f32 %v1137_v42, %v969_v12  ;;  %v2425_v56 = vsel %vm5526_vm10, %v2424_v60, %v2420_v5  ;;  %v2439_v49 = vor.u32 1.1754944e-38, %v2438_v14  ;;  %vm2434_vm7 = vmor %vm2432_vm2, %vm2433_vm5 }
 0x1c6   :  { %v5582_v22 = vpop.f32.mrf.mxu2  ;;  %v2130_v29 = vmul.f32 %v3824_v27, %v2129_v33  ;;  %3835 = vrcp.f32 %v5584_v47  ;;  %v5599_v1 = vadd.f32 %v1356_v11, %v5172_v15  ;;  %v2624_v16 = vmul.f32 %v2125_v63, %v5444_v28 }
 0x1c7   :  { %v970_v34 = vpop.f32.mrf.mxu0  ;;  %v2430_v46 = vmul.f32 %v3826_v17, %v2429_v9  ;;  %v5591_v4 = vpop.eup %3829  ;;  %v5596_v30 = vadd.f32 %v5461_v54, %v1138_v19  ;;  %v2644_v10 = vmul.f32 %v2425_v56, %v5451_v2  ;;  %v2151_v15 = vand.u32 2147483647, %v5542_v0 }
 0x1c8   :  { %v1139_v38 = vpop.f32.mrf.mxu1  ;;  %v2131_v50 = vadd.f32 %v3824_v27, %v2130_v29  ;;  %v971_v42 = vadd.f32 %v5365_v61, %v970_v34  ;;  %v2143_v39 = vmul.f32 %v5591_v4, %v5542_v0  ;;  %v3832_v13 = vpop.eup %3831  ;;  %v3346_v40 = vmul.f32 -1.442695, %v5599_v1 }
 0x1c9   :  { %v2431_v25 = vadd.f32 %v3826_v17, %v2430_v46  ;;  %v3326_v54 = vmul.f32 -1.442695, %v5596_v30  ;;  %v5614_v12 = vadd.f32 1.0, %v3832_v13  ;;  %v2153_v5 = vand.u32 2147483648, %v5542_v0 }
 0x1ca   :  { %v2135_v60 = vsel %vm2134_vm6, %v3824_v27, %v2131_v50  ;;  %v2144_v53 = vsub.f32 1.0, %v2143_v39  ;;  %v3834_v48 = vpop.eup %3833  ;;  %vm2148_vm0 = vweird.f32 %v5591_v4  ;;  %v2451_v34 = vand.u32 2147483647, %v5584_v47 }
 0x1cb   :  { %v2140_v20 = vsel %vm5548_vm14, %v2139_v3, %v2135_v60  ;;  %v2435_v27 = vsel %vm2434_vm7, %v3826_v17, %v2431_v25  ;;  %3837 = vpow2.f32 %v3326_v54  ;;  %v1140_v3 = vadd.f32 %v1139_v38, %v971_v42 }
 0x1cc   :  { %v2625_v28 = vmul.f32 %v2140_v20, %v5459_v51  ;;  %v2440_v2 = vsel %vm5577_vm3, %v2439_v49, %v2435_v27  ;;  %v5621_v33 = vpop.eup %3835  ;;  %v2145_v17 = vmul.f32 %v5591_v4, %v2144_v53  ;;  %3839 = vrcp.f32 %v5614_v12 }
 0x1cd   :  { %v1358_v35 = vpop.f32.mrf.mxu3  ;;  %v2645_v51 = vmul.f32 %v2440_v2, %v5464_v44  ;;  %v2443_v32 = vmul.f32 %v5621_v33, %v5584_v47  ;;  %v5635_v44 = vadd.f32 1.0, %v3834_v48  ;;  %3841 = vpow2.f32 %v3346_v40 }
 0x1ce   :  { %v5619_v21 = vpop.f32.mrf.mxu2  ;;  %v3551_v36 = vpack.c.bf16 %v2625_v28, %v2624_v16  ;;  %v2146_v29 = vadd.f32 %v5591_v4, %v2145_v17  ;;  %v5639_v63 = vadd.f32 %v5485_v55, %v1140_v3  ;;  %vm2147_vm8 = vweird.f32 %v5542_v0 }
 0x1cf   :  { %v5626_v41 = vpop.f32.mrf.mxu0  ;;  %v3601_v11 = vpack.c.bf16 %v2645_v51, %v2644_v10  ;;  %v2444_v9 = vsub.f32 1.0, %v2443_v32  ;;  %vm5642_vm9 = vcmp.eq.f32.partialorder %v2151_v15, 8.507059e+37  ;;  %v2453_v38 = vand.u32 2147483648, %v5584_v47  ;;  %vm5648_vm10 = vmor %vm2147_vm8, %vm2148_vm0 }
 0x1d0   :  { %v5631_v14 = vpop.f32.mrf.mxu1  ;;  %3643 = vst [vmem:[#allocation2 + $0x80] sm:$0xff] %v3551_v36   ;;  %3843 = vrcp.f32 %v5635_v44  ;;  %v2154_v46 = vor.u32 1.1754944e-38, %v2153_v5  ;;  %vm2447_vm11 = vweird.f32 %v5584_v47  ;;  %v2166_v0 = vand.u32 2147483647, %v5614_v12 }
 0x1d1   :  { %3653 = vst [vmem:[#allocation2 + $0xd0] sm:$0xff] %v3601_v11   ;;  %v3838_v56 = vpop.eup %3837  ;;  %v2445_v55 = vmul.f32 %v5621_v33, %v2444_v9  ;;  %v2150_v42 = vsel %vm5648_vm10, %v5591_v4, %v2146_v29  ;;  %v3327_v60 = vmul.f32 -1.442695, %v5639_v63  ;;  %v5662_v25 = vadd.f32 %v1358_v35, %v5213_v8 }
 0x1d2   :  { %v3840_v49 = vpop.eup %3839  ;;  %v5658_v16 = vadd.f32 1.0, %v3838_v56  ;;  %vm2448_vm12 = vweird.f32 %v5621_v33  ;;  %vm5666_vm13 = vcmp.eq.f32.partialorder %v2451_v34, 8.507059e+37  ;;  %v2454_v15 = vor.u32 1.1754944e-38, %v2453_v38 }
 0x1d3   :  { %v2446_v39 = vadd.f32 %v5621_v33, %v2445_v55  ;;  %v2158_v10 = vmul.f32 %v3840_v49, %v5614_v12  ;;  %vm2162_vm14 = vweird.f32 %v5614_v12  ;;  %v2168_v54 = vand.u32 2147483648, %v5614_v12  ;;  %v3842_v28 = vpop.eup %3841  ;;  %vm5685_vm15 = vmor %vm2447_vm11, %vm2448_vm12 }
 0x1d4   :  { %3845 = vrcp.f32 %v5658_v16  ;;  %v2155_v27 = vsel %vm5642_vm9, %v2154_v46, %v2150_v42  ;;  %v2466_v48 = vand.u32 2147483647, %v5635_v44  ;;  %vm5689_vm1 = vcmp.eq.f32.partialorder %v2166_v0, 8.507059e+37 }
 0x1d5   :  { %v1361_v4 = vpop.f32.mrf.mxu3  ;;  %v2159_v53 = vsub.f32 1.0, %v2158_v10  ;;  %3847 = vpow2.f32 %v3327_v60  ;;  %v2468_v36 = vand.u32 2147483648, %v5635_v44  ;;  %v5694_v51 = vadd.f32 1.0, %v3842_v28 }
 0x1d6   :  { %v5671_v20 = vpop.f32.mrf.mxu2  ;;  %v3844_v40 = vpop.eup %3843  ;;  %v3347_v17 = vmul.f32 -1.442695, %v5662_v25  ;;  %v2450_v5 = vsel %vm5685_vm15, %v5621_v33, %v2446_v39  ;;  %vm2163_vm2 = vweird.f32 %v3840_v49  ;;  %v2626_v11 = vmul.f32 %v2155_v27, %v5488_v58 }
 0x1d7   :  { %v975_v8 = vpop.f32.mrf.mxu0  ;;  %v2160_v32 = vmul.f32 %v3840_v49, %v2159_v53  ;;  %v2458_v47 = vmul.f32 %v3844_v40, %v5635_v44  ;;  %v2169_v29 = vor.u32 1.1754944e-38, %v2168_v54  ;;  %vm2462_vm3 = vweird.f32 %v5635_v44  ;;  %vm2164_vm5 = vmor %vm2162_vm14, %vm2163_vm2 }
 0x1d8   :  { %v5679_v2 = vpop.f32.mrf.mxu1  ;;  %3849 = vrcp.f32 %v5694_v51  ;;  %vm5704_vm4 = vcmp.eq.f32.partialorder %v2466_v48, 8.507059e+37  ;;  %v2455_v33 = vsel %vm5666_vm13, %v2454_v15, %v2450_v5  ;;  %v2469_v58 = vor.u32 1.1754944e-38, %v2468_v36 }
 0x1d9   :  { %v2161_v9 = vadd.f32 %v3840_v49, %v2160_v32  ;;  %v2459_v34 = vsub.f32 1.0, %v2458_v47  ;;  %3851 = vpow2.f32 %v3347_v17  ;;  %v974_v56 = vadd.f32 %v5365_v61, %v5626_v41 }
 0x1da   :  { %v5708_v38 = vpop.eup %3845  ;;  %v5717_v50 = vadd.f32 %v1361_v4, %v5252_v7  ;;  %vm2463_vm6 = vweird.f32 %v3844_v40  ;;  %vm2177_vm7 = vweird.f32 %v5658_v16  ;;  %v2181_v41 = vand.u32 2147483647, %v5658_v16 }
 0x1db   :  { %v3848_v46 = vpop.eup %3847  ;;  %v2165_v55 = vsel %vm2164_vm5, %v3840_v49, %v2161_v9  ;;  %v2460_v0 = vmul.f32 %v3844_v40, %v2459_v34  ;;  %v2173_v42 = vmul.f32 %v5708_v38, %v5658_v16  ;;  %v2183_v7 = vand.u32 2147483648, %v5658_v16  ;;  %vm2464_vm0 = vmor %vm2462_vm3, %vm2463_vm6 }
 0x1dc   :  { %v2170_v12 = vsel %vm5689_vm1, %v2169_v29, %v2165_v55  ;;  %v5728_v13 = vadd.f32 1.0, %v3848_v46  ;;  %v2646_v10 = vmul.f32 %v2455_v33, %v5493_v52  ;;  %v1143_v53 = vadd.f32 %v5631_v14, %v974_v56 }
 0x1dd   :  { %v1363_v39 = vpop.f32.mrf.mxu3  ;;  %v2627_v4 = vmul.f32 %v2170_v12, %v5532_v62  ;;  %v2461_v15 = vadd.f32 %v3844_v40, %v2460_v0  ;;  %v2174_v54 = vsub.f32 1.0, %v2173_v42  ;;  %v3348_v48 = vmul.f32 -1.442695, %v5717_v50 }
 0x1de   :  { %v5721_v60 = vpop.f32.mrf.mxu2  ;;  %v5734_v27 = vpop.eup %3849  ;;  %3853 = vrcp.f32 %v5728_v13  ;;  %v976_v52 = vadd.f32 %v5365_v61, %v975_v8  ;;  %vm2178_vm8 = vweird.f32 %v5708_v38  ;;  %v2481_v5 = vand.u32 2147483647, %v5694_v51 }
 0x1df   :  { %v978_v49 = vpop.f32.mrf.mxu0  ;;  %v3852_v3 = vpop.eup %3851  ;;  %v3556_v62 = vpack.c.bf16 %v2627_v4, %v2626_v11  ;;  %v2465_v35 = vsel %vm2464_vm0, %v3844_v40, %v2461_v15  ;;  %v2175_v36 = vmul.f32 %v5708_v38, %v2174_v54  ;;  %v2473_v17 = vmul.f32 %v5734_v27, %v5694_v51  ;;  %vm5778_vm11 = vmor %vm2177_vm7, %vm2178_vm8 }
 0x1e0   :  { %v5732_v28 = vpop.f32.mrf.mxu1  ;;  %v2470_v44 = vsel %vm5704_vm4, %v2469_v58, %v2465_v35  ;;  %v2483_v14 = vand.u32 2147483648, %v5694_v51  ;;  %v2196_v40 = vand.u32 2147483647, %v5728_v13  ;;  %v5753_v47 = vadd.f32 1.0, %v3852_v3 }
 0x1e1   :  { %3644 = vst [vmem:[#allocation2 + $0x88] sm:$0xff] %v3556_v62   ;;  %v2647_v8 = vmul.f32 %v2470_v44, %v5535_v6  ;;  %v2474_v32 = vsub.f32 1.0, %v2473_v17  ;;  %v2176_v11 = vadd.f32 %v5708_v38, %v2175_v36  ;;  %v5757_v29 = vadd.f32 %v5518_v26, %v1143_v53 }
 0x1e2   :  { %3855 = vpow2.f32 %v3348_v48  ;;  %v1145_v9 = vadd.f32 %v5679_v2, %v976_v52  ;;  %vm5760_vm9 = vcmp.eq.f32.partialorder %v2181_v41, 8.507059e+37  ;;  %v5766_v6 = vadd.f32 %v1363_v39, %v5287_v24 }
 0x1e3   :  { %v3606_v34 = vpack.c.bf16 %v2647_v8, %v2646_v10  ;;  %3857 = vrcp.f32 %v5753_v47  ;;  %v2184_v56 = vor.u32 1.1754944e-38, %v2183_v7  ;;  %v2475_v26 = vmul.f32 %v5734_v27, %v2474_v32 }
 0x1e4   :  { %v3854_v58 = vpop.eup %3853  ;;  %vm2477_vm10 = vweird.f32 %v5694_v51  ;;  %v2484_v46 = vor.u32 1.1754944e-38, %v2483_v14  ;;  %vm2478_vm12 = vweird.f32 %v5734_v27  ;;  %vm2192_vm13 = vweird.f32 %v5728_v13 }
 0x1e5   :  { %3654 = vst [vmem:[#allocation2 + $0xd8] sm:$0xff] %v3606_v34   ;;  %v2188_v24 = vmul.f32 %v3854_v58, %v5728_v13  ;;  %v2198_v0 = vand.u32 2147483648, %v5728_v13  ;;  %v1366_v42 = vpop.f32.mrf.mxu3  ;;  %v2180_v12 = vsel %vm5778_vm11, %v5708_v38, %v2176_v11  ;;  %vm5791_vm14 = vcmp.eq.f32.partialorder %v2481_v5, 8.507059e+37  ;;  %vm5821_vm2 = vmor %vm2477_vm10, %vm2478_vm12 }
 0x1e6   :  { %v5768_v33 = vpop.f32.mrf.mxu2  ;;  %vm5795_vm15 = vcmp.eq.f32.partialorder %v2196_v40, 8.507059e+37  ;;  %v3328_v7 = vmul.f32 -1.442695, %v5757_v29  ;;  %v5801_v10 = vadd.f32 %v5582_v22, %v1145_v9  ;;  %v2498_v15 = vand.u32 2147483648, %v5753_v47 }
 0x1e7   :  { %v5772_v2 = vpop.f32.mrf.mxu0  ;;  %v2189_v4 = vsub.f32 1.0, %v2188_v24  ;;  %v3349_v54 = vmul.f32 -1.442695, %v5766_v6  ;;  %v979_v38 = vadd.f32 %v5365_v61, %v978_v49  ;;  %v2476_v48 = vadd.f32 %v5734_v27, %v2475_v26 }
 0x1e8   :  { %v5786_v39 = vpop.f32.mrf.mxu1  ;;  %v3856_v53 = vpop.eup %3855  ;;  %3859 = vpow2.f32 %v3328_v7  ;;  %v3329_v52 = vmul.f32 -1.442695, %v5801_v10  ;;  %v5809_v3 = vadd.f32 %v1366_v42, %v5323_v31  ;;  %vm2193_vm1 = vweird.f32 %v3854_v58 }
 0x1e9   :  { %v3858_v62 = vpop.eup %3857  ;;  %v2190_v35 = vmul.f32 %v3854_v58, %v2189_v4  ;;  %v5811_v22 = vadd.f32 1.0, %v3856_v53  ;;  %3861 = vpow2.f32 %v3349_v54  ;;  %v2185_v36 = vsel %vm5760_vm9, %v2184_v56, %v2180_v12  ;;  %vm2194_vm4 = vmor %vm2192_vm13, %vm2193_vm1 }
 0x1ea   :  { %v2488_v49 = vmul.f32 %v3858_v62, %v5753_v47  ;;  %3863 = vpow2.f32 %v3329_v52  ;;  %v1148_v17 = vadd.f32 %v5732_v28, %v979_v38  ;;  %v2199_v5 = vor.u32 1.1754944e-38, %v2198_v0 }
 0x1eb   :  { %v2191_v44 = vadd.f32 %v3854_v58, %v2190_v35  ;;  %vm2492_vm3 = vweird.f32 %v5753_v47  ;;  %3865 = vrcp.f32 %v5811_v22  ;;  %v2480_v28 = vsel %vm5821_vm2, %v5734_v27, %v2476_v48  ;;  %v5953_v35 = vld [vmem:[%s6294_s2] ss:$0 sm:$0xff]  ;;  %s3966_s2 = smov [#allocation2]  }
 0x1ec   :  { %v2489_v51 = vsub.f32 1.0, %v2488_v49  ;;  %v5835_v8 = vadd.f32 %v5619_v21, %v1148_v17  ;;  %v3350_v32 = vmul.f32 -1.442695, %v5809_v3  ;;  %v2628_v11 = vmul.f32 %v2185_v36, %v5596_v30  ;;  %s2788_s20 = sshll.u32 %s3966_s2, 4  ;;  %s2789_s20 = int_to_ptr.vmem [resolvable:$true] %s2788_s20 }
 0x1ed   :  { %v2195_v9 = vsel %vm2194_vm4, %v3854_v58, %v2191_v44  ;;  %v2496_v34 = vand.u32 2147483647, %v5753_v47  ;;  %v2499_v19 = vor.u32 1.1754944e-38, %v2498_v15  ;;  %vm2493_vm5 = vweird.f32 %v3858_v62  ;;  %v1368_v7 = vpop.f32.mrf.mxu3 }
 0x1ee   :  { %v5827_v14 = vpop.f32.mrf.mxu2  ;;  %v3860_v56 = vpop.eup %3859  ;;  %v2200_v27 = vsel %vm5795_vm15, %v2199_v5, %v2195_v9  ;;  %v2490_v13 = vmul.f32 %v3858_v62, %v2489_v51  ;;  %v3330_v26 = vmul.f32 -1.442695, %v5835_v8  ;;  %v2485_v55 = vsel %vm5791_vm14, %v2484_v46, %v2480_v28  ;;  %vm2494_vm6 = vmor %vm2492_vm3, %vm2493_vm5 }
 0x1ef   :  { %v5838_v40 = vpop.f32.mrf.mxu0  ;;  %v3862_v21 = vpop.eup %3861  ;;  %v2629_v24 = vmul.f32 %v2200_v27, %v5639_v63  ;;  %v5848_v0 = vadd.f32 1.0, %v3860_v56  ;;  %3867 = vpow2.f32 %v3350_v32  ;;  %v2511_v12 = vand.u32 2147483647, %v5811_v22 }
 0x1f0   :  { %v5850_v30 = vpop.f32.mrf.mxu1  ;;  %v3864_v58 = vpop.eup %3863  ;;  %v2491_v42 = vadd.f32 %v3858_v62, %v2490_v13  ;;  %v5853_v41 = vadd.f32 1.0, %v3862_v21  ;;  %3869 = vpow2.f32 %v3330_v26  ;;  %v2513_v63 = vand.u32 2147483648, %v5811_v22 }
 0x1f1   :  { %v5855_v4 = vpop.eup %3865  ;;  %v3561_v15 = vpack.c.bf16 %v2629_v24, %v2628_v11  ;;  %3871 = vrcp.f32 %v5848_v0  ;;  %v981_v46 = vadd.f32 %v5365_v61, %v5772_v2  ;;  %vm2497_vm7 = vcmp.eq.f32.partialorder %v2496_v34, 8.507059e+37 }
 0x1f2   :  { %v2495_v16 = vsel %vm2494_vm6, %v3858_v62, %v2491_v42  ;;  %v2503_v54 = vmul.f32 %v5855_v4, %v5811_v22  ;;  %v5866_v53 = vadd.f32 1.0, %v3864_v58  ;;  %3873 = vrcp.f32 %v5853_v41 }
 0x1f3   :  { %3645 = vst [vmem:[#allocation2 + $0x90] sm:$0xff] %v3561_v15   ;;  %v2500_v38 = vsel %vm2497_vm7, %v2499_v19, %v2495_v16  ;;  %v5870_v47 = vadd.f32 %v1368_v7, %v5358_v37  ;;  %v2648_v52 = vmul.f32 %v2485_v55, %v5599_v1  ;;  %vm2507_vm0 = vweird.f32 %v5811_v22 }
 0x1f4   :  { %v2649_v61 = vmul.f32 %v2500_v38, %v5662_v25  ;;  %v2504_v2 = vsub.f32 1.0, %v2503_v54  ;;  %vm5877_vm8 = vcmp.eq.f32.partialorder %v2511_v12, 8.507059e+37  ;;  %v2514_v36 = vor.u32 1.1754944e-38, %v2513_v63 }
 0x1f5   :  { %v3868_v62 = vpop.eup %3867  ;;  %3875 = vrcp.f32 %v5866_v53  ;;  %v1150_v37 = vadd.f32 %v5786_v39, %v981_v46  ;;  %v2211_v1 = vand.u32 2147483647, %v5848_v0  ;;  %v2213_v25 = vand.u32 2147483648, %v5848_v0 }
 0x1f6   :  { %v5872_v48 = vpop.f32.mrf.mxu2  ;;  %v3870_v17 = vpop.eup %3869  ;;  %v3611_v31 = vpack.c.bf16 %v2649_v61, %v2648_v52  ;;  %v2505_v44 = vmul.f32 %v5855_v4, %v2504_v2  ;;  %vm2508_vm9 = vweird.f32 %v5855_v4  ;;  %v5891_v51 = vadd.f32 1.0, %v3868_v62 }
 0x1f7   :  { %v5883_v49 = vpop.f32.mrf.mxu0  ;;  %v3872_v5 = vpop.eup %3871  ;;  %v5889_v28 = vadd.f32 1.0, %v3870_v17  ;;  %v3351_v32 = vmul.f32 -1.442695, %v5870_v47  ;;  %v2226_v9 = vand.u32 2147483647, %v5866_v53  ;;  %v2228_v34 = vand.u32 2147483648, %v5866_v53  ;;  %vm5914_vm12 = vmor %vm2507_vm0, %vm2508_vm9 }
 0x1f8   :  { %3655 = vst [vmem:[#allocation2 + $0xe0] sm:$0xff] %v3611_v31   ;;  %v2203_v39 = vmul.f32 %v3872_v5, %v5848_v0  ;;  %v2506_v11 = vadd.f32 %v5855_v4, %v2505_v44  ;;  %v5898_v19 = vpop.eup %3873  ;;  %vm2207_vm10 = vweird.f32 %v5848_v0  ;;  %v2526_v56 = vand.u32 2147483647, %v5853_v41  ;;  %v5904_v13 = vpop.f32.mrf.mxu1 }
 0x1f9   :  { %v2528_v27 = vand.u32 2147483648, %v5853_v41  ;;  %3877 = vrcp.f32 %v5889_v28  ;;  %vm5906_vm11 = vcmp.eq.f32.partialorder %v2211_v1, 8.507059e+37  ;;  %v2214_v55 = vor.u32 1.1754944e-38, %v2213_v25  ;;  %v1371_v25 = vpop.f32.mrf.mxu3 }
 0x1fa   :  { %v2204_v26 = vsub.f32 1.0, %v2203_v39  ;;  %v2518_v58 = vmul.f32 %v5898_v19, %v5853_v41  ;;  %v2510_v12 = vsel %vm5914_vm12, %v5855_v4, %v2506_v11  ;;  %vm2222_vm13 = vweird.f32 %v5866_v53 }
 0x1fb   :  { %v3876_v42 = vpop.eup %3875  ;;  %vm2522_vm14 = vweird.f32 %v5853_v41  ;;  %3879 = vrcp.f32 %v5891_v51  ;;  %vm2208_vm15 = vweird.f32 %v3872_v5  ;;  %vm5929_vm1 = vcmp.eq.f32.partialorder %v2226_v9, 8.507059e+37 }
 0x1fc   :  { %v2205_v22 = vmul.f32 %v3872_v5, %v2204_v26  ;;  %v2218_v15 = vmul.f32 %v3876_v42, %v5866_v53  ;;  %v2229_v46 = vor.u32 1.1754944e-38, %v2228_v34  ;;  %v2519_v16 = vsub.f32 1.0, %v2518_v58  ;;  %vm2209_vm4 = vmor %vm2207_vm10, %vm2208_vm15 }
 0x1fd   :  { %vm2523_vm2 = vweird.f32 %v5898_v19  ;;  %vm5934_vm3 = vcmp.eq.f32.partialorder %v2526_v56, 8.507059e+37  ;;  %v2529_v54 = vor.u32 1.1754944e-38, %v2528_v27  ;;  %v2515_v52 = vsel %vm5877_vm8, %v2514_v36, %v2510_v12 }
 0x1fe   :  { %v5926_v7 = vpop.f32.mrf.mxu2  ;;  %v2206_v38 = vadd.f32 %v3872_v5, %v2205_v22  ;;  %v2219_v61 = vsub.f32 1.0, %v2218_v15  ;;  %v5941_v2 = vadd.f32 %v5671_v20, %v1150_v37  ;;  %v2520_v17 = vmul.f32 %v5898_v19, %v2519_v16  ;;  %vm2524_vm7 = vmor %vm2522_vm14, %vm2523_vm2 }
 0x1ff   :  { %v5943_v62 = vpop.eup %3877  ;;  %vm2237_vm5 = vweird.f32 %v5889_v28  ;;  %v2243_v31 = vand.u32 2147483648, %v5889_v28  ;;  %3881 = vpow2.f32 %v3351_v32  ;;  %v984_v20 = vadd.f32 %v5953_v35, %v5838_v40  ;;  %v5957_v36 = vpop.f32.mrf.mxu0 }
 0x200   :  { %v2210_v37 = vsel %vm2209_vm4, %v3872_v5, %v2206_v38  ;;  %v2220_v0 = vmul.f32 %v3876_v42, %v2219_v61  ;;  %vm2223_vm6 = vweird.f32 %v3876_v42  ;;  %v2233_v1 = vmul.f32 %v5943_v62, %v5889_v28  ;;  %v1157_v26 = vpop.f32.mrf.mxu1 }
 0x201   :  { %v5961_v44 = vpop.eup %3879  ;;  %v2215_v32 = vsel %vm5906_vm11, %v2214_v55, %v2210_v37  ;;  %v2650_v39 = vmul.f32 %v2515_v52, %v5717_v50  ;;  %v2521_v11 = vadd.f32 %v5898_v19, %v2520_v17  ;;  %v3331_v40 = vmul.f32 -1.442695, %v5941_v2  ;;  %vm2224_vm8 = vmor %vm2222_vm13, %vm2223_vm6  ;;  %v1373_v37 = vpop.f32.mrf.mxu3 }
 0x202   :  { %v2221_v9 = vadd.f32 %v3876_v42, %v2220_v0  ;;  %v2234_v5 = vsub.f32 1.0, %v2233_v1  ;;  %vm2238_vm0 = vweird.f32 %v5943_v62  ;;  %v2533_v34 = vmul.f32 %v5961_v44, %v5891_v51 }
 0x203   :  { %v2630_v56 = vmul.f32 %v2215_v32, %v5757_v29  ;;  %v2525_v50 = vsel %vm2524_vm7, %v5898_v19, %v2521_v11  ;;  %3883 = vpow2.f32 %v3331_v40  ;;  %v1153_v27 = vadd.f32 %v5850_v30, %v984_v20  ;;  %vm6006_vm9 = vmor %vm2237_vm5, %vm2238_vm0 }
 0x204   :  { %v2225_v21 = vsel %vm2224_vm8, %v3876_v42, %v2221_v9  ;;  %v2530_v41 = vsel %vm5934_vm3, %v2529_v54, %v2525_v50  ;;  %v2235_v55 = vmul.f32 %v5943_v62, %v2234_v5  ;;  %v2534_v24 = vsub.f32 1.0, %v2533_v34 }
 0x205   :  { %v3882_v12 = vpop.eup %3881  ;;  %v2230_v29 = vsel %vm5929_vm1, %v2229_v46, %v2225_v21  ;;  %v2651_v53 = vmul.f32 %v2530_v41, %v5766_v6  ;;  %v5989_v19 = vadd.f32 %v5721_v60, %v1153_v27  ;;  %v5992_v30 = vadd.f32 %v1371_v25, %v5399_v18 }
 0x206   :  { %v5983_v58 = vpop.f32.mrf.mxu2  ;;  %v2631_v42 = vmul.f32 %v2230_v29, %v5801_v10  ;;  %v2236_v22 = vadd.f32 %v5943_v62, %v2235_v55  ;;  %v2535_v15 = vmul.f32 %v5961_v44, %v2534_v24  ;;  %v5997_v16 = vadd.f32 1.0, %v3882_v12 }
 0x207   :  { %v3616_v4 = vpack.c.bf16 %v2651_v53, %v2650_v39  ;;  %v2241_v63 = vand.u32 2147483647, %v5889_v28  ;;  %v3332_v46 = vmul.f32 -1.442695, %v5989_v19  ;;  %v3352_v6 = vmul.f32 -1.442695, %v5992_v30  ;;  %v990_v61 = vpop.f32.mrf.mxu0 }
 0x208   :  { %v3566_v60 = vpack.c.bf16 %v2631_v42, %v2630_v56  ;;  %v2244_v10 = vor.u32 1.1754944e-38, %v2243_v31  ;;  %3885 = vrcp.f32 %v5997_v16  ;;  %v2240_v38 = vsel %vm6006_vm9, %v5943_v62, %v2236_v22  ;;  %v1159_v39 = vpop.f32.mrf.mxu1 }
 0x209   :  { %v3884_v54 = vpop.eup %3883  ;;  %3656 = vst [vmem:[#allocation2 + $0xe8] sm:$0xff] %v3616_v4   ;;  %v2536_v52 = vadd.f32 %v5961_v44, %v2535_v15  ;;  %vm2538_vm10 = vweird.f32 %v5961_v44  ;;  %v986_v28 = vadd.f32 %v5953_v35, %v5883_v49  ;;  %v2541_v17 = vand.u32 2147483647, %v5891_v51 }
 0x20a   :  { %3646 = vst [vmem:[#allocation2 + $0x98] sm:$0xff] %v3566_v60   ;;  %v2543_v31 = vand.u32 2147483648, %v5891_v51  ;;  %v6020_v20 = vadd.f32 1.0, %v3884_v54  ;;  %3887 = vpow2.f32 %v3332_v46  ;;  %vm2242_vm11 = vcmp.eq.f32.partialorder %v2241_v63, 8.507059e+37 }
 0x20b   :  { %vm2537_vm12 = vweird.f32 %v5891_v51  ;;  %3889 = vpow2.f32 %v3352_v6  ;;  %v2245_v62 = vsel %vm2242_vm11, %v2244_v10, %v2240_v38  ;;  %v2556_v49 = vand.u32 2147483647, %v5997_v16 }
 0x20c   :  { %vm6023_vm13 = vmor %vm2537_vm12, %vm2538_vm10  ;;  %3891 = vrcp.f32 %v6020_v20  ;;  %v1155_v25 = vadd.f32 %v5904_v13, %v986_v28  ;;  %v6034_v32 = vadd.f32 %v1373_v37, %v5422_v45  ;;  %v989_v51 = vadd.f32 %v5953_v35, %v5957_v36 }
 0x20d   :  { %v2540_v1 = vsel %vm6023_vm13, %v5961_v44, %v2536_v52  ;;  %vm2542_vm14 = vcmp.eq.f32.partialorder %v2541_v17, 8.507059e+37  ;;  %v2544_v40 = vor.u32 1.1754944e-38, %v2543_v31  ;;  %vm2552_vm15 = vweird.f32 %v5997_v16 }
 0x20e   :  { %v3886_v11 = vpop.eup %3885  ;;  %v991_v9 = vadd.f32 %v5953_v35, %v990_v61  ;;  %v1336_v5 = vpop.f32.mrf.mxu2  ;;  %v6041_v34 = vmul.f32 %v2245_v62, %v5835_v8  ;;  %v2558_v45 = vand.u32 2147483648, %v5997_v16  ;;  %v6046_v44 = vadd.f32 %v5768_v33, %v1155_v25 }
 0x20f   :  { %v2548_v13 = vmul.f32 %v3886_v11, %v5997_v16  ;;  %v2545_v56 = vsel %vm2542_vm14, %v2544_v40, %v2540_v1  ;;  %v3353_v50 = vmul.f32 -1.442695, %v6034_v32  ;;  %v1158_v27 = vadd.f32 %v1157_v26, %v989_v51  ;;  %v993_v15 = vpop.f32.mrf.mxu0 }
 0x210   :  { %v3888_v36 = vpop.eup %3887  ;;  %v1160_v21 = vadd.f32 %v1159_v39, %v991_v9  ;;  %vm6049_vm1 = vcmp.eq.f32.partialorder %v2556_v49, 8.507059e+37  ;;  %v6056_v12 = vadd.f32 %v1336_v5, %v4853_v43  ;;  %vm2553_vm2 = vweird.f32 %v3886_v11 }
 0x211   :  { %v3890_v41 = vpop.eup %3889  ;;  %v2549_v55 = vsub.f32 1.0, %v2548_v13  ;;  %v6053_v8 = vadd.f32 1.0, %v3888_v36  ;;  %v3333_v53 = vmul.f32 -1.442695, %v6046_v44  ;;  %3893 = vpow2.f32 %v3353_v50  ;;  %vm2554_vm4 = vmor %vm2552_vm15, %vm2553_vm2 }
 0x212   :  { %v3892_v29 = vpop.eup %3891  ;;  %v6058_v33 = vadd.f32 1.0, %v3890_v41  ;;  %v6064_v22 = vadd.f32 %v5827_v14, %v1158_v27  ;;  %v2256_v4 = vand.u32 2147483647, %v6020_v20  ;;  %v2258_v43 = vand.u32 2147483648, %v6020_v20 }
 0x213   :  { %v2248_v26 = vmul.f32 %v3892_v29, %v6020_v20  ;;  %v2550_v42 = vmul.f32 %v3886_v11, %v2549_v55  ;;  %3895 = vrcp.f32 %v6053_v8  ;;  %v6070_v63 = vadd.f32 %v5872_v48, %v1160_v21 }
 0x214   :  { %3897 = vrcp.f32 %v6058_v33  ;;  %v2652_v46 = vmul.f32 %v2545_v56, %v5809_v3  ;;  %v2559_v18 = vor.u32 1.1754944e-38, %v2558_v45  ;;  %vm2252_vm3 = vweird.f32 %v6020_v20  ;;  %v1162_v3 = vpop.f32.mrf.mxu1 }
 0x215   :  { %v2249_v6 = vsub.f32 1.0, %v2248_v26  ;;  %v2551_v60 = vadd.f32 %v3886_v11, %v2550_v42  ;;  %3899 = vpow2.f32 %v3333_v53  ;;  %v3338_v14 = vmul.f32 -1.442695, %v6056_v12 }
 0x216   :  { %v994_v10 = vadd.f32 %v5953_v35, %v993_v15  ;;  %vm2253_vm5 = vweird.f32 %v3892_v29  ;;  %v3334_v38 = vmul.f32 -1.442695, %v6064_v22  ;;  %vm6080_vm6 = vcmp.eq.f32.partialorder %v2256_v4, 8.507059e+37  ;;  %v1338_v13 = vpop.f32.mrf.mxu2 }
 0x217   :  { %v2250_v54 = vmul.f32 %v3892_v29, %v2249_v6  ;;  %v2555_v48 = vsel %vm2554_vm4, %v3886_v11, %v2551_v60  ;;  %v3894_v52 = vpop.eup %3893  ;;  %v2259_v61 = vor.u32 1.1754944e-38, %v2258_v43  ;;  %v3335_v17 = vmul.f32 -1.442695, %v6070_v63  ;;  %vm2254_vm7 = vmor %vm2252_vm3, %vm2253_vm5 }
 0x218   :  { %v2560_v16 = vsel %vm6049_vm1, %v2559_v18, %v2555_v48  ;;  %v6090_v0 = vadd.f32 1.0, %v3894_v52  ;;  %3901 = vpow2.f32 %v3334_v38  ;;  %v2271_v25 = vand.u32 2147483647, %v6053_v8 }
 0x219   :  { %v6087_v31 = vpop.eup %3895  ;;  %v2251_v37 = vadd.f32 %v3892_v29, %v2250_v54  ;;  %v2653_v62 = vmul.f32 %v2560_v16, %v5870_v47  ;;  %3903 = vpow2.f32 %v3335_v17  ;;  %v1163_v51 = vadd.f32 %v1162_v3, %v994_v10 }
 0x21a   :  { %v6092_v49 = vpop.eup %3897  ;;  %v2263_v1 = vmul.f32 %v6087_v31, %v6053_v8  ;;  %3905 = vpow2.f32 %v3338_v14  ;;  %v2273_v20 = vand.u32 2147483648, %v6053_v8  ;;  %v2571_v56 = vand.u32 2147483647, %v6058_v33 }
 0x21b   :  { %v2255_v39 = vsel %vm2254_vm7, %v3892_v29, %v2251_v37  ;;  %v3621_v11 = vpack.c.bf16 %v2653_v62, %v2652_v46  ;;  %v2563_v47 = vmul.f32 %v6092_v49, %v6058_v33  ;;  %v3900_v40 = vpop.eup %3899  ;;  %3907 = vrcp.f32 %v6090_v0 }
 0x21c   :  { %v2260_v9 = vsel %vm6080_vm6, %v2259_v61, %v2255_v39  ;;  %v2264_v5 = vsub.f32 1.0, %v2263_v1  ;;  %v6108_v50 = vadd.f32 1.0, %v3900_v40  ;;  %vm2267_vm0 = vweird.f32 %v6053_v8 }
 0x21d   :  { %v2633_v45 = vmul.f32 %v2260_v9, %v5941_v2  ;;  %3657 = vst [vmem:[#allocation2 + $0xf0] sm:$0xff] %v3621_v11   ;;  %v2564_v36 = vsub.f32 1.0, %v2563_v47  ;;  %vm2268_vm8 = vweird.f32 %v6087_v31  ;;  %v2573_v21 = vand.u32 2147483648, %v6058_v33 }
 0x21e   :  { %v2265_v27 = vmul.f32 %v6087_v31, %v2264_v5  ;;  %v3902_v41 = vpop.eup %3901  ;;  %vm2567_vm9 = vweird.f32 %v6058_v33  ;;  %3909 = vrcp.f32 %v6108_v50  ;;  %vm6119_vm10 = vcmp.eq.f32.partialorder %v2271_v25, 8.507059e+37  ;;  %vm6128_vm11 = vmor %vm2267_vm0, %vm2268_vm8 }
 0x21f   :  { %v3571_v55 = vpack.c.bf16 %v2633_v45, %v6041_v34  ;;  %v2565_v24 = vmul.f32 %v6092_v49, %v2564_v36  ;;  %v3904_v2 = vpop.eup %3903  ;;  %v2274_v26 = vor.u32 1.1754944e-38, %v2273_v20  ;;  %v6124_v42 = vadd.f32 %v5926_v7, %v1163_v51 }
 0x220   :  { %v2266_v29 = vadd.f32 %v6087_v31, %v2265_v27  ;;  %v3906_v15 = vpop.eup %3905  ;;  %vm2568_vm12 = vweird.f32 %v6092_v49  ;;  %vm6134_vm13 = vcmp.eq.f32.partialorder %v2571_v56, 8.507059e+37  ;;  %v6138_v46 = vadd.f32 1.0, %v3902_v41  ;;  %v995_v56 = vpop.f32.mrf.mxu0 }
 0x221   :  { %3647 = vst [vmem:[#allocation2 + $0xa0] sm:$0xff] %v3571_v55   ;;  %v2566_v4 = vadd.f32 %v6092_v49, %v2565_v24  ;;  %v3908_v7 = vpop.eup %3907  ;;  %v2574_v8 = vor.u32 1.1754944e-38, %v2573_v21  ;;  %v2586_v60 = vand.u32 2147483647, %v6090_v0  ;;  %v6144_v18 = vadd.f32 1.0, %v3904_v2  ;;  %vm6152_vm15 = vmor %vm2567_vm9, %vm2568_vm12  ;;  %v1164_v2 = vpop.f32.mrf.mxu1 }
 0x222   :  { %v2270_v6 = vsel %vm6128_vm11, %v6087_v31, %v2266_v29  ;;  %v2286_v14 = vand.u32 2147483647, %v6108_v50  ;;  %v2578_v10 = vmul.f32 %v3908_v7, %v6090_v0  ;;  %vm2582_vm14 = vweird.f32 %v6090_v0 }
 0x223   :  { %v2588_v54 = vand.u32 2147483648, %v6090_v0  ;;  %v2288_v38 = vand.u32 2147483648, %v6108_v50  ;;  %3911 = vrcp.f32 %v6138_v46  ;;  %v3336_v3 = vmul.f32 -1.442695, %v6124_v42 }
 0x224   :  { %v6160_v52 = vadd.f32 %v1338_v13, %v4893_v23  ;;  %v3910_v28 = vpop.eup %3909  ;;  %v2275_v61 = vsel %vm6119_vm10, %v2274_v26, %v2270_v6  ;;  %v2570_v33 = vsel %vm6152_vm15, %v6092_v49, %v2566_v4  ;;  %v2579_v16 = vsub.f32 1.0, %v2578_v10  ;;  %v1341_v23 = vpop.f32.mrf.mxu2 }
 0x225   :  { %v6167_v17 = vadd.f32 1.0, %v3906_v15  ;;  %v2278_v31 = vmul.f32 %v3910_v28, %v6108_v50  ;;  %vm2282_vm1 = vweird.f32 %v6108_v50  ;;  %vm6171_vm2 = vcmp.eq.f32.partialorder %v2586_v60, 8.507059e+37 }
 0x226   :  { %3913 = vrcp.f32 %v6144_v18  ;;  %vm6176_vm3 = vcmp.eq.f32.partialorder %v2286_v14, 8.507059e+37  ;;  %v2580_v1 = vmul.f32 %v3908_v7, %v2579_v16  ;;  %vm2583_vm4 = vweird.f32 %v3908_v7 }
 0x227   :  { %v2589_v49 = vor.u32 1.1754944e-38, %v2588_v54  ;;  %v2634_v25 = vmul.f32 %v2275_v61, %v5989_v19  ;;  %v2575_v51 = vsel %vm6134_vm13, %v2574_v8, %v2570_v33  ;;  %v2279_v39 = vsub.f32 1.0, %v2278_v31  ;;  %vm2584_vm7 = vmor %vm2582_vm14, %vm2583_vm4 }
 0x228   :  { %v2289_v11 = vor.u32 1.1754944e-38, %v2288_v38  ;;  %v2581_v47 = vadd.f32 %v3908_v7, %v2580_v1  ;;  %vm2297_vm5 = vweird.f32 %v6138_v46  ;;  %v2301_v40 = vand.u32 2147483647, %v6138_v46 }
 0x229   :  { %3915 = vrcp.f32 %v6167_v17  ;;  %v3912_v9 = vpop.eup %3911  ;;  %v2280_v5 = vmul.f32 %v3910_v28, %v2279_v39  ;;  %vm2283_vm6 = vweird.f32 %v3910_v28  ;;  %v3339_v19 = vmul.f32 -1.442695, %v6160_v52 }
 0x22a   :  { %3917 = vpow2.f32 %v3336_v3  ;;  %v2654_v20 = vmul.f32 %v2575_v51, %v5992_v30  ;;  %v2585_v13 = vsel %vm2584_vm7, %v3908_v7, %v2581_v47  ;;  %v2293_v45 = vmul.f32 %v3912_v9, %v6138_v46  ;;  %vm2284_vm8 = vmor %vm2282_vm1, %vm2283_vm6 }
 0x22b   :  { %v2303_v36 = vand.u32 2147483648, %v6138_v46  ;;  %v2281_v21 = vadd.f32 %v3910_v28, %v2280_v5  ;;  %v2590_v41 = vsel %vm6171_vm2, %v2589_v49, %v2585_v13  ;;  %vm2312_vm0 = vweird.f32 %v6144_v18 }
 0x22c   :  { %v3914_v27 = vpop.eup %3913  ;;  %3919 = vpow2.f32 %v3339_v19  ;;  %v2655_v0 = vmul.f32 %v2590_v41, %v6034_v32  ;;  %v2294_v30 = vsub.f32 1.0, %v2293_v45  ;;  %vm6198_vm9 = vcmp.eq.f32.partialorder %v2301_v40, 8.507059e+37  ;;  %v1343_v60 = vpop.f32.mrf.mxu2 }
 0x22d   :  { %v2308_v24 = vmul.f32 %v3914_v27, %v6144_v18  ;;  %v2285_v29 = vsel %vm2284_vm8, %v3910_v28, %v2281_v21  ;;  %vm2298_vm10 = vweird.f32 %v3912_v9  ;;  %v2316_v53 = vand.u32 2147483647, %v6144_v18 }
 0x22e   :  { %v996_v26 = vadd.f32 %v5953_v35, %v995_v56  ;;  %v2290_v50 = vsel %vm6176_vm3, %v2289_v11, %v2285_v29  ;;  %v3626_v32 = vpack.c.bf16 %v2655_v0, %v2654_v20  ;;  %v2295_v34 = vmul.f32 %v3912_v9, %v2294_v30  ;;  %vm2299_vm12 = vmor %vm2297_vm5, %vm2298_vm10 }
 0x22f   :  { %v6205_v15 = vpop.eup %3915  ;;  %v2309_v4 = vsub.f32 1.0, %v2308_v24  ;;  %v2635_v7 = vmul.f32 %v2290_v50, %v6046_v44  ;;  %vm2313_vm11 = vweird.f32 %v3914_v27  ;;  %v2318_v6 = vand.u32 2147483648, %v6144_v18 }
 0x230   :  { %v3918_v43 = vpop.eup %3917  ;;  %v1165_v8 = vadd.f32 %v1164_v2, %v996_v26  ;;  %3658 = vst [vmem:[#allocation2 + $0xf8] sm:$0xff] %v3626_v32   ;;  %v2296_v14 = vadd.f32 %v3912_v9, %v2295_v34  ;;  %v6214_v54 = vadd.f32 %v1341_v23, %v4932_v59  ;;  %v2304_v44 = vor.u32 1.1754944e-38, %v2303_v36  ;;  %vm2314_vm13 = vmor %vm2312_vm0, %vm2313_vm11 }
 0x231   :  { %v2310_v10 = vmul.f32 %v3914_v27, %v2309_v4  ;;  %v6211_v35 = vadd.f32 1.0, %v3918_v43  ;;  %v3576_v38 = vpack.c.bf16 %v2635_v7, %v2634_v25  ;;  %v2353_v3 = vmul.f32 %v6205_v15, %v6167_v17 }
 0x232   :  { %v3920_v48 = vpop.eup %3919  ;;  %v6222_v28 = vadd.f32 %v5983_v58, %v1165_v8  ;;  %v2300_v61 = vsel %vm2299_vm12, %v3912_v9, %v2296_v14  ;;  %v6226_v59 = vadd.f32 %v1343_v60, %v4973_v57  ;;  %vm2317_vm14 = vcmp.eq.f32.partialorder %v2316_v53, 8.507059e+37 }
 0x233   :  { %v2311_v33 = vadd.f32 %v3914_v27, %v2310_v10  ;;  %3921 = vrcp.f32 %v6211_v35  ;;  %3648 = vst [vmem:[#allocation2 + $0xa8] sm:$0xff] %v3576_v38   ;;  %v2305_v16 = vsel %vm6198_vm9, %v2304_v44, %v2300_v61  ;;  %v2319_v46 = vor.u32 1.1754944e-38, %v2318_v6 }
 0x234   :  { %v1617_v58 = vadd.f32 1.0, %v3920_v48  ;;  %v3337_v37 = vmul.f32 -1.442695, %v6222_v28  ;;  %v3340_v23 = vmul.f32 -1.442695, %v6214_v54  ;;  %v2354_v1 = vsub.f32 1.0, %v2353_v3 }
 0x235   :  { %v2315_v31 = vsel %vm2314_vm13, %v3914_v27, %v2311_v33  ;;  %v2636_v57 = vmul.f32 %v2305_v16, %v6064_v22  ;;  %v3341_v25 = vmul.f32 -1.442695, %v6226_v59  ;;  %vm2358_vm15 = vweird.f32 %v6205_v15 }
 0x236   :  { %v2320_v62 = vsel %vm2317_vm14, %v2319_v46, %v2315_v31  ;;  %3923 = vrcp.f32 %v1617_v58  ;;  %v2355_v39 = vmul.f32 %v6205_v15, %v2354_v1  ;;  %v2363_v5 = vand.u32 2147483648, %v6167_v17 }
 0x237   :  { %v2637_v49 = vmul.f32 %v2320_v62, %v6070_v63  ;;  %3925 = vpow2.f32 %v3337_v37  ;;  %vm2357_vm1 = vweird.f32 %v6167_v17  ;;  %v2361_v13 = vand.u32 2147483647, %v6167_v17 }
 0x238   :  { %3927 = vpow2.f32 %v3340_v23  ;;  %v2356_v22 = vadd.f32 %v6205_v15, %v2355_v39  ;;  %vm2359_vm2 = vmor %vm2357_vm1, %vm2358_vm15  ;;  %v2376_v27 = vand.u32 2147483647, %v1617_v58  ;;  %v2378_v21 = vand.u32 2147483648, %v1617_v58 }
 0x239   :  { %v6238_v18 = vpop.eup %3921  ;;  %v3581_v51 = vpack.c.bf16 %v2637_v49, %v2636_v57  ;;  %3929 = vpow2.f32 %v3341_v25  ;;  %v2364_v30 = vor.u32 1.1754944e-38, %v2363_v5  ;;  %vm2362_vm4 = vcmp.eq.f32.partialorder %v2361_v13, 8.507059e+37 }
 0x23a   :  { %v2323_v11 = vmul.f32 %v6238_v18, %v6211_v35  ;;  %v2360_v41 = vsel %vm2359_vm2, %v6205_v15, %v2356_v22  ;;  %vm2372_vm5 = vweird.f32 %v1617_v58  ;;  %v2379_v29 = vor.u32 1.1754944e-38, %v2378_v21 }
 0x23b   :  { %3649 = vst [vmem:[#allocation2 + $0xb0] sm:$0xff] %v3581_v51   ;;  %v2365_v2 = vsel %vm2362_vm4, %v2364_v30, %v2360_v41  ;;  %vm2377_vm7 = vcmp.eq.f32.partialorder %v2376_v27, 8.507059e+37  ;;  %vm2328_vm0 = vweird.f32 %v6238_v18  ;;  %v2331_v50 = vand.u32 2147483647, %v6211_v35 }
 0x23c   :  { %v3924_v47 = vpop.eup %3923  ;;  %v2324_v19 = vsub.f32 1.0, %v2323_v11  ;;  %v2640_v4 = vmul.f32 %v2365_v2, %v6056_v12  ;;  %v2333_v43 = vand.u32 2147483648, %v6211_v35  ;;  %vm2327_vm8 = vweird.f32 %v6211_v35 }
 0x23d   :  { %v3926_v40 = vpop.eup %3925  ;;  %v2368_v63 = vmul.f32 %v3924_v47, %v1617_v58  ;;  %vm2373_vm3 = vweird.f32 %v3924_v47  ;;  %vm6268_vm9 = vmor %vm2327_vm8, %vm2328_vm0  ;;  %vm2332_vm10 = vcmp.eq.f32.partialorder %v2331_v50, 8.507059e+37 }
 0x23e   :  { %v3928_v9 = vpop.eup %3927  ;;  %v6246_v20 = vadd.f32 1.0, %v3926_v40  ;;  %v2325_v55 = vmul.f32 %v6238_v18, %v2324_v19  ;;  %vm2374_vm6 = vmor %vm2372_vm5, %vm2373_vm3  ;;  %v2334_v44 = vor.u32 1.1754944e-38, %v2333_v43 }
 0x23f   :  { %v2369_v45 = vsub.f32 1.0, %v2368_v63  ;;  %v6250_v36 = vadd.f32 1.0, %v3928_v9  ;;  %v3930_v56 = vpop.eup %3929 }
 0x240   :  { %3931 = vrcp.f32 %v6246_v20  ;;  %v6256_v24 = vadd.f32 1.0, %v3930_v56  ;;  %v2326_v15 = vadd.f32 %v6238_v18, %v2325_v55  ;;  %v2348_v48 = vand.u32 2147483648, %v6246_v20 }
 0x241   :  { %v2370_v0 = vmul.f32 %v3924_v47, %v2369_v45  ;;  %3933 = vrcp.f32 %v6250_v36  ;;  %v2346_v3 = vand.u32 2147483647, %v6246_v20  ;;  %vm2342_vm12 = vweird.f32 %v6246_v20 }
 0x242   :  { %3935 = vrcp.f32 %v6256_v24  ;;  %v2330_v12 = vsel %vm6268_vm9, %v6238_v18, %v2326_v15  ;;  %vm2387_vm14 = vweird.f32 %v6250_v36  ;;  %v2393_v31 = vand.u32 2147483648, %v6250_v36 }
 0x243   :  { %v2371_v17 = vadd.f32 %v3924_v47, %v2370_v0  ;;  %v2335_v16 = vsel %vm2332_vm10, %v2334_v44, %v2330_v12  ;;  %v2349_v58 = vor.u32 1.1754944e-38, %v2348_v48  ;;  %v2391_v23 = vand.u32 2147483647, %v6250_v36 }
 0x244   :  { %vm2347_vm1 = vcmp.eq.f32.partialorder %v2346_v3, 8.507059e+37  ;;  %v2406_v57 = vand.u32 2147483647, %v6256_v24  ;;  %v2408_v49 = vand.u32 2147483648, %v6256_v24  ;;  %v2638_v39 = vmul.f32 %v2335_v16, %v6124_v42 }
 0x245   :  { %v2375_v53 = vsel %vm2374_vm6, %v3924_v47, %v2371_v17  ;;  %v2394_v47 = vor.u32 1.1754944e-38, %v2393_v31  ;;  %vm2392_vm4 = vcmp.eq.f32.partialorder %v2391_v23, 8.507059e+37  ;;  %vm2402_vm5 = vweird.f32 %v6256_v24 }
 0x246   :  { %v3932_v26 = vpop.eup %3931  ;;  %v2380_v32 = vsel %vm2377_vm7, %v2379_v29, %v2375_v53  ;;  %v2409_v9 = vor.u32 1.1754944e-38, %v2408_v49  ;;  %vm2407_vm7 = vcmp.eq.f32.partialorder %v2406_v57, 8.507059e+37 }
 0x247   :  { %v3934_v34 = vpop.eup %3933  ;;  %v2641_v7 = vmul.f32 %v2380_v32, %v6160_v52  ;;  %v2338_v6 = vmul.f32 %v3932_v26, %v6246_v20  ;;  %vm2343_vm11 = vweird.f32 %v3932_v26 }
 0x248   :  { %v2383_v8 = vmul.f32 %v3934_v34, %v6250_v36  ;;  %v3936_v38 = vpop.eup %3935  ;;  %vm2388_vm13 = vweird.f32 %v3934_v34  ;;  %vm2344_vm15 = vmor %vm2342_vm12, %vm2343_vm11 }
 0x249   :  { %v3591_v14 = vpack.c.bf16 %v2641_v7, %v2640_v4  ;;  %v2339_v10 = vsub.f32 1.0, %v2338_v6  ;;  %v2398_v33 = vmul.f32 %v3936_v38, %v6256_v24  ;;  %vm2389_vm2 = vmor %vm2387_vm14, %vm2388_vm13  ;;  %vm2403_vm3 = vweird.f32 %v3936_v38 }
 0x24a   :  { %v2384_v52 = vsub.f32 1.0, %v2383_v8  ;;  %vm2404_vm6 = vmor %vm2402_vm5, %vm2403_vm3 }
 0x24b   :  { %3651 = vst [vmem:[#allocation2 + $0xc0] sm:$0xff] %v3591_v14   ;;  %v2340_v35 = vmul.f32 %v3932_v26, %v2339_v10  ;;  %v2399_v62 = vsub.f32 1.0, %v2398_v33 }
 0x24c   :  { %v2385_v61 = vmul.f32 %v3934_v34, %v2384_v52 }
 0x24d   :  { %v2341_v46 = vadd.f32 %v3932_v26, %v2340_v35  ;;  %v2400_v51 = vmul.f32 %v3936_v38, %v2399_v62 }
 0x24e   :  { %v2386_v37 = vadd.f32 %v3934_v34, %v2385_v61 }
 0x24f   :  { %v2345_v1 = vsel %vm2344_vm15, %v3932_v26, %v2341_v46  ;;  %v2401_v40 = vadd.f32 %v3936_v38, %v2400_v51 }
 0x250   :  { %v2350_v25 = vsel %vm2347_vm1, %v2349_v58, %v2345_v1  ;;  %v2390_v18 = vsel %vm2389_vm2, %v3934_v34, %v2386_v37 }
 0x251   :  { %v2639_v11 = vmul.f32 %v2350_v25, %v6222_v28  ;;  %v2395_v63 = vsel %vm2392_vm4, %v2394_v47, %v2390_v18  ;;  %v2405_v5 = vsel %vm2404_vm6, %v3936_v38, %v2401_v40 }
 0x252   :  { %v2410_v42 = vsel %vm2407_vm7, %v2409_v9, %v2405_v5  ;;  %v2642_v28 = vmul.f32 %v2395_v63, %v6214_v54 }
 0x253   :  { %v3586_v22 = vpack.c.bf16 %v2639_v11, %v2638_v39  ;;  %v2643_v19 = vmul.f32 %v2410_v42, %v6226_v59 }
 0x255   :  { %3650 = vst [vmem:[#allocation2 + $0xb8] sm:$0xff] %v3586_v22   ;;  %v3596_v20 = vpack.c.bf16 %v2643_v19, %v2642_v28 }
 0x257   :  { %3652 = vst [vmem:[#allocation2 + $0xc8] sm:$0xff] %v3596_v20  }
 0x258   :  { %2796 = dma.vmem_to_hbm [thread:$0]  %s2789_s20, 4096, %s2791_s23, [#allocation3], %s3967_s24, %s3967_s24, %s3968_s25  }
 0x259   :  { %3964 = dma.done.wait [#allocation3], 4096  }
 0x25a   :  { %3965 = vsyncadd [#allocation3], 4294963200 }
 0x25b   :  { %2801 = vsyncpa [#allocation3], 1 }

</bundles_post_ra>
